<compile_context>
chip_gen: v6e
topology: v6e:2x2x1
jax: 0.10.0
libtpu: 0.0.40
codegen_flags: <defaults>
</compile_context>

<pallas_src>
import jax
import jax.numpy as jnp
from jax import lax
from jax.experimental import pallas as pl
from jax.experimental.pallas import tpu as pltpu

# ---- problem configuration (small, consistent with the module) -------------
BATCH = 8          # independent (x, mem) samples
BLOCK_B = 4        # samples per grid step
N_TOK = 8          # query tokens per sample (x rows)
M_TOK = 16         # memory tokens per sample (mem rows)
D_MODEL = 32
N_HEAD = 4
HEAD_DIM = D_MODEL // N_HEAD
HIDDEN = 4 * D_MODEL
LN_EPS = 1e-5

T_X = BLOCK_B * N_TOK      # x rows per grid step   (32)
T_M = BLOCK_B * M_TOK      # mem rows per grid step (64)

# ---- packed weight slab layout: every block start is lane-aligned to 128 ----
C_SA_QKV = 0               # (32,  96)  self-attn q|k|v (scale folded into q cols)
C_SA_WO  = 128             # (32,  32)
C_CA_WQ  = 256             # (32,  32)  cross-attn q (scale folded in)
C_CA_WKV = 384             # (32,  64)  cross-attn k|v
C_CA_WO  = 512             # (32,  32)
C_W1     = 640             # (32, 128)
WMAT_COLS = 768

# ---- packed vector slab: (NUM_VEC, T_X, 128), each param pre-broadcast to T_X rows
(R_B1, R_LN1_W, R_LN1_B, R_LN2_W, R_LN2_B,
 R_LN3_W, R_LN3_B, R_SA_BO, R_CA_BO, R_B2) = range(10)
NUM_VEC = 10


# ---------------------------------------------------------------------------
# in-kernel math helpers
# ---------------------------------------------------------------------------
def _layernorm(x, w, b):
    mu = jnp.mean(x, axis=-1, keepdims=True)
    xc = x - mu
    var = jnp.mean(xc * xc, axis=-1, keepdims=True)   # biased variance (PyTorch LN)
    return xc * lax.rsqrt(var + LN_EPS) * w + b


def _gelu_tanh(x):
    # tanh approximation of nn.GELU (exact-erf); diff ~1e-3, far inside tolerance.
    c = 0.7978845608028654  # sqrt(2/pi)
    return 0.5 * x * (1.0 + jnp.tanh(c * (x + 0.044715 * x * x * x)))


def _mha(q, k, v, n_kv, wo, bo, o_sc):
    """Multi-head attention for BLOCK_B independent samples.

    q: (T_X, D) (scale already folded into the q projection).
    k, v: (BLOCK_B * n_kv, D).
    o_sc: VMEM scratch (BLOCK_B, N_TOK, D) used for the head-concat.
    Returns (T_X, D) = attn output after the output projection + bias.
    """
    q3 = q.reshape(BLOCK_B, N_TOK, D_MODEL)
    k3 = k.reshape(BLOCK_B, n_kv, D_MODEL)
    v3 = v.reshape(BLOCK_B, n_kv, D_MODEL)

    # Per-head scores via dot_general contracting the feature dim of BOTH
    # operands (no K transpose), then stack the head tiles along sublanes so
    # the softmax (max / exp / sum / reciprocal) runs exactly once.
    scores = []
    for h in range(N_HEAD):
        sl = slice(h * HEAD_DIM, (h + 1) * HEAD_DIM)
        scores.append(lax.dot_general(
            q3[:, :, sl], k3[:, :, sl],
            dimension_numbers=(((2,), (2,)), ((0,), (0,))),
            preferred_element_type=jnp.float32))              # (BLOCK_B, N_TOK, n_kv)
    s = jnp.concatenate(scores, axis=1)                        # (BLOCK_B, H*N_TOK, n_kv)
    s = s - jnp.max(s, axis=-1, keepdims=True)
    p = jnp.exp(s)
    p = p * pl.reciprocal(jnp.sum(p, axis=-1, keepdims=True), approx=True)

    # Per-head p@v written straight into the scratch at static lane offsets
    # (avoids lane-axis concatenation shuffles).
    for h in range(N_HEAD):
        sl = slice(h * HEAD_DIM, (h + 1) * HEAD_DIM)
        p_h = p[:, h * N_TOK:(h + 1) * N_TOK, :]               # (BLOCK_B, N_TOK, n_kv)
        o_sc[:, :, sl] = lax.dot_general(
            p_h, v3[:, :, sl],
            dimension_numbers=(((2,), (1,)), ((0,), (0,))),
            preferred_element_type=jnp.float32)                # (BLOCK_B, N_TOK, HEAD_DIM)

    o = o_sc[...].reshape(T_X, D_MODEL)
    return jnp.dot(o, wo, preferred_element_type=jnp.float32) + bo


# ---------------------------------------------------------------------------
# the Pallas kernel: whole decoder layer for BLOCK_B samples per grid step
# ---------------------------------------------------------------------------
def decoder_layer_kernel(x_ref, mem_ref, wmat_ref, w2_ref, vec_ref, out_ref, o_sc):
    D = D_MODEL
    x = x_ref[...]        # (T_X, D)
    mem = mem_ref[...]    # (T_M, D)

    def vecs(idx, width=D):
        # pre-broadcast (T_X, width) parameter row-block at lane offset 0
        return vec_ref[idx][:, :width]

    # ---- x = x + self_attn(norm1(x), norm1(x), norm1(x)) --------------------
    h1 = _layernorm(x, vecs(R_LN1_W), vecs(R_LN1_B))
    qkv = jnp.dot(h1, wmat_ref[:, C_SA_QKV:C_SA_QKV + 3 * D],
                  preferred_element_type=jnp.float32)          # fused Q|K|V matmul
    x = x + _mha(qkv[:, 0:D], qkv[:, D:2 * D], qkv[:, 2 * D:3 * D], N_TOK,
                 wmat_ref[:, C_SA_WO:C_SA_WO + D], vecs(R_SA_BO), o_sc)

    # ---- x = x + cross_attn(norm2(x), mem, mem) ------------------------------
    h2 = _layernorm(x, vecs(R_LN2_W), vecs(R_LN2_B))
    q = jnp.dot(h2, wmat_ref[:, C_CA_WQ:C_CA_WQ + D],
                preferred_element_type=jnp.float32)
    kv = jnp.dot(mem, wmat_ref[:, C_CA_WKV:C_CA_WKV + 2 * D],
                 preferred_element_type=jnp.float32)           # fused K|V matmul
    x = x + _mha(q, kv[:, 0:D], kv[:, D:2 * D], M_TOK,
                 wmat_ref[:, C_CA_WO:C_CA_WO + D], vecs(R_CA_BO), o_sc)

    # ---- x = x + dropout(mlp(norm3(x)))   (dropout = identity at inference) --
    h3 = _layernorm(x, vecs(R_LN3_W), vecs(R_LN3_B))
    hid = _gelu_tanh(jnp.dot(h3, wmat_ref[:, C_W1:C_W1 + HIDDEN],
                             preferred_element_type=jnp.float32)
                     + vec_ref[R_B1][:, :HIDDEN])
    x = x + jnp.dot(hid, w2_ref[...], preferred_element_type=jnp.float32) \
          + vecs(R_B2)

    out_ref[...] = x.astype(out_ref.dtype)


def transformer_decoder_layer(x_flat, mem_flat, packed):
    """x_flat: (BATCH*N_TOK, D), mem_flat: (BATCH*M_TOK, D)."""
    wmat, w2, vec = packed
    n_blocks = BATCH // BLOCK_B

    D, H, Dh = D_MODEL, HIDDEN, HEAD_DIM
    flops_per_sample = 2 * (N_TOK * D * 3 * D                 # fused self qkv
                            + N_HEAD * 2 * N_TOK * N_TOK * Dh  # self scores + p@v
                            + N_TOK * D * D                    # self out proj
                            + N_TOK * D * D                    # cross q
                            + M_TOK * D * 2 * D                # fused cross kv
                            + N_HEAD * 2 * N_TOK * M_TOK * Dh  # cross scores + p@v
                            + N_TOK * D * D                    # cross out proj
                            + 2 * N_TOK * D * H)               # mlp (both layers)
    transc_per_sample = (N_HEAD * N_TOK * (N_TOK + M_TOK)      # softmax exps
                         + 2 * N_TOK                           # approx reciprocals
                         + N_TOK * H)                          # gelu tanh
    bytes_accessed = 4 * (x_flat.size + mem_flat.size + wmat.size + w2.size
                          + vec.size + x_flat.size)

    grid_spec = pltpu.PrefetchScalarGridSpec(
        num_scalar_prefetch=0,
        grid=(n_blocks,),
        in_specs=[
            pl.BlockSpec((T_X, D_MODEL), lambda i: (i, 0)),
            pl.BlockSpec((T_M, D_MODEL), lambda i: (i, 0)),
            # grid-invariant weight / vector slabs: DMA'd once, stay resident
            pl.BlockSpec((D_MODEL, WMAT_COLS), lambda i: (0, 0)),
            pl.BlockSpec((HIDDEN, D_MODEL), lambda i: (0, 0)),
            pl.BlockSpec((NUM_VEC, T_X, 128), lambda i: (0, 0, 0)),
        ],
        out_specs=pl.BlockSpec((T_X, D_MODEL), lambda i: (i, 0)),
        scratch_shapes=[pltpu.VMEM((BLOCK_B, N_TOK, D_MODEL), jnp.float32)],
    )

    return pl.pallas_call(
        decoder_layer_kernel,
        out_shape=jax.ShapeDtypeStruct(x_flat.shape, x_flat.dtype),
        grid_spec=grid_spec,
        compiler_params=pltpu.CompilerParams(
            dimension_semantics=("parallel",)),   # split batch across v7x TCs
        cost_estimate=pl.CostEstimate(
            flops=BATCH * flops_per_sample,
            transcendentals=BATCH * transc_per_sample,
            bytes_accessed=bytes_accessed),
    )(x_flat, mem_flat, wmat, w2, vec)


# ---------------------------------------------------------------------------
# parameter packing (fold attention scale, lane-aligned slabs, pre-broadcast)
# ---------------------------------------------------------------------------
def pack_params(params):
    (ln1_w, ln1_b, sa_wq, sa_wk, sa_wv, sa_wo, sa_bo,
     ln2_w, ln2_b, ca_wq, ca_wk, ca_wv, ca_wo, ca_bo,
     ln3_w, ln3_b, w1, b1, w2, b2) = params
    scale = float(HEAD_DIM) ** (-0.5)
    D = D_MODEL

    wmat = jnp.zeros((D, WMAT_COLS), jnp.float32)
    wmat = wmat.at[:, C_SA_QKV:C_SA_QKV + D].set(sa_wq * scale)
    wmat = wmat.at[:, C_SA_QKV + D:C_SA_QKV + 2 * D].set(sa_wk)
    wmat = wmat.at[:, C_SA_QKV + 2 * D:C_SA_QKV + 3 * D].set(sa_wv)
    wmat = wmat.at[:, C_SA_WO:C_SA_WO + D].set(sa_wo)
    wmat = wmat.at[:, C_CA_WQ:C_CA_WQ + D].set(ca_wq * scale)
    wmat = wmat.at[:, C_CA_WKV:C_CA_WKV + D].set(ca_wk)
    wmat = wmat.at[:, C_CA_WKV + D:C_CA_WKV + 2 * D].set(ca_wv)
    wmat = wmat.at[:, C_CA_WO:C_CA_WO + D].set(ca_wo)
    wmat = wmat.at[:, C_W1:C_W1 + HIDDEN].set(w1)

    vec = jnp.zeros((NUM_VEC, T_X, 128), jnp.float32)
    rows = [(R_B1, b1), (R_LN1_W, ln1_w), (R_LN1_B, ln1_b),
            (R_LN2_W, ln2_w), (R_LN2_B, ln2_b),
            (R_LN3_W, ln3_w), (R_LN3_B, ln3_b),
            (R_SA_BO, sa_bo), (R_CA_BO, ca_bo), (R_B2, b2)]
    for idx, row in rows:                 # pre-broadcast to T_X rows at pack time
        w = row.shape[1]
        vec = vec.at[idx, :, :w].set(jnp.broadcast_to(row.astype(jnp.float32), (T_X, w)))

    return wmat, w2.astype(jnp.float32), vec


# ---------------------------------------------------------------------------
# pure-JAX reference (mirrors the PyTorch forward) for a sanity check
# ---------------------------------------------------------------------------
def _attention_ref(q_in, kv_in, wq, wk, wv, wo, bo, scale):
    Nq, Mk = q_in.shape[0], kv_in.shape[0]
    q = jnp.dot(q_in, wq, precision='highest').reshape(Nq, N_HEAD, HEAD_DIM)
    k = jnp.dot(kv_in, wk, precision='highest').reshape(Mk, N_HEAD, HEAD_DIM)
    v = jnp.dot(kv_in, wv, precision='highest').reshape(Mk, N_HEAD, HEAD_DIM)
    attn = jnp.einsum('nkc,mkc->knm', q, k, precision='highest') * scale
    attn = jax.nn.softmax(attn, axis=-1)
    o = jnp.einsum('knm,mkc->nkc', attn, v, precision='highest').reshape(Nq, D_MODEL)
    return jnp.dot(o, wo, precision='highest') + bo


def _layernorm_ref(x, w, b):
    mu = jnp.mean(x, axis=-1, keepdims=True)
    var = jnp.mean((x - mu) ** 2, axis=-1, keepdims=True)
    return (x - mu) / jnp.sqrt(var + LN_EPS) * w + b


def reference_forward(x, mem, params):
    (ln1_w, ln1_b, sa_wq, sa_wk, sa_wv, sa_wo, sa_bo,
     ln2_w, ln2_b, ca_wq, ca_wk, ca_wv, ca_wo, ca_bo,
     ln3_w, ln3_b, w1, b1, w2, b2) = params
    scale = float(HEAD_DIM) ** (-0.5)
    h1 = _layernorm_ref(x, ln1_w, ln1_b)
    x = x + _attention_ref(h1, h1, sa_wq, sa_wk, sa_wv, sa_wo, sa_bo, scale)
    h2 = _layernorm_ref(x, ln2_w, ln2_b)
    x = x + _attention_ref(h2, mem, ca_wq, ca_wk, ca_wv, ca_wo, ca_bo, scale)
    h3 = _layernorm_ref(x, ln3_w, ln3_b)
    hid = jax.nn.gelu(jnp.dot(h3, w1, precision='highest') + b1, approximate=False)
    x = x + jnp.dot(hid, w2, precision='highest') + b2
    return x


# ---------------------------------------------------------------------------
def init_params(key):
    ks = list(jax.random.split(key, 20))

    def w(k, shape, s=0.05):
        return (s * jax.random.normal(k, shape)).astype(jnp.float32)

    ln1_w = 1.0 + w(ks[0], (1, D_MODEL), 0.1); ln1_b = w(ks[1], (1, D_MODEL), 0.02)
    ln2_w = 1.0 + w(ks[2], (1, D_MODEL), 0.1); ln2_b = w(ks[3], (1, D_MODEL), 0.02)
    ln3_w = 1.0 + w(ks[4], (1, D_MODEL), 0.1); ln3_b = w(ks[5], (1, D_MODEL), 0.02)

    sa_wq = w(ks[6], (D_MODEL, D_MODEL)); sa_wk = w(ks[7], (D_MODEL, D_MODEL))
    sa_wv = w(ks[8], (D_MODEL, D_MODEL)); sa_wo = w(ks[9], (D_MODEL, D_MODEL))
    sa_bo = w(ks[10], (1, D_MODEL), 0.02)

    ca_wq = w(ks[11], (D_MODEL, D_MODEL)); ca_wk = w(ks[12], (D_MODEL, D_MODEL))
    ca_wv = w(ks[13], (D_MODEL, D_MODEL)); ca_wo = w(ks[14], (D_MODEL, D_MODEL))
    ca_bo = w(ks[15], (1, D_MODEL), 0.02)

    w1 = w(ks[16], (D_MODEL, HIDDEN)); b1 = w(ks[17], (1, HIDDEN), 0.02)
    w2 = w(ks[18], (HIDDEN, D_MODEL)); b2 = w(ks[19], (1, D_MODEL), 0.02)

    return (ln1_w, ln1_b, sa_wq, sa_wk, sa_wv, sa_wo, sa_bo,
            ln2_w, ln2_b, ca_wq, ca_wk, ca_wv, ca_wo, ca_bo,
            ln3_w, ln3_b, w1, b1, w2, b2)


if __name__ == "__main__":
    key = jax.random.PRNGKey(0)
    kx, kmem, kp = jax.random.split(key, 3)
    x = jax.random.normal(kx, (BATCH, N_TOK, D_MODEL), dtype=jnp.float32)
    mem = jax.random.normal(kmem, (BATCH, M_TOK, D_MODEL), dtype=jnp.float32)
    params = init_params(kp)
    packed = pack_params(params)

    out_flat = transformer_decoder_layer(
        x.reshape(BATCH * N_TOK, D_MODEL),
        mem.reshape(BATCH * M_TOK, D_MODEL),
        packed)
    out_flat = jax.block_until_ready(out_flat)
    out = out_flat.reshape(BATCH, N_TOK, D_MODEL)

    ref = jax.vmap(lambda xb, mb: reference_forward(xb, mb, params))(x, mem)
    max_err = float(jnp.max(jnp.abs(out - ref)))
    assert out.shape == (BATCH, N_TOK, D_MODEL)
    assert max_err < 5e-2, f"mismatch vs reference: {max_err}"
    print("KERNEL_OK")
</pallas_src>

<mosaic_0001>
module attributes {stable_mosaic.version = 11 : i64} {
  func.func @decoder_layer_kernel(%arg0: i32, %arg1: memref<32x32xf32, #tpu.memory_space<vmem>>, %arg2: memref<64x32xf32, #tpu.memory_space<vmem>>, %arg3: memref<32x768xf32, #tpu.memory_space<vmem>>, %arg4: memref<128x32xf32, #tpu.memory_space<vmem>>, %arg5: memref<10x32x128xf32, #tpu.memory_space<vmem>>, %arg6: memref<32x32xf32, #tpu.memory_space<vmem>>, %arg7: memref<4x8x32xf32, #tpu.memory_space<vmem>>) attributes {dimension_semantics = [#tpu.dimension_semantics<parallel>], iteration_bounds = array<i64: 2>, scalar_prefetch = 0 : i64, scratch_operands = 1 : i64, tpu.core_type = #tpu.core_type<tc>, window_params = [{transform_indices = @transform_0, window_bounds = array<i64: 32, 32>}, {transform_indices = @transform_1, window_bounds = array<i64: 64, 32>}, {pipeline_mode = #tpu.pipeline_mode<synchronous>, transform_indices = @transform_2, window_bounds = array<i64: 32, 768>}, {pipeline_mode = #tpu.pipeline_mode<synchronous>, transform_indices = @transform_3, window_bounds = array<i64: 128, 32>}, {pipeline_mode = #tpu.pipeline_mode<synchronous>, transform_indices = @transform_4, window_bounds = array<i64: 10, 32, 128>}, {transform_indices = @transform_5, window_bounds = array<i64: 32, 32>}]} {
    %c0 = arith.constant 0 : index
    %c0_0 = arith.constant 0 : index
    %0 = vector.load %arg1[%c0, %c0_0] : memref<32x32xf32, #tpu.memory_space<vmem>>, vector<32x32xf32>
    %c0_1 = arith.constant 0 : index
    %c0_2 = arith.constant 0 : index
    %1 = vector.load %arg2[%c0_1, %c0_2] : memref<64x32xf32, #tpu.memory_space<vmem>>, vector<64x32xf32>
    %c1 = arith.constant 1 : index
    %c0_3 = arith.constant 0 : index
    %c0_4 = arith.constant 0 : index
    %2 = vector.load %arg5[%c1, %c0_3, %c0_4] : memref<10x32x128xf32, #tpu.memory_space<vmem>>, vector<1x32x128xf32>
    %3 = vector.shape_cast %2 : vector<1x32x128xf32> to vector<32x128xf32>
    %4 = vector.extract_strided_slice %3 {offsets = [0, 0], sizes = [32, 32], strides = [1, 1]} : vector<32x128xf32> to vector<32x32xf32>
    %c2 = arith.constant 2 : index
    %c0_5 = arith.constant 0 : index
    %c0_6 = arith.constant 0 : index
    %5 = vector.load %arg5[%c2, %c0_5, %c0_6] : memref<10x32x128xf32, #tpu.memory_space<vmem>>, vector<1x32x128xf32>
    %6 = vector.shape_cast %5 : vector<1x32x128xf32> to vector<32x128xf32>
    %7 = vector.extract_strided_slice %6 {offsets = [0, 0], sizes = [32, 32], strides = [1, 1]} : vector<32x128xf32> to vector<32x32xf32>
    %cst = arith.constant dense<0.000000e+00> : vector<32xf32>
    %8 = vector.multi_reduction <add>, %0, %cst [1] : vector<32x32xf32> to vector<32xf32>
    %9 = vector.shape_cast %8 : vector<32xf32> to vector<32x1xf32>
    %cst_7 = arith.constant 3.200000e+01 : f32
    %10 = vector.broadcast %cst_7 : f32 to vector<32x1xf32>
    %11 = arith.divf %9, %10 : vector<32x1xf32>
    %12 = vector.broadcast %11 : vector<32x1xf32> to vector<32x32xf32>
    %13 = arith.subf %0, %12 : vector<32x32xf32>
    %14 = arith.mulf %13, %13 : vector<32x32xf32>
    %cst_8 = arith.constant dense<0.000000e+00> : vector<32xf32>
    %15 = vector.multi_reduction <add>, %14, %cst_8 [1] : vector<32x32xf32> to vector<32xf32>
    %16 = vector.shape_cast %15 : vector<32xf32> to vector<32x1xf32>
    %cst_9 = arith.constant 3.200000e+01 : f32
    %17 = vector.broadcast %cst_9 : f32 to vector<32x1xf32>
    %18 = arith.divf %16, %17 : vector<32x1xf32>
    %cst_10 = arith.constant 9.99999974E-6 : f32
    %19 = vector.broadcast %cst_10 : f32 to vector<32x1xf32>
    %20 = arith.addf %18, %19 : vector<32x1xf32>
    %21 = math.rsqrt %20 : vector<32x1xf32>
    %22 = vector.broadcast %21 : vector<32x1xf32> to vector<32x32xf32>
    %23 = arith.mulf %13, %22 : vector<32x32xf32>
    %24 = arith.mulf %23, %4 : vector<32x32xf32>
    %25 = arith.addf %24, %7 : vector<32x32xf32>
    %c0_11 = arith.constant 0 : index
    %c0_12 = arith.constant 0 : index
    %26 = vector.load %arg3[%c0_11, %c0_12] : memref<32x768xf32, #tpu.memory_space<vmem>>, vector<32x96xf32>
    %cst_13 = arith.constant dense<0.000000e+00> : vector<32x96xf32>
    %27 = tpu.matmul %25, %26, %cst_13 {dimension_numbers = #tpu.dot_dimension_numbers<[1], [0], [0], [1], [0, 0, 1, 1], [], []>} : vector<32x32xf32>, vector<32x96xf32>, vector<32x96xf32> -> vector<32x96xf32>
    %28 = vector.extract_strided_slice %27 {offsets = [0, 0], sizes = [32, 32], strides = [1, 1]} : vector<32x96xf32> to vector<32x32xf32>
    %29 = vector.extract_strided_slice %27 {offsets = [0, 32], sizes = [32, 32], strides = [1, 1]} : vector<32x96xf32> to vector<32x32xf32>
    %30 = vector.extract_strided_slice %27 {offsets = [0, 64], sizes = [32, 32], strides = [1, 1]} : vector<32x96xf32> to vector<32x32xf32>
    %c0_14 = arith.constant 0 : index
    %c128 = arith.constant 128 : index
    %31 = vector.load %arg3[%c0_14, %c128] : memref<32x768xf32, #tpu.memory_space<vmem>>, vector<32x32xf32>
    %c7 = arith.constant 7 : index
    %c0_15 = arith.constant 0 : index
    %c0_16 = arith.constant 0 : index
    %32 = vector.load %arg5[%c7, %c0_15, %c0_16] : memref<10x32x128xf32, #tpu.memory_space<vmem>>, vector<1x32x128xf32>
    %33 = vector.shape_cast %32 : vector<1x32x128xf32> to vector<32x128xf32>
    %34 = vector.extract_strided_slice %33 {offsets = [0, 0], sizes = [32, 32], strides = [1, 1]} : vector<32x128xf32> to vector<32x32xf32>
    %35 = vector.shape_cast %28 : vector<32x32xf32> to vector<4x8x32xf32>
    %36 = vector.shape_cast %29 : vector<32x32xf32> to vector<4x8x32xf32>
    %37 = vector.shape_cast %30 : vector<32x32xf32> to vector<4x8x32xf32>
    %38 = vector.extract_strided_slice %35 {offsets = [0, 0, 0], sizes = [4, 8, 8], strides = [1, 1, 1]} : vector<4x8x32xf32> to vector<4x8x8xf32>
    %39 = vector.extract_strided_slice %36 {offsets = [0, 0, 0], sizes = [4, 8, 8], strides = [1, 1, 1]} : vector<4x8x32xf32> to vector<4x8x8xf32>
    %cst_17 = arith.constant dense<0.000000e+00> : vector<4x8x8xf32>
    %40 = tpu.matmul %38, %39, %cst_17 {dimension_numbers = #tpu.dot_dimension_numbers<[2], [2], [1], [1], [0, 0, 0, 1, 1, 1], [0], [0]>} : vector<4x8x8xf32>, vector<4x8x8xf32>, vector<4x8x8xf32> -> vector<4x8x8xf32>
    %41 = vector.extract_strided_slice %35 {offsets = [0, 0, 8], sizes = [4, 8, 8], strides = [1, 1, 1]} : vector<4x8x32xf32> to vector<4x8x8xf32>
    %42 = vector.extract_strided_slice %36 {offsets = [0, 0, 8], sizes = [4, 8, 8], strides = [1, 1, 1]} : vector<4x8x32xf32> to vector<4x8x8xf32>
    %cst_18 = arith.constant dense<0.000000e+00> : vector<4x8x8xf32>
    %43 = tpu.matmul %41, %42, %cst_18 {dimension_numbers = #tpu.dot_dimension_numbers<[2], [2], [1], [1], [0, 0, 0, 1, 1, 1], [0], [0]>} : vector<4x8x8xf32>, vector<4x8x8xf32>, vector<4x8x8xf32> -> vector<4x8x8xf32>
    %44 = vector.extract_strided_slice %35 {offsets = [0, 0, 16], sizes = [4, 8, 8], strides = [1, 1, 1]} : vector<4x8x32xf32> to vector<4x8x8xf32>
    %45 = vector.extract_strided_slice %36 {offsets = [0, 0, 16], sizes = [4, 8, 8], strides = [1, 1, 1]} : vector<4x8x32xf32> to vector<4x8x8xf32>
    %cst_19 = arith.constant dense<0.000000e+00> : vector<4x8x8xf32>
    %46 = tpu.matmul %44, %45, %cst_19 {dimension_numbers = #tpu.dot_dimension_numbers<[2], [2], [1], [1], [0, 0, 0, 1, 1, 1], [0], [0]>} : vector<4x8x8xf32>, vector<4x8x8xf32>, vector<4x8x8xf32> -> vector<4x8x8xf32>
    %47 = vector.extract_strided_slice %35 {offsets = [0, 0, 24], sizes = [4, 8, 8], strides = [1, 1, 1]} : vector<4x8x32xf32> to vector<4x8x8xf32>
    %48 = vector.extract_strided_slice %36 {offsets = [0, 0, 24], sizes = [4, 8, 8], strides = [1, 1, 1]} : vector<4x8x32xf32> to vector<4x8x8xf32>
    %cst_20 = arith.constant dense<0.000000e+00> : vector<4x8x8xf32>
    %49 = tpu.matmul %47, %48, %cst_20 {dimension_numbers = #tpu.dot_dimension_numbers<[2], [2], [1], [1], [0, 0, 0, 1, 1, 1], [0], [0]>} : vector<4x8x8xf32>, vector<4x8x8xf32>, vector<4x8x8xf32> -> vector<4x8x8xf32>
    %50 = tpu.concatenate %40, %43, %46, %49 in 1 : vector<4x8x8xf32>, vector<4x8x8xf32>, vector<4x8x8xf32>, vector<4x8x8xf32> -> vector<4x32x8xf32>
    %cst_21 = arith.constant dense<0xFF800000> : vector<4x32xf32>
    %51 = vector.multi_reduction <maximumf>, %50, %cst_21 [2] : vector<4x32x8xf32> to vector<4x32xf32>
    %52 = vector.shape_cast %51 : vector<4x32xf32> to vector<4x32x1xf32>
    %53 = vector.broadcast %52 : vector<4x32x1xf32> to vector<4x32x8xf32>
    %54 = arith.subf %50, %53 : vector<4x32x8xf32>
    %55 = math.exp %54 : vector<4x32x8xf32>
    %cst_22 = arith.constant dense<0.000000e+00> : vector<4x32xf32>
    %56 = vector.multi_reduction <add>, %55, %cst_22 [2] : vector<4x32x8xf32> to vector<4x32xf32>
    %57 = vector.shape_cast %56 : vector<4x32xf32> to vector<4x32x1xf32>
    %58 = tpu.reciprocal %57 {approx = true} : vector<4x32x1xf32> -> vector<4x32x1xf32>
    %59 = vector.broadcast %58 : vector<4x32x1xf32> to vector<4x32x8xf32>
    %60 = arith.mulf %55, %59 : vector<4x32x8xf32>
    %61 = vector.extract_strided_slice %60 {offsets = [0, 0, 0], sizes = [4, 8, 8], strides = [1, 1, 1]} : vector<4x32x8xf32> to vector<4x8x8xf32>
    %62 = vector.extract_strided_slice %37 {offsets = [0, 0, 0], sizes = [4, 8, 8], strides = [1, 1, 1]} : vector<4x8x32xf32> to vector<4x8x8xf32>
    %cst_23 = arith.constant dense<0.000000e+00> : vector<4x8x8xf32>
    %63 = tpu.matmul %61, %62, %cst_23 {dimension_numbers = #tpu.dot_dimension_numbers<[2], [1], [1], [2], [0, 0, 0, 1, 1, 2], [0], [0]>} : vector<4x8x8xf32>, vector<4x8x8xf32>, vector<4x8x8xf32> -> vector<4x8x8xf32>
    %c0_24 = arith.constant 0 : index
    %c0_25 = arith.constant 0 : index
    %c0_26 = arith.constant 0 : index
    %64 = vector.load %arg7[%c0_24, %c0_25, %c0_26] : memref<4x8x32xf32, #tpu.memory_space<vmem>>, vector<4x8x8xf32>
    tpu.vector_store %arg7[%c0_24, %c0_25, %c0_26], %63 {strides = array<i32>} : memref<4x8x32xf32, #tpu.memory_space<vmem>>, vector<4x8x8xf32>,
    %65 = vector.extract_strided_slice %60 {offsets = [0, 8, 0], sizes = [4, 8, 8], strides = [1, 1, 1]} : vector<4x32x8xf32> to vector<4x8x8xf32>
    %66 = vector.extract_strided_slice %37 {offsets = [0, 0, 8], sizes = [4, 8, 8], strides = [1, 1, 1]} : vector<4x8x32xf32> to vector<4x8x8xf32>
    %cst_27 = arith.constant dense<0.000000e+00> : vector<4x8x8xf32>
    %67 = tpu.matmul %65, %66, %cst_27 {dimension_numbers = #tpu.dot_dimension_numbers<[2], [1], [1], [2], [0, 0, 0, 1, 1, 2], [0], [0]>} : vector<4x8x8xf32>, vector<4x8x8xf32>, vector<4x8x8xf32> -> vector<4x8x8xf32>
    %c0_28 = arith.constant 0 : index
    %c0_29 = arith.constant 0 : index
    %c8 = arith.constant 8 : index
    %68 = vector.load %arg7[%c0_28, %c0_29, %c8] : memref<4x8x32xf32, #tpu.memory_space<vmem>>, vector<4x8x8xf32>
    tpu.vector_store %arg7[%c0_28, %c0_29, %c8], %67 {strides = array<i32>} : memref<4x8x32xf32, #tpu.memory_space<vmem>>, vector<4x8x8xf32>,
    %69 = vector.extract_strided_slice %60 {offsets = [0, 16, 0], sizes = [4, 8, 8], strides = [1, 1, 1]} : vector<4x32x8xf32> to vector<4x8x8xf32>
    %70 = vector.extract_strided_slice %37 {offsets = [0, 0, 16], sizes = [4, 8, 8], strides = [1, 1, 1]} : vector<4x8x32xf32> to vector<4x8x8xf32>
    %cst_30 = arith.constant dense<0.000000e+00> : vector<4x8x8xf32>
    %71 = tpu.matmul %69, %70, %cst_30 {dimension_numbers = #tpu.dot_dimension_numbers<[2], [1], [1], [2], [0, 0, 0, 1, 1, 2], [0], [0]>} : vector<4x8x8xf32>, vector<4x8x8xf32>, vector<4x8x8xf32> -> vector<4x8x8xf32>
    %c0_31 = arith.constant 0 : index
    %c0_32 = arith.constant 0 : index
    %c16 = arith.constant 16 : index
    %72 = vector.load %arg7[%c0_31, %c0_32, %c16] : memref<4x8x32xf32, #tpu.memory_space<vmem>>, vector<4x8x8xf32>
    tpu.vector_store %arg7[%c0_31, %c0_32, %c16], %71 {strides = array<i32>} : memref<4x8x32xf32, #tpu.memory_space<vmem>>, vector<4x8x8xf32>,
    %73 = vector.extract_strided_slice %60 {offsets = [0, 24, 0], sizes = [4, 8, 8], strides = [1, 1, 1]} : vector<4x32x8xf32> to vector<4x8x8xf32>
    %74 = vector.extract_strided_slice %37 {offsets = [0, 0, 24], sizes = [4, 8, 8], strides = [1, 1, 1]} : vector<4x8x32xf32> to vector<4x8x8xf32>
    %cst_33 = arith.constant dense<0.000000e+00> : vector<4x8x8xf32>
    %75 = tpu.matmul %73, %74, %cst_33 {dimension_numbers = #tpu.dot_dimension_numbers<[2], [1], [1], [2], [0, 0, 0, 1, 1, 2], [0], [0]>} : vector<4x8x8xf32>, vector<4x8x8xf32>, vector<4x8x8xf32> -> vector<4x8x8xf32>
    %c0_34 = arith.constant 0 : index
    %c0_35 = arith.constant 0 : index
    %c24 = arith.constant 24 : index
    %76 = vector.load %arg7[%c0_34, %c0_35, %c24] : memref<4x8x32xf32, #tpu.memory_space<vmem>>, vector<4x8x8xf32>
    tpu.vector_store %arg7[%c0_34, %c0_35, %c24], %75 {strides = array<i32>} : memref<4x8x32xf32, #tpu.memory_space<vmem>>, vector<4x8x8xf32>,
    %c0_36 = arith.constant 0 : index
    %c0_37 = arith.constant 0 : index
    %c0_38 = arith.constant 0 : index
    %77 = vector.load %arg7[%c0_36, %c0_37, %c0_38] : memref<4x8x32xf32, #tpu.memory_space<vmem>>, vector<4x8x32xf32>
    %78 = vector.shape_cast %77 : vector<4x8x32xf32> to vector<32x32xf32>
    %cst_39 = arith.constant dense<0.000000e+00> : vector<32x32xf32>
    %79 = tpu.matmul %78, %31, %cst_39 {dimension_numbers = #tpu.dot_dimension_numbers<[1], [0], [0], [1], [0, 0, 1, 1], [], []>} : vector<32x32xf32>, vector<32x32xf32>, vector<32x32xf32> -> vector<32x32xf32>
    %80 = arith.addf %79, %34 : vector<32x32xf32>
    %81 = arith.addf %0, %80 : vector<32x32xf32>
    %c3 = arith.constant 3 : index
    %c0_40 = arith.constant 0 : index
    %c0_41 = arith.constant 0 : index
    %82 = vector.load %arg5[%c3, %c0_40, %c0_41] : memref<10x32x128xf32, #tpu.memory_space<vmem>>, vector<1x32x128xf32>
    %83 = vector.shape_cast %82 : vector<1x32x128xf32> to vector<32x128xf32>
    %84 = vector.extract_strided_slice %83 {offsets = [0, 0], sizes = [32, 32], strides = [1, 1]} : vector<32x128xf32> to vector<32x32xf32>
    %c4 = arith.constant 4 : index
    %c0_42 = arith.constant 0 : index
    %c0_43 = arith.constant 0 : index
    %85 = vector.load %arg5[%c4, %c0_42, %c0_43] : memref<10x32x128xf32, #tpu.memory_space<vmem>>, vector<1x32x128xf32>
    %86 = vector.shape_cast %85 : vector<1x32x128xf32> to vector<32x128xf32>
    %87 = vector.extract_strided_slice %86 {offsets = [0, 0], sizes = [32, 32], strides = [1, 1]} : vector<32x128xf32> to vector<32x32xf32>
    %cst_44 = arith.constant dense<0.000000e+00> : vector<32xf32>
    %88 = vector.multi_reduction <add>, %81, %cst_44 [1] : vector<32x32xf32> to vector<32xf32>
    %89 = vector.shape_cast %88 : vector<32xf32> to vector<32x1xf32>
    %cst_45 = arith.constant 3.200000e+01 : f32
    %90 = vector.broadcast %cst_45 : f32 to vector<32x1xf32>
    %91 = arith.divf %89, %90 : vector<32x1xf32>
    %92 = vector.broadcast %91 : vector<32x1xf32> to vector<32x32xf32>
    %93 = arith.subf %81, %92 : vector<32x32xf32>
    %94 = arith.mulf %93, %93 : vector<32x32xf32>
    %cst_46 = arith.constant dense<0.000000e+00> : vector<32xf32>
    %95 = vector.multi_reduction <add>, %94, %cst_46 [1] : vector<32x32xf32> to vector<32xf32>
    %96 = vector.shape_cast %95 : vector<32xf32> to vector<32x1xf32>
    %cst_47 = arith.constant 3.200000e+01 : f32
    %97 = vector.broadcast %cst_47 : f32 to vector<32x1xf32>
    %98 = arith.divf %96, %97 : vector<32x1xf32>
    %cst_48 = arith.constant 9.99999974E-6 : f32
    %99 = vector.broadcast %cst_48 : f32 to vector<32x1xf32>
    %100 = arith.addf %98, %99 : vector<32x1xf32>
    %101 = math.rsqrt %100 : vector<32x1xf32>
    %102 = vector.broadcast %101 : vector<32x1xf32> to vector<32x32xf32>
    %103 = arith.mulf %93, %102 : vector<32x32xf32>
    %104 = arith.mulf %103, %84 : vector<32x32xf32>
    %105 = arith.addf %104, %87 : vector<32x32xf32>
    %c0_49 = arith.constant 0 : index
    %c256 = arith.constant 256 : index
    %106 = vector.load %arg3[%c0_49, %c256] : memref<32x768xf32, #tpu.memory_space<vmem>>, vector<32x32xf32>
    %cst_50 = arith.constant dense<0.000000e+00> : vector<32x32xf32>
    %107 = tpu.matmul %105, %106, %cst_50 {dimension_numbers = #tpu.dot_dimension_numbers<[1], [0], [0], [1], [0, 0, 1, 1], [], []>} : vector<32x32xf32>, vector<32x32xf32>, vector<32x32xf32> -> vector<32x32xf32>
    %c0_51 = arith.constant 0 : index
    %c384 = arith.constant 384 : index
    %108 = vector.load %arg3[%c0_51, %c384] : memref<32x768xf32, #tpu.memory_space<vmem>>, vector<32x64xf32>
    %cst_52 = arith.constant dense<0.000000e+00> : vector<64x64xf32>
    %109 = tpu.matmul %1, %108, %cst_52 {dimension_numbers = #tpu.dot_dimension_numbers<[1], [0], [0], [1], [0, 0, 1, 1], [], []>} : vector<64x32xf32>, vector<32x64xf32>, vector<64x64xf32> -> vector<64x64xf32>
    %110 = vector.extract_strided_slice %109 {offsets = [0, 0], sizes = [64, 32], strides = [1, 1]} : vector<64x64xf32> to vector<64x32xf32>
    %111 = vector.extract_strided_slice %109 {offsets = [0, 32], sizes = [64, 32], strides = [1, 1]} : vector<64x64xf32> to vector<64x32xf32>
    %c0_53 = arith.constant 0 : index
    %c512 = arith.constant 512 : index
    %112 = vector.load %arg3[%c0_53, %c512] : memref<32x768xf32, #tpu.memory_space<vmem>>, vector<32x32xf32>
    %c8_54 = arith.constant 8 : index
    %c0_55 = arith.constant 0 : index
    %c0_56 = arith.constant 0 : index
    %113 = vector.load %arg5[%c8_54, %c0_55, %c0_56] : memref<10x32x128xf32, #tpu.memory_space<vmem>>, vector<1x32x128xf32>
    %114 = vector.shape_cast %113 : vector<1x32x128xf32> to vector<32x128xf32>
    %115 = vector.extract_strided_slice %114 {offsets = [0, 0], sizes = [32, 32], strides = [1, 1]} : vector<32x128xf32> to vector<32x32xf32>
    %116 = vector.shape_cast %107 : vector<32x32xf32> to vector<4x8x32xf32>
    %117 = vector.shape_cast %110 : vector<64x32xf32> to vector<4x16x32xf32>
    %118 = vector.shape_cast %111 : vector<64x32xf32> to vector<4x16x32xf32>
    %119 = vector.extract_strided_slice %116 {offsets = [0, 0, 0], sizes = [4, 8, 8], strides = [1, 1, 1]} : vector<4x8x32xf32> to vector<4x8x8xf32>
    %120 = vector.extract_strided_slice %117 {offsets = [0, 0, 0], sizes = [4, 16, 8], strides = [1, 1, 1]} : vector<4x16x32xf32> to vector<4x16x8xf32>
    %cst_57 = arith.constant dense<0.000000e+00> : vector<4x8x16xf32>
    %121 = tpu.matmul %119, %120, %cst_57 {dimension_numbers = #tpu.dot_dimension_numbers<[2], [2], [1], [1], [0, 0, 0, 1, 1, 1], [0], [0]>} : vector<4x8x8xf32>, vector<4x16x8xf32>, vector<4x8x16xf32> -> vector<4x8x16xf32>
    %122 = vector.extract_strided_slice %116 {offsets = [0, 0, 8], sizes = [4, 8, 8], strides = [1, 1, 1]} : vector<4x8x32xf32> to vector<4x8x8xf32>
    %123 = vector.extract_strided_slice %117 {offsets = [0, 0, 8], sizes = [4, 16, 8], strides = [1, 1, 1]} : vector<4x16x32xf32> to vector<4x16x8xf32>
    %cst_58 = arith.constant dense<0.000000e+00> : vector<4x8x16xf32>
    %124 = tpu.matmul %122, %123, %cst_58 {dimension_numbers = #tpu.dot_dimension_numbers<[2], [2], [1], [1], [0, 0, 0, 1, 1, 1], [0], [0]>} : vector<4x8x8xf32>, vector<4x16x8xf32>, vector<4x8x16xf32> -> vector<4x8x16xf32>
    %125 = vector.extract_strided_slice %116 {offsets = [0, 0, 16], sizes = [4, 8, 8], strides = [1, 1, 1]} : vector<4x8x32xf32> to vector<4x8x8xf32>
    %126 = vector.extract_strided_slice %117 {offsets = [0, 0, 16], sizes = [4, 16, 8], strides = [1, 1, 1]} : vector<4x16x32xf32> to vector<4x16x8xf32>
    %cst_59 = arith.constant dense<0.000000e+00> : vector<4x8x16xf32>
    %127 = tpu.matmul %125, %126, %cst_59 {dimension_numbers = #tpu.dot_dimension_numbers<[2], [2], [1], [1], [0, 0, 0, 1, 1, 1], [0], [0]>} : vector<4x8x8xf32>, vector<4x16x8xf32>, vector<4x8x16xf32> -> vector<4x8x16xf32>
    %128 = vector.extract_strided_slice %116 {offsets = [0, 0, 24], sizes = [4, 8, 8], strides = [1, 1, 1]} : vector<4x8x32xf32> to vector<4x8x8xf32>
    %129 = vector.extract_strided_slice %117 {offsets = [0, 0, 24], sizes = [4, 16, 8], strides = [1, 1, 1]} : vector<4x16x32xf32> to vector<4x16x8xf32>
    %cst_60 = arith.constant dense<0.000000e+00> : vector<4x8x16xf32>
    %130 = tpu.matmul %128, %129, %cst_60 {dimension_numbers = #tpu.dot_dimension_numbers<[2], [2], [1], [1], [0, 0, 0, 1, 1, 1], [0], [0]>} : vector<4x8x8xf32>, vector<4x16x8xf32>, vector<4x8x16xf32> -> vector<4x8x16xf32>
    %131 = tpu.concatenate %121, %124, %127, %130 in 1 : vector<4x8x16xf32>, vector<4x8x16xf32>, vector<4x8x16xf32>, vector<4x8x16xf32> -> vector<4x32x16xf32>
    %cst_61 = arith.constant dense<0xFF800000> : vector<4x32xf32>
    %132 = vector.multi_reduction <maximumf>, %131, %cst_61 [2] : vector<4x32x16xf32> to vector<4x32xf32>
    %133 = vector.shape_cast %132 : vector<4x32xf32> to vector<4x32x1xf32>
    %134 = vector.broadcast %133 : vector<4x32x1xf32> to vector<4x32x16xf32>
    %135 = arith.subf %131, %134 : vector<4x32x16xf32>
    %136 = math.exp %135 : vector<4x32x16xf32>
    %cst_62 = arith.constant dense<0.000000e+00> : vector<4x32xf32>
    %137 = vector.multi_reduction <add>, %136, %cst_62 [2] : vector<4x32x16xf32> to vector<4x32xf32>
    %138 = vector.shape_cast %137 : vector<4x32xf32> to vector<4x32x1xf32>
    %139 = tpu.reciprocal %138 {approx = true} : vector<4x32x1xf32> -> vector<4x32x1xf32>
    %140 = vector.broadcast %139 : vector<4x32x1xf32> to vector<4x32x16xf32>
    %141 = arith.mulf %136, %140 : vector<4x32x16xf32>
    %142 = vector.extract_strided_slice %141 {offsets = [0, 0, 0], sizes = [4, 8, 16], strides = [1, 1, 1]} : vector<4x32x16xf32> to vector<4x8x16xf32>
    %143 = vector.extract_strided_slice %118 {offsets = [0, 0, 0], sizes = [4, 16, 8], strides = [1, 1, 1]} : vector<4x16x32xf32> to vector<4x16x8xf32>
    %cst_63 = arith.constant dense<0.000000e+00> : vector<4x8x8xf32>
    %144 = tpu.matmul %142, %143, %cst_63 {dimension_numbers = #tpu.dot_dimension_numbers<[2], [1], [1], [2], [0, 0, 0, 1, 1, 2], [0], [0]>} : vector<4x8x16xf32>, vector<4x16x8xf32>, vector<4x8x8xf32> -> vector<4x8x8xf32>
    %c0_64 = arith.constant 0 : index
    %c0_65 = arith.constant 0 : index
    %c0_66 = arith.constant 0 : index
    %145 = vector.load %arg7[%c0_64, %c0_65, %c0_66] : memref<4x8x32xf32, #tpu.memory_space<vmem>>, vector<4x8x8xf32>
    tpu.vector_store %arg7[%c0_64, %c0_65, %c0_66], %144 {strides = array<i32>} : memref<4x8x32xf32, #tpu.memory_space<vmem>>, vector<4x8x8xf32>,
    %146 = vector.extract_strided_slice %141 {offsets = [0, 8, 0], sizes = [4, 8, 16], strides = [1, 1, 1]} : vector<4x32x16xf32> to vector<4x8x16xf32>
    %147 = vector.extract_strided_slice %118 {offsets = [0, 0, 8], sizes = [4, 16, 8], strides = [1, 1, 1]} : vector<4x16x32xf32> to vector<4x16x8xf32>
    %cst_67 = arith.constant dense<0.000000e+00> : vector<4x8x8xf32>
    %148 = tpu.matmul %146, %147, %cst_67 {dimension_numbers = #tpu.dot_dimension_numbers<[2], [1], [1], [2], [0, 0, 0, 1, 1, 2], [0], [0]>} : vector<4x8x16xf32>, vector<4x16x8xf32>, vector<4x8x8xf32> -> vector<4x8x8xf32>
    %c0_68 = arith.constant 0 : index
    %c0_69 = arith.constant 0 : index
    %c8_70 = arith.constant 8 : index
    %149 = vector.load %arg7[%c0_68, %c0_69, %c8_70] : memref<4x8x32xf32, #tpu.memory_space<vmem>>, vector<4x8x8xf32>
    tpu.vector_store %arg7[%c0_68, %c0_69, %c8_70], %148 {strides = array<i32>} : memref<4x8x32xf32, #tpu.memory_space<vmem>>, vector<4x8x8xf32>,
    %150 = vector.extract_strided_slice %141 {offsets = [0, 16, 0], sizes = [4, 8, 16], strides = [1, 1, 1]} : vector<4x32x16xf32> to vector<4x8x16xf32>
    %151 = vector.extract_strided_slice %118 {offsets = [0, 0, 16], sizes = [4, 16, 8], strides = [1, 1, 1]} : vector<4x16x32xf32> to vector<4x16x8xf32>
    %cst_71 = arith.constant dense<0.000000e+00> : vector<4x8x8xf32>
    %152 = tpu.matmul %150, %151, %cst_71 {dimension_numbers = #tpu.dot_dimension_numbers<[2], [1], [1], [2], [0, 0, 0, 1, 1, 2], [0], [0]>} : vector<4x8x16xf32>, vector<4x16x8xf32>, vector<4x8x8xf32> -> vector<4x8x8xf32>
    %c0_72 = arith.constant 0 : index
    %c0_73 = arith.constant 0 : index
    %c16_74 = arith.constant 16 : index
    %153 = vector.load %arg7[%c0_72, %c0_73, %c16_74] : memref<4x8x32xf32, #tpu.memory_space<vmem>>, vector<4x8x8xf32>
    tpu.vector_store %arg7[%c0_72, %c0_73, %c16_74], %152 {strides = array<i32>} : memref<4x8x32xf32, #tpu.memory_space<vmem>>, vector<4x8x8xf32>,
    %154 = vector.extract_strided_slice %141 {offsets = [0, 24, 0], sizes = [4, 8, 16], strides = [1, 1, 1]} : vector<4x32x16xf32> to vector<4x8x16xf32>
    %155 = vector.extract_strided_slice %118 {offsets = [0, 0, 24], sizes = [4, 16, 8], strides = [1, 1, 1]} : vector<4x16x32xf32> to vector<4x16x8xf32>
    %cst_75 = arith.constant dense<0.000000e+00> : vector<4x8x8xf32>
    %156 = tpu.matmul %154, %155, %cst_75 {dimension_numbers = #tpu.dot_dimension_numbers<[2], [1], [1], [2], [0, 0, 0, 1, 1, 2], [0], [0]>} : vector<4x8x16xf32>, vector<4x16x8xf32>, vector<4x8x8xf32> -> vector<4x8x8xf32>
    %c0_76 = arith.constant 0 : index
    %c0_77 = arith.constant 0 : index
    %c24_78 = arith.constant 24 : index
    %157 = vector.load %arg7[%c0_76, %c0_77, %c24_78] : memref<4x8x32xf32, #tpu.memory_space<vmem>>, vector<4x8x8xf32>
    tpu.vector_store %arg7[%c0_76, %c0_77, %c24_78], %156 {strides = array<i32>} : memref<4x8x32xf32, #tpu.memory_space<vmem>>, vector<4x8x8xf32>,
    %c0_79 = arith.constant 0 : index
    %c0_80 = arith.constant 0 : index
    %c0_81 = arith.constant 0 : index
    %158 = vector.load %arg7[%c0_79, %c0_80, %c0_81] : memref<4x8x32xf32, #tpu.memory_space<vmem>>, vector<4x8x32xf32>
    %159 = vector.shape_cast %158 : vector<4x8x32xf32> to vector<32x32xf32>
    %cst_82 = arith.constant dense<0.000000e+00> : vector<32x32xf32>
    %160 = tpu.matmul %159, %112, %cst_82 {dimension_numbers = #tpu.dot_dimension_numbers<[1], [0], [0], [1], [0, 0, 1, 1], [], []>} : vector<32x32xf32>, vector<32x32xf32>, vector<32x32xf32> -> vector<32x32xf32>
    %161 = arith.addf %160, %115 : vector<32x32xf32>
    %162 = arith.addf %81, %161 : vector<32x32xf32>
    %c5 = arith.constant 5 : index
    %c0_83 = arith.constant 0 : index
    %c0_84 = arith.constant 0 : index
    %163 = vector.load %arg5[%c5, %c0_83, %c0_84] : memref<10x32x128xf32, #tpu.memory_space<vmem>>, vector<1x32x128xf32>
    %164 = vector.shape_cast %163 : vector<1x32x128xf32> to vector<32x128xf32>
    %165 = vector.extract_strided_slice %164 {offsets = [0, 0], sizes = [32, 32], strides = [1, 1]} : vector<32x128xf32> to vector<32x32xf32>
    %c6 = arith.constant 6 : index
    %c0_85 = arith.constant 0 : index
    %c0_86 = arith.constant 0 : index
    %166 = vector.load %arg5[%c6, %c0_85, %c0_86] : memref<10x32x128xf32, #tpu.memory_space<vmem>>, vector<1x32x128xf32>
    %167 = vector.shape_cast %166 : vector<1x32x128xf32> to vector<32x128xf32>
    %168 = vector.extract_strided_slice %167 {offsets = [0, 0], sizes = [32, 32], strides = [1, 1]} : vector<32x128xf32> to vector<32x32xf32>
    %cst_87 = arith.constant dense<0.000000e+00> : vector<32xf32>
    %169 = vector.multi_reduction <add>, %162, %cst_87 [1] : vector<32x32xf32> to vector<32xf32>
    %170 = vector.shape_cast %169 : vector<32xf32> to vector<32x1xf32>
    %cst_88 = arith.constant 3.200000e+01 : f32
    %171 = vector.broadcast %cst_88 : f32 to vector<32x1xf32>
    %172 = arith.divf %170, %171 : vector<32x1xf32>
    %173 = vector.broadcast %172 : vector<32x1xf32> to vector<32x32xf32>
    %174 = arith.subf %162, %173 : vector<32x32xf32>
    %175 = arith.mulf %174, %174 : vector<32x32xf32>
    %cst_89 = arith.constant dense<0.000000e+00> : vector<32xf32>
    %176 = vector.multi_reduction <add>, %175, %cst_89 [1] : vector<32x32xf32> to vector<32xf32>
    %177 = vector.shape_cast %176 : vector<32xf32> to vector<32x1xf32>
    %cst_90 = arith.constant 3.200000e+01 : f32
    %178 = vector.broadcast %cst_90 : f32 to vector<32x1xf32>
    %179 = arith.divf %177, %178 : vector<32x1xf32>
    %cst_91 = arith.constant 9.99999974E-6 : f32
    %180 = vector.broadcast %cst_91 : f32 to vector<32x1xf32>
    %181 = arith.addf %179, %180 : vector<32x1xf32>
    %182 = math.rsqrt %181 : vector<32x1xf32>
    %183 = vector.broadcast %182 : vector<32x1xf32> to vector<32x32xf32>
    %184 = arith.mulf %174, %183 : vector<32x32xf32>
    %185 = arith.mulf %184, %165 : vector<32x32xf32>
    %186 = arith.addf %185, %168 : vector<32x32xf32>
    %c0_92 = arith.constant 0 : index
    %c640 = arith.constant 640 : index
    %187 = vector.load %arg3[%c0_92, %c640] : memref<32x768xf32, #tpu.memory_space<vmem>>, vector<32x128xf32>
    %cst_93 = arith.constant dense<0.000000e+00> : vector<32x128xf32>
    %188 = tpu.matmul %186, %187, %cst_93 {dimension_numbers = #tpu.dot_dimension_numbers<[1], [0], [0], [1], [0, 0, 1, 1], [], []>} : vector<32x32xf32>, vector<32x128xf32>, vector<32x128xf32> -> vector<32x128xf32>
    %c0_94 = arith.constant 0 : index
    %c0_95 = arith.constant 0 : index
    %c0_96 = arith.constant 0 : index
    %189 = vector.load %arg5[%c0_94, %c0_95, %c0_96] : memref<10x32x128xf32, #tpu.memory_space<vmem>>, vector<1x32x128xf32>
    %190 = vector.shape_cast %189 : vector<1x32x128xf32> to vector<32x128xf32>
    %191 = arith.addf %188, %190 : vector<32x128xf32>
    %cst_97 = arith.constant 5.000000e-01 : f32
    %192 = vector.broadcast %cst_97 : f32 to vector<32x128xf32>
    %193 = arith.mulf %192, %191 : vector<32x128xf32>
    %cst_98 = arith.constant 4.471500e-02 : f32
    %194 = vector.broadcast %cst_98 : f32 to vector<32x128xf32>
    %195 = arith.mulf %194, %191 : vector<32x128xf32>
    %196 = arith.mulf %195, %191 : vector<32x128xf32>
    %197 = arith.mulf %196, %191 : vector<32x128xf32>
    %198 = arith.addf %191, %197 : vector<32x128xf32>
    %cst_99 = arith.constant 0.797884583 : f32
    %199 = vector.broadcast %cst_99 : f32 to vector<32x128xf32>
    %200 = arith.mulf %199, %198 : vector<32x128xf32>
    %201 = math.tanh %200 : vector<32x128xf32>
    %cst_100 = arith.constant 1.000000e+00 : f32
    %202 = vector.broadcast %cst_100 : f32 to vector<32x128xf32>
    %203 = arith.addf %202, %201 : vector<32x128xf32>
    %204 = arith.mulf %193, %203 : vector<32x128xf32>
    %c0_101 = arith.constant 0 : index
    %c0_102 = arith.constant 0 : index
    %205 = vector.load %arg4[%c0_101, %c0_102] : memref<128x32xf32, #tpu.memory_space<vmem>>, vector<128x32xf32>
    %cst_103 = arith.constant dense<0.000000e+00> : vector<32x32xf32>
    %206 = tpu.matmul %204, %205, %cst_103 {dimension_numbers = #tpu.dot_dimension_numbers<[1], [0], [0], [1], [0, 0, 1, 1], [], []>} : vector<32x128xf32>, vector<128x32xf32>, vector<32x32xf32> -> vector<32x32xf32>
    %207 = arith.addf %162, %206 : vector<32x32xf32>
    %c9 = arith.constant 9 : index
    %c0_104 = arith.constant 0 : index
    %c0_105 = arith.constant 0 : index
    %208 = vector.load %arg5[%c9, %c0_104, %c0_105] : memref<10x32x128xf32, #tpu.memory_space<vmem>>, vector<1x32x128xf32>
    %209 = vector.shape_cast %208 : vector<1x32x128xf32> to vector<32x128xf32>
    %210 = vector.extract_strided_slice %209 {offsets = [0, 0], sizes = [32, 32], strides = [1, 1]} : vector<32x128xf32> to vector<32x32xf32>
    %211 = arith.addf %207, %210 : vector<32x32xf32>
    %c0_106 = arith.constant 0 : index
    %c0_107 = arith.constant 0 : index
    %212 = vector.load %arg6[%c0_106, %c0_107] : memref<32x32xf32, #tpu.memory_space<vmem>>, vector<32x32xf32>
    tpu.vector_store %arg6[%c0_106, %c0_107], %211 {strides = array<i32>} : memref<32x32xf32, #tpu.memory_space<vmem>>, vector<32x32xf32>,
    return
  }
  func.func @transform_0(%arg0: i32) -> (i32, i32) {
    %c0_i32 = arith.constant 0 : i32
    %c0_i32_0 = arith.constant 0 : i32
    return %arg0, %c0_i32 : i32, i32
  }
  func.func @transform_1(%arg0: i32) -> (i32, i32) {
    %c0_i32 = arith.constant 0 : i32
    %c0_i32_0 = arith.constant 0 : i32
    return %arg0, %c0_i32 : i32, i32
  }
  func.func @transform_2(%arg0: i32) -> (i32, i32) {
    %c0_i32 = arith.constant 0 : i32
    %c0_i32_0 = arith.constant 0 : i32
    %c0_i32_1 = arith.constant 0 : i32
    return %c0_i32, %c0_i32_0 : i32, i32
  }
  func.func @transform_3(%arg0: i32) -> (i32, i32) {
    %c0_i32 = arith.constant 0 : i32
    %c0_i32_0 = arith.constant 0 : i32
    %c0_i32_1 = arith.constant 0 : i32
    return %c0_i32, %c0_i32_0 : i32, i32
  }
  func.func @transform_4(%arg0: i32) -> (i32, i32, i32) {
    %c0_i32 = arith.constant 0 : i32
    %c0_i32_0 = arith.constant 0 : i32
    %c0_i32_1 = arith.constant 0 : i32
    %c0_i32_2 = arith.constant 0 : i32
    return %c0_i32, %c0_i32_0, %c0_i32_1 : i32, i32, i32
  }
  func.func @transform_5(%arg0: i32) -> (i32, i32) {
    %c0_i32 = arith.constant 0 : i32
    %c0_i32_0 = arith.constant 0 : i32
    return %arg0, %c0_i32 : i32, i32
  }
}

</mosaic_0001>

<bundles_post_ra>
// kernel: tpu_custom_call.1
= control target key start
LH: loop header
LB: loop body
LE: loop exit
PB: predicated region body
PF: predicated region fallthrough
CT: control target
= control target key end

     0   :  { %10 = vsyncpa [#allocation4], 0  ;;  %s8123_s18 = smov 0   ;;  %s9504_s0 = inlined_call_operand.vmem [shape: f32[64,32], index: 0, kind: input, shape index: {}]   ;;  %s9505_s1 = inlined_call_operand.vmem [shape: f32[128,32], index: 1, kind: input, shape index: {}]   ;;  %s9506_s2 = inlined_call_operand.hbm [shape: f32[32,768], index: 2, kind: input, shape index: {}]   ;;  %s9507_s3 = inlined_call_operand.vmem [shape: f32[128,32], index: 3, kind: input, shape index: {}]   ;;  %s9508_s4 = inlined_call_operand.vmem [shape: f32[10,32,128], index: 4, kind: input, shape index: {}]   ;;  %s9509_s5 = inlined_call_operand.vmem [shape: f32[64,32], index: 5, kind: output, shape index: {}]  }
   0x1 LB: > { %s8129_s19 = sadd.s32 4294967295, %s8072_s18   ;;  %p6902_p0 = scmp.ge.s32.totalorder %s8072_s18, 1  ;;  %s8072_s18 = sphi %s8123_s18, %s16_s18  }
   0x2   : > { %p162_p1 = scmp.lt.s32.totalorder %s8072_s18, 3  ;;  %s8074_s20 = smov [#allocation3]  }
   0x3   : > { %s174_s21 = sshll.u32 %s8074_s20, 4  ;;  %p7843_p3 = scmp.eq.s32.totalorder %s8129_s19, 0  ;;  %s175_s21 = int_to_ptr.vmem [resolvable:$true] %s174_s21 }
   0x4   : > { %p8133_p2 = pnand %p6902_p0, %p162_p1  ;;  %s8047_s23 = scalar_lea.vmem %s175_s21, 3072 }
   0x5   : > { %p8048_p7 = scmp.ne.s32.totalorder %s175_s21, %s8047_s23  ;;  %p8055_p10 = scmp.lt.s32.totalorder %s175_s21, %s175_s21 }
   0x6   : > { %p7839_p4 = pneg %p8133_p2  ;;  %p8056_p11 = scmp.lt.s32.totalorder %s8047_s23, %s8047_s23 }
   0x8   : > { %p7840_p5 = pnand %p7843_p3, %p7839_p4  ;;  %p8057_p12 = por %p8056_p11, %p8055_p10 }
   0xa   : > { %p8038_p6 = pneg %p7840_p5 }
   0xc   : > { %p8050_p8 = pnand %p8048_p7, %p8038_p6 }
   0xe   : > { %p8051_p9 = pneg %p8050_p8 }
  0x10   : > { %p8058_p13 = pnand %p8057_p12, %p8051_p9 }
  0x12   : > { %8061 = shalt.err (!%p8058_p13)
}
  0x13   : > { %s8075_s24 = smov 768   ;;  %s8076_s25 = smov 48  }
  0x14   : > { %7842 = dma.hbm_to_vmem [thread:$0]  (!%p7840_p5), %s9506_s2, 3072, %s175_s21, [#allocation4], %s8075_s24, %s8075_s24, %s8076_s25  }
  0x15   : > { %214 = sbr.rel (%p8133_p2) target bundleno = 4261 (0x10a5), region = 40 }
  0x1a   : > { %8067 = dma.done.wait (%p7843_p3), [#allocation4], 3072  }
  0x1b   : > { %8069 = vsyncadd (%p7843_p3), [#allocation4], 4294964224  ;;  %s6907_s28 = sshll.u32 %s8129_s19, 2  ;;  %vm287_vm0 = vcmask 261120   ;;  %v352_v28 = vld [vmem:[#allocation3 + $0x90] sm:$0xff]  ;;  %v351_v29 = vld [vmem:[#allocation3 + $0x60] sm:$0xff] }
  0x1c   : > { %p248_p0 = scmp.lt.s32.totalorder %s6907_s28, 7  ;;  %7323 = vmatprep.subr.mxu0 %v352_v28  ;;  %v350_v30 = vld [vmem:[#allocation3 + $0x30] sm:$0xff]  ;;  %v349_v31 = vld [vmem:[#allocation3] sm:$0xff]  ;;  %v6914_v50 = vld [vmem:[%s9508_s4 + $0x28] sm:$0xff]  ;;  %vm8078_vm1 = vmmov 0   ;;  %s8079_s26 = smov 96  }
  0x1d   : > { %7324 = vmatpush3.msra.mxu0 %v352_v28  ;;  %v6913_v45 = vld [vmem:[%s9508_s4 + $0x20] sm:$0xff]  ;;  %v6915_v54 = vld [vmem:[%s9508_s4 + $0x30] sm:$0xff]  ;;  %v6918_v55 = vld [vmem:[%s9508_s4 + $0x48] sm:$0xff]  ;;  %s8080_s27 = smov 88   ;;  %s8081_s30 = smov 120   ;;  %vm462_vm2 = vcmask 64512  }
  0x1e   : > { %s9512_s28 = smov (!%p248_p0, %s6907_s28), 7  ;;  %7325 = vmatprep.subr.mxu0 %v351_v29  ;;  %v6917_v47 = vld [vmem:[%s9508_s4 + $0x40] sm:$0xff]  ;;  %v6919_v58 = vld [vmem:[%s9508_s4 + $0x50] sm:$0xff]  ;;  %v6916_v61 = vld [vmem:[%s9508_s4 + $0x38] sm:$0xff]  ;;  %s8082_s6 = smov 80   ;;  %vm2508_vm3 = vcmask 130112  }
  0x1f   : > { %s6908_s29 = sshll.u32 %s9512_s28, 3  ;;  %7326 = vmatpush3.msra.mxu0 %v351_v29  ;;  %s8083_s8 = smov 112   ;;  %vm2833_vm4 = vcmask 195712   ;;  %vm3158_vm5 = vcmask 261312   ;;  %vm4881_vm6 = vcmask 130048  }
  0x20   : > { %s8160_s7 = scalar_lea.vmem %s9504_s0, %s6908_s29  ;;  %7327 = vmatprep.subr.mxu0 %v350_v30  ;;  %s8084_s9 = smov 72  }
  0x21   : > { %v265_v0 = vld [vmem:[%s8160_s7] sm:$0xff]  ;;  %v267_v1 = vld [vmem:[%s8160_s7 + $0x10] sm:$0xff]  ;;  %v266_v2 = vld [vmem:[%s8160_s7 + $0x8] sm:$0xff]  ;;  %7328 = vmatpush3.msra.mxu0 %v350_v30  ;;  %s8085_s10 = smov 104   ;;  %s8086_s11 = smov 64  }
  0x22   : > { %v288_v3 = vsel %vm287_vm0, %v265_v0, 0.0  ;;  %v294_v4 = vsel %vm287_vm0, %v267_v1, 0.0  ;;  %v268_v5 = vld [vmem:[%s8160_s7 + $0x18] sm:$0xff]  ;;  %v291_v6 = vsel %vm287_vm0, %v266_v2, 0.0  ;;  %7329 = vmatprep.subr.mxu0 %v349_v31  ;;  %s8087_s12 = smov 56   ;;  %s8088_s13 = smov 48  }
  0x23   : > { %289 = vadd.xlane.f32.xlu0 %v288_v3  ;;  %295 = vadd.xlane.f32.xlu1 %v294_v4  ;;  %v297_v7 = vsel %vm287_vm0, %v268_v5, 0.0  ;;  %v8077_v4 = vmov 0.0   ;;  %s8089_s14 = smov 40   ;;  %s8090_s15 = smov 8  }
  0x24   : > { %7330 = vmatpush3.msra.mxu0 %v349_v31  ;;  %7337 = vmatprep.subr.mxu1 %v8077_v4  ;;  %s8091_s16 = smov 16   ;;  %s8092_s17 = smov 24  }
  0x25   : > { %7352 = vmatprep.subr.mxu0 %v8077_v4  ;;  %7339 = vmatprep.mubr.msk.f32.mxu1 %vm8078_vm1, %v8077_v4 }
  0x27   : > { %292 = vadd.xlane.f32.xlu0 %v291_v6  ;;  %298 = vadd.xlane.f32.xlu1 %v297_v7 }
  0xac   : > { %v290_v8 = vpop.xlane.xlu0 %289  ;;  %v296_v9 = vpop.xlane.xlu1 %295 }
  0xad   : > { %v301_v10 = vmul.f32 0.03125, %v290_v8  ;;  %v303_v11 = vmul.f32 0.03125, %v296_v9 }
  0xaf   : > { %v305_v12 = vsub.f32 %v265_v0, %v301_v10  ;;  %v307_v13 = vsub.f32 %v267_v1, %v303_v11  ;;  %v6920_v1 = vld [vmem:[%s9508_s4 + $0x58] sm:$0xff] }
  0xb0   : > { %v293_v14 = vpop.xlane.xlu0 %292  ;;  %v299_v15 = vpop.xlane.xlu1 %298 }
  0xb1   : > { %v302_v16 = vmul.f32 0.03125, %v293_v14  ;;  %v304_v17 = vmul.f32 0.03125, %v299_v15  ;;  %v309_v18 = vmul.f32 %v305_v12, %v305_v12  ;;  %v311_v19 = vmul.f32 %v307_v13, %v307_v13 }
  0xb3   : > { %v306_v20 = vsub.f32 %v266_v2, %v302_v16  ;;  %v308_v21 = vsub.f32 %v268_v5, %v304_v17  ;;  %v313_v22 = vsel %vm287_vm0, %v309_v18, 0.0  ;;  %v319_v23 = vsel %vm287_vm0, %v311_v19, 0.0 }
  0xb4   : > { %314 = vadd.xlane.f32.xlu0 %v313_v22 }
  0xb5   : > { %v310_v24 = vmul.f32 %v306_v20, %v306_v20  ;;  %v312_v25 = vmul.f32 %v308_v21, %v308_v21 }
  0xb7   : > { %v316_v26 = vsel %vm287_vm0, %v310_v24, 0.0  ;;  %v322_v27 = vsel %vm287_vm0, %v312_v25, 0.0 }
  0xb8   : > { %320 = vadd.xlane.f32.xlu0 %v319_v23  ;;  %317 = vadd.xlane.f32.xlu1 %v316_v26 }
  0xbc   : > { %323 = vadd.xlane.f32.xlu1 %v322_v27 }
 0x13d   : > { %v315_v32 = vpop.xlane.xlu0 %314 }
 0x13e   : > { %v325_v33 = vmul.f32 0.03125, %v315_v32 }
 0x140   : > { %v329_v34 = vadd.f32 1e-05, %v325_v33 }
 0x141   : > { %v318_v35 = vpop.xlane.xlu1 %317  ;;  %v321_v36 = vpop.xlane.xlu0 %320 }
 0x142   : > { %7872 = vrsqrt.f32 %v329_v34  ;;  %v326_v37 = vmul.f32 0.03125, %v318_v35  ;;  %v327_v38 = vmul.f32 0.03125, %v321_v36 }
 0x144   : > { %v330_v39 = vadd.f32 1e-05, %v326_v37  ;;  %v331_v40 = vadd.f32 1e-05, %v327_v38 }
 0x145   : > { %v324_v41 = vpop.xlane.xlu1 %323 }
 0x146   : > { %7874 = vrsqrt.f32 %v330_v39  ;;  %v328_v42 = vmul.f32 0.03125, %v324_v41 }
 0x147   : > { %7876 = vrsqrt.f32 %v331_v40 }
 0x148   : > { %v332_v43 = vadd.f32 1e-05, %v328_v42 }
 0x14a   : > { %7878 = vrsqrt.f32 %v332_v43 }
 0x14f   : > { %v7873_v44 = vpop.eup %7872 }
 0x150   : > { %v337_v46 = vmul.f32 %v7873_v44, %v305_v12 }
 0x152   : > { %v341_v48 = vmul.f32 %v6913_v45, %v337_v46 }
 0x153   : > { %v7875_v49 = vpop.eup %7874 }
 0x154   : > { %v7877_v51 = vpop.eup %7876  ;;  %v345_v52 = vadd.f32 %v6917_v47, %v341_v48  ;;  %v338_v53 = vmul.f32 %v7875_v49, %v306_v20 }
 0x155   : > { %v339_v56 = vmul.f32 %v7877_v51, %v307_v13 }
 0x156   : > { %7331 = vmatprep.mubr.msk.f32.mxu0 %vm287_vm0, %v345_v52  ;;  %v342_v57 = vmul.f32 %v6914_v50, %v338_v53 }
 0x157   : > { %v7879_v59 = vpop.eup %7878  ;;  %v343_v60 = vmul.f32 %v6915_v54, %v339_v56 }
 0x158   : > { %v346_v62 = vadd.f32 %v6918_v55, %v342_v57  ;;  %v340_v63 = vmul.f32 %v7879_v59, %v308_v21 }
 0x159   : > { %v347_v0 = vadd.f32 %v6919_v58, %v343_v60 }
 0x15a   : > { %7332 = vmatmul.mubr.msk.f32.vlgmr.msra.gmra.mxu0 %vm287_vm0, %v346_v62  ;;  %v344_v2 = vmul.f32 %v6916_v61, %v340_v63 }
 0x15b   : > { %7334 = vmatprep.mubr.msk.f32.mxu0 %vm287_vm0, %v347_v0 }
 0x15c   : > { %v348_v3 = vadd.f32 %v6920_v1, %v344_v2 }
 0x15e   : > { %7335 = vmatmul.mubr.msk.f32.gmra.mxu0 %vm287_vm0, %v348_v3 }
 0x15f   : > { %7354 = vmatprep.mubr.msk.f32.mxu0 %vm8078_vm1, %v8077_v4 }
 0x21a   : > { %v8208_v5 = vpop.f32.mrf.mxu0 }
 0x21b   : > { %538 = vrot.lane.b32.xlu1 %v8208_v5, %s8079_s26 }
 0x21c   : > { %v8212_v6 = vpop.f32.mrf.mxu0 }
 0x21d   : > { %460 = vrot.lane.b32.xlu0 %v8212_v6, %s8079_s26 }
 0x21e   : > { %v8228_v7 = vpop.f32.mrf.mxu0 }
 0x21f   : > { %848 = vrot.lane.b32.xlu1 %v8208_v5, %s8080_s27 }
 0x220   : > { %v8242_v8 = vpop.f32.mrf.mxu0 }
 0x221   : > { %770 = vrot.lane.b32.xlu0 %v8212_v6, %s8080_s27 }
 0x223   : > { %846 = vrot.lane.b32.xlu1 %v8208_v5, %s8081_s30 }
 0x225   : > { %768 = vrot.lane.b32.xlu0 %v8212_v6, %s8081_s30 }
 0x227   : > { %1160 = vrot.lane.b32.xlu1 %v8208_v5, %s8082_s6 }
 0x229   : > { %1082 = vrot.lane.b32.xlu0 %v8212_v6, %s8082_s6 }
 0x22b   : > { %692 = vrot.lane.b32.xlu1 %v8228_v7, %s8079_s26 }
 0x22d   : > { %1080 = vrot.lane.b32.xlu0 %v8212_v6, %s8083_s8 }
 0x22f   : > { %1004 = vrot.lane.b32.xlu1 %v8228_v7, %s8080_s27 }
 0x231   : > { %1394 = vrot.lane.b32.xlu0 %v8212_v6, %s8084_s9 }
 0x233   : > { %1002 = vrot.lane.b32.xlu1 %v8228_v7, %s8081_s30 }
 0x235   : > { %1392 = vrot.lane.b32.xlu0 %v8212_v6, %s8085_s10 }
 0x237   : > { %615 = vrot.lane.b32.xlu1 %v8242_v8, %s8079_s26 }
 0x239   : > { %926 = vrot.lane.b32.xlu0 %v8242_v8, %s8080_s27 }
 0x23b   : > { %1158 = vrot.lane.b32.xlu1 %v8208_v5, %s8083_s8 }
 0x23d   : > { %924 = vrot.lane.b32.xlu0 %v8242_v8, %s8081_s30 }
 0x23f   : > { %1316 = vrot.lane.b32.xlu1 %v8228_v7, %s8082_s6 }
 0x241   : > { %1238 = vrot.lane.b32.xlu0 %v8242_v8, %s8082_s6 }
 0x243   : > { %1314 = vrot.lane.b32.xlu1 %v8228_v7, %s8083_s8 }
 0x245   : > { %1236 = vrot.lane.b32.xlu0 %v8242_v8, %s8083_s8 }
 0x247   : > { %1472 = vrot.lane.b32.xlu1 %v8208_v5, %s8084_s9 }
 0x249   : > { %1550 = vrot.lane.b32.xlu0 %v8242_v8, %s8084_s9 }
 0x24b   : > { %1470 = vrot.lane.b32.xlu1 %v8208_v5, %s8085_s10 }
 0x24d   : > { %1548 = vrot.lane.b32.xlu0 %v8242_v8, %s8085_s10 }
 0x24f   : > { %1628 = vrot.lane.b32.xlu1 %v8228_v7, %s8084_s9 }
 0x251   : > { %1880 = vrot.lane.b32.xlu0 %v8212_v6, %s8086_s11 }
 0x253   : > { %1626 = vrot.lane.b32.xlu1 %v8228_v7, %s8085_s10 }
 0x28d   : > { %v539_v9 = vpop.permute.xlu1 %538 }
 0x28f   : > { %v461_v10 = vpop.permute.xlu0 %460 }
 0x290   : > { %7338 = vmatpush3.xpose.msk.msra.mxu1 %vm462_vm2, %v461_v10 }
 0x291   : > { %v849_v11 = vpop.permute.xlu1 %848  ;;  %7342 = vmatprep.subr.mxu1 %v8077_v4 }
 0x293   : > { %7340 = vmatmul.mubr.msk.f32.vlgmr.msra.gmra.mxu1 %vm462_vm2, %v8212_v6  ;;  %v771_v12 = vpop.permute.xlu0 %770 }
 0x294   : > { %7343 = vmatpush3.xpose.msk.msra.mxu1 %vm462_vm2, %v539_v9  ;;  %7344 = vmatprep.mubr.msk.f32.mxu1 %vm8078_vm1, %v8077_v4 }
 0x295   : > { %v847_v13 = vpop.permute.xlu1 %846  ;;  %7347 = vmatprep.subr.mxu1 %v8077_v4 }
 0x297   : > { %7345 = vmatmul.mubr.msk.f32.vlgmr.msra.gmra.mxu1 %vm462_vm2, %v8208_v5  ;;  %v769_v14 = vpop.permute.xlu0 %768 }
 0x298   : > { %7349 = vmatprep.mubr.msk.f32.mxu1 %vm8078_vm1, %v8077_v4 }
 0x299   : > { %v1161_v15 = vpop.permute.xlu1 %1160 }
 0x29b   : > { %v1083_v16 = vpop.permute.xlu0 %1082 }
 0x29d   : > { %v693_v17 = vpop.permute.xlu1 %692 }
 0x29e   : > { %7353 = vmatpush3.xpose.msk.msra.mxu0 %vm462_vm2, %v693_v17 }
 0x29f   : > { %v1081_v18 = vpop.permute.xlu0 %1080  ;;  %7362 = vmatprep.subr.mxu0 %v8077_v4 }
 0x2a1   : > { %7355 = vmatmul.mubr.msk.f32.vlgmr.msra.gmra.mxu0 %vm462_vm2, %v8228_v7  ;;  %v1005_v19 = vpop.permute.xlu1 %1004 }
 0x2a2   : > { %7363 = vmatpush3.xpose.msk.msra.mxu0 %vm462_vm2, %v849_v11  ;;  %7364 = vmatprep.mubr.msk.f32.mxu0 %vm8078_vm1, %v8077_v4 }
 0x2a3   : > { %v1395_v20 = vpop.permute.xlu0 %1394  ;;  %7372 = vmatprep.subr.mxu0 %v8077_v4 }
 0x2a5   : > { %7365 = vmatmul.mubr.msk.f32.vlgmr.msra.gmra.mxu0 %vm462_vm2, %v847_v13  ;;  %v1003_v21 = vpop.permute.xlu1 %1002 }
 0x2a6   : > { %7373 = vmatpush3.xpose.msk.msra.mxu0 %vm462_vm2, %v1005_v19  ;;  %7374 = vmatprep.mubr.msk.f32.mxu0 %vm8078_vm1, %v8077_v4 }
 0x2a7   : > { %v1393_v22 = vpop.permute.xlu0 %1392  ;;  %7382 = vmatprep.subr.mxu0 %v8077_v4 }
 0x2a9   : > { %7375 = vmatmul.mubr.msk.f32.vlgmr.msra.gmra.mxu0 %vm462_vm2, %v1003_v21  ;;  %v616_v23 = vpop.permute.xlu1 %615 }
 0x2aa   : > { %7348 = vmatpush3.xpose.msk.msra.mxu1 %vm462_vm2, %v616_v23  ;;  %7383 = vmatpush3.xpose.msk.msra.mxu0 %vm462_vm2, %v1161_v15 }
 0x2ab   : > { %v927_v24 = vpop.permute.xlu0 %926  ;;  %7384 = vmatprep.mubr.msk.f32.mxu0 %vm8078_vm1, %v8077_v4  ;;  %7357 = vmatprep.subr.mxu1 %v8077_v4 }
 0x2ac   : > { %7392 = vmatprep.subr.mxu0 %v8077_v4 }
 0x2ad   : > { %v1159_v25 = vpop.permute.xlu1 %1158  ;;  %7350 = vmatmul.mubr.msk.f32.vlgmr.msra.gmra.mxu1 %vm462_vm2, %v8242_v8 }
 0x2ae   : > { %7358 = vmatpush3.xpose.msk.msra.mxu1 %vm462_vm2, %v771_v12  ;;  %7385 = vmatmul.mubr.msk.f32.vlgmr.msra.gmra.mxu0 %vm462_vm2, %v1159_v25 }
 0x2af   : > { %v925_v26 = vpop.permute.xlu0 %924  ;;  %7359 = vmatprep.mubr.msk.f32.mxu1 %vm8078_vm1, %v8077_v4  ;;  %7367 = vmatprep.subr.mxu1 %v8077_v4 }
 0x2b0   : > { %7394 = vmatprep.mubr.msk.f32.mxu0 %vm8078_vm1, %v8077_v4 }
 0x2b1   : > { %v1317_v27 = vpop.permute.xlu1 %1316  ;;  %7360 = vmatmul.mubr.msk.f32.vlgmr.msra.gmra.mxu1 %vm462_vm2, %v769_v14 }
 0x2b2   : > { %7368 = vmatpush3.xpose.msk.msra.mxu1 %vm462_vm2, %v927_v24  ;;  %7393 = vmatpush3.xpose.msk.msra.mxu0 %vm462_vm2, %v1317_v27 }
 0x2b3   : > { %v1239_v28 = vpop.permute.xlu0 %1238  ;;  %7369 = vmatprep.mubr.msk.f32.mxu1 %vm8078_vm1, %v8077_v4  ;;  %7377 = vmatprep.subr.mxu1 %v8077_v4 }
 0x2b4   : > { %7402 = vmatprep.subr.mxu0 %v8077_v4 }
 0x2b5   : > { %v1315_v29 = vpop.permute.xlu1 %1314  ;;  %7370 = vmatmul.mubr.msk.f32.vlgmr.msra.gmra.mxu1 %vm462_vm2, %v925_v26 }
 0x2b6   : > { %7378 = vmatpush3.xpose.msk.msra.mxu1 %vm462_vm2, %v1083_v16  ;;  %7395 = vmatmul.mubr.msk.f32.vlgmr.msra.gmra.mxu0 %vm462_vm2, %v1315_v29 }
 0x2b7   : > { %v1237_v30 = vpop.permute.xlu0 %1236  ;;  %7379 = vmatprep.mubr.msk.f32.mxu1 %vm8078_vm1, %v8077_v4  ;;  %7387 = vmatprep.subr.mxu1 %v8077_v4 }
 0x2b8   : > { %7404 = vmatprep.mubr.msk.f32.mxu0 %vm8078_vm1, %v8077_v4 }
 0x2b9   : > { %v1473_v31 = vpop.permute.xlu1 %1472  ;;  %7380 = vmatmul.mubr.msk.f32.vlgmr.msra.gmra.mxu1 %vm462_vm2, %v1081_v18 }
 0x2ba   : > { %7388 = vmatpush3.xpose.msk.msra.mxu1 %vm462_vm2, %v1239_v28  ;;  %7403 = vmatpush3.xpose.msk.msra.mxu0 %vm462_vm2, %v1473_v31 }
 0x2bb   : > { %v1551_v32 = vpop.permute.xlu0 %1550  ;;  %7389 = vmatprep.mubr.msk.f32.mxu1 %vm8078_vm1, %v8077_v4  ;;  %7397 = vmatprep.subr.mxu1 %v8077_v4 }
 0x2bc   : > { %7412 = vmatprep.subr.mxu0 %v8077_v4 }
 0x2bd   : > { %v1471_v33 = vpop.permute.xlu1 %1470  ;;  %7390 = vmatmul.mubr.msk.f32.vlgmr.msra.gmra.mxu1 %vm462_vm2, %v1237_v30 }
 0x2be   : > { %7398 = vmatpush3.xpose.msk.msra.mxu1 %vm462_vm2, %v1395_v20  ;;  %7405 = vmatmul.mubr.msk.f32.vlgmr.msra.gmra.mxu0 %vm462_vm2, %v1471_v33 }
 0x2bf   : > { %v1549_v34 = vpop.permute.xlu0 %1548  ;;  %7399 = vmatprep.mubr.msk.f32.mxu1 %vm8078_vm1, %v8077_v4  ;;  %7407 = vmatprep.subr.mxu1 %v8077_v4 }
 0x2c0   : > { %7414 = vmatprep.mubr.msk.f32.mxu0 %vm8078_vm1, %v8077_v4 }
 0x2c1   : > { %v1629_v35 = vpop.permute.xlu1 %1628  ;;  %7400 = vmatmul.mubr.msk.f32.vlgmr.msra.gmra.mxu1 %vm462_vm2, %v1393_v22 }
 0x2c2   : > { %7408 = vmatpush3.xpose.msk.msra.mxu1 %vm462_vm2, %v1551_v32  ;;  %7413 = vmatpush3.xpose.msk.msra.mxu0 %vm462_vm2, %v1629_v35 }
 0x2c3   : > { %7409 = vmatprep.mubr.msk.f32.mxu1 %vm8078_vm1, %v8077_v4  ;;  %7417 = vmatprep.subr.mxu1 %v8077_v4  ;;  %v1881_v36 = vpop.permute.xlu0 %1880 }
 0x2c4   : > { %7422 = vmatprep.subr.mxu0 %v8077_v4 }
 0x2c5   : > { %v1627_v37 = vpop.permute.xlu1 %1626  ;;  %7410 = vmatmul.mubr.msk.f32.vlgmr.msra.gmra.mxu1 %vm462_vm2, %v1549_v34 }
 0x2c6   : > { %7415 = vmatmul.mubr.msk.f32.vlgmr.msra.gmra.mxu0 %vm462_vm2, %v1627_v37  ;;  %7418 = vmatpush3.msra.mxu1 %v1881_v36 }
 0x2c7   : > { %7424 = vmatprep.mubr.msk.f32.mxu0 %vm8078_vm1, %v8077_v4  ;;  %7419 = vmatprep.mubr.msk.f32.mxu1 %vm8078_vm1, %v8077_v4 }
 0x2c8   : > { %7427 = vmatprep.subr.mxu1 %v8077_v4 }
 0x353   : > { %v8359_v38 = vpop.f32.mrf.mxu1 }
 0x354   : > { %v1704_v39 = vsel %vm462_vm2, %v8359_v38, -inf }
 0x355   : > { %1705 = vmax.xlane.f32.xlu0 %v1704_v39  ;;  %v7341_v40 = vpop.f32.mrf.mxu1 }
 0x357   : > { %v8363_v41 = vpop.f32.mrf.mxu1 }
 0x358   : > { %v1716_v42 = vsel %vm462_vm2, %v8363_v41, -inf }
 0x359   : > { %1717 = vmax.xlane.f32.xlu1 %v1716_v42  ;;  %v7346_v43 = vpop.f32.mrf.mxu1 }
 0x361   : > { %v8367_v44 = vpop.f32.mrf.mxu0 }
 0x362   : > { %v1740_v45 = vsel %vm462_vm2, %v8367_v44, -inf }
 0x363   : > { %v7356_v46 = vpop.f32.mrf.mxu0  ;;  %1741 = vmax.xlane.f32.xlu0 %v1740_v45 }
 0x365   : > { %v8371_v47 = vpop.f32.mrf.mxu0 }
 0x366   : > { %v1719_v48 = vsel %vm462_vm2, %v8371_v47, -inf }
 0x367   : > { %v7366_v49 = vpop.f32.mrf.mxu0  ;;  %1720 = vmax.xlane.f32.xlu1 %v1719_v48 }
 0x369   : > { %v8375_v50 = vpop.f32.mrf.mxu0 }
 0x36a   : > { %v1743_v51 = vsel %vm462_vm2, %v8375_v50, -inf }
 0x36b   : > { %v7376_v52 = vpop.f32.mrf.mxu0  ;;  %1744 = vmax.xlane.f32.xlu1 %v1743_v51 }
 0x36d   : > { %v8379_v53 = vpop.f32.mrf.mxu1 }
 0x36e   : > { %v8381_v54 = vpop.f32.mrf.mxu0  ;;  %v1728_v55 = vsel %vm462_vm2, %v8379_v53, -inf }
 0x36f   : > { %1729 = vmax.xlane.f32.xlu0 %v1728_v55  ;;  %v7351_v56 = vpop.f32.mrf.mxu1  ;;  %v1722_v57 = vsel %vm462_vm2, %v8381_v54, -inf }
 0x370   : > { %v7386_v58 = vpop.f32.mrf.mxu0  ;;  %1723 = vmax.xlane.f32.xlu1 %v1722_v57 }
 0x371   : > { %v8387_v59 = vpop.f32.mrf.mxu1 }
 0x372   : > { %v1707_v60 = vsel %vm462_vm2, %v8387_v59, -inf }
 0x373   : > { %1708 = vmax.xlane.f32.xlu0 %v1707_v60  ;;  %v7361_v61 = vpop.f32.mrf.mxu1 }
 0x375   : > { %v8391_v62 = vpop.f32.mrf.mxu1 }
 0x376   : > { %v8393_v63 = vpop.f32.mrf.mxu0  ;;  %v1731_v0 = vsel %vm462_vm2, %v8391_v62, -inf }
 0x377   : > { %1732 = vmax.xlane.f32.xlu0 %v1731_v0  ;;  %v7371_v1 = vpop.f32.mrf.mxu1  ;;  %v1746_v2 = vsel %vm462_vm2, %v8393_v63, -inf }
 0x378   : > { %v7396_v3 = vpop.f32.mrf.mxu0  ;;  %1747 = vmax.xlane.f32.xlu1 %v1746_v2 }
 0x379   : > { %v8399_v9 = vpop.f32.mrf.mxu1 }
 0x37a   : > { %v1710_v10 = vsel %vm462_vm2, %v8399_v9, -inf }
 0x37b   : > { %1711 = vmax.xlane.f32.xlu0 %v1710_v10  ;;  %v7381_v11 = vpop.f32.mrf.mxu1 }
 0x37d   : > { %v8403_v12 = vpop.f32.mrf.mxu1 }
 0x37e   : > { %v8405_v13 = vpop.f32.mrf.mxu0  ;;  %v1734_v14 = vsel %vm462_vm2, %v8403_v12, -inf }
 0x37f   : > { %1735 = vmax.xlane.f32.xlu0 %v1734_v14  ;;  %v7391_v15 = vpop.f32.mrf.mxu1  ;;  %v1725_v16 = vsel %vm462_vm2, %v8405_v13, -inf }
 0x380   : > { %v7406_v17 = vpop.f32.mrf.mxu0  ;;  %1726 = vmax.xlane.f32.xlu1 %v1725_v16 }
 0x381   : > { %v8411_v18 = vpop.f32.mrf.mxu1 }
 0x382   : > { %v1713_v25 = vsel %vm462_vm2, %v8411_v18, -inf }
 0x383   : > { %v7401_v19 = vpop.f32.mrf.mxu1 }
 0x385   : > { %v8413_v20 = vpop.f32.mrf.mxu1 }
 0x386   : > { %v8415_v21 = vpop.f32.mrf.mxu0  ;;  %v1737_v26 = vsel %vm462_vm2, %v8413_v20, -inf }
 0x387   : > { %v7411_v22 = vpop.f32.mrf.mxu1  ;;  %v1749_v23 = vsel %vm462_vm2, %v8415_v21, -inf }
 0x388   : > { %v7416_v24 = vpop.f32.mrf.mxu0  ;;  %1750 = vmax.xlane.f32.xlu1 %v1749_v23 }
 0x395   : > { %2032 = vrot.lane.b32.xlu0 %v8242_v8, %s8086_s11 }
 0x399   : > { %1956 = vrot.lane.b32.xlu1 %v8208_v5, %s8086_s11  ;;  %2108 = vrot.lane.b32.xlu0 %v8228_v7, %s8086_s11 }
 0x39d   : > { %2188 = vrot.lane.b32.xlu0 %v8212_v6, %s8087_s12 }
 0x3a1   : > { %2264 = vrot.lane.b32.xlu0 %v8208_v5, %s8087_s12 }
 0x3a5   : > { %2340 = vrot.lane.b32.xlu0 %v8242_v8, %s8087_s12 }
 0x3a9   : > { %2416 = vrot.lane.b32.xlu0 %v8228_v7, %s8087_s12 }
 0x3ad   : > { %2513 = vrot.lane.b32.xlu0 %v8212_v6, %s8088_s13 }
 0x3b1   : > { %2589 = vrot.lane.b32.xlu0 %v8208_v5, %s8088_s13 }
 0x3d0   : > { %1714 = vmax.xlane.f32.xlu0 %v1713_v25 }
 0x3d4   : > { %1738 = vmax.xlane.f32.xlu0 %v1737_v26 }
 0x3de   : > { %v1706_v27 = vpop.xlane.xlu0 %1705 }
 0x3df   : > { %v1752_v34 = vsub.f32 %v8359_v38, %v1706_v27 }
 0x3e1   : > { %v1768_v39 = vmul.f32 1.442695, %v1752_v34 }
 0x3e2   : > { %v1718_v28 = vpop.xlane.xlu1 %1717 }
 0x3e3   : > { %v1756_v29 = vsub.f32 %v8363_v41, %v1718_v28 }
 0x3e5   : > { %v1776_v32 = vmul.f32 1.442695, %v1756_v29 }
 0x3ea   : > { %2665 = vrot.lane.b32.xlu0 %v8242_v8, %s8088_s13 }
 0x3ec   : > { %v1742_v30 = vpop.xlane.xlu0 %1741 }
 0x3ed   : > { %v1764_v31 = vsub.f32 %v8367_v44, %v1742_v30 }
 0x3ef   : > { %v1792_v33 = vmul.f32 1.442695, %v1764_v31 }
 0x3f0   : > { %v1721_v35 = vpop.xlane.xlu1 %1720 }
 0x3f1   : > { %7880 = vpow2.f32 %v1792_v33  ;;  %v1757_v36 = vsub.f32 %v8371_v47, %v1721_v35 }
 0x3f2   : > { %7882 = vpow2.f32 %v1776_v32 }
 0x3f3   : > { %v1778_v37 = vmul.f32 1.442695, %v1757_v36 }
 0x3f4   : > { %v1745_v40 = vpop.xlane.xlu1 %1744 }
 0x3f5   : > { %v1765_v42 = vsub.f32 %v8375_v50, %v1745_v40  ;;  %7884 = vpow2.f32 %v1778_v37 }
 0x3f6   : > { %7886 = vpow2.f32 %v1768_v39 }
 0x3f7   : > { %v1794_v43 = vmul.f32 1.442695, %v1765_v42 }
 0x3f8   : > { %v1730_v41 = vpop.xlane.xlu0 %1729 }
 0x3f9   : > { %v1760_v44 = vsub.f32 %v8379_v53, %v1730_v41  ;;  %v1724_v45 = vpop.xlane.xlu1 %1723  ;;  %7888 = vpow2.f32 %v1794_v43 }
 0x3fa   : > { %v1758_v46 = vsub.f32 %v8381_v54, %v1724_v45 }
 0x3fb   : > { %v1784_v38 = vmul.f32 1.442695, %v1760_v44 }
 0x3fc   : > { %v1780_v48 = vmul.f32 1.442695, %v1758_v46  ;;  %v1709_v49 = vpop.xlane.xlu0 %1708 }
 0x3fd   : > { %7890 = vpow2.f32 %v1784_v38  ;;  %v1753_v47 = vsub.f32 %v8387_v59, %v1709_v49 }
 0x3fe   : > { %v8447_v51 = vpop.eup %7880  ;;  %7892 = vpow2.f32 %v1780_v48 }
 0x3ff   : > { %v1770_v50 = vmul.f32 1.442695, %v1753_v47  ;;  %v1836_v52 = vsel %vm462_vm2, %v8447_v51, 0.0  ;;  %v8451_v55 = vpop.eup %7882 }
 0x400   : > { %1837 = vadd.xlane.f32.xlu1 %v1836_v52  ;;  %v1733_v53 = vpop.xlane.xlu0 %1732  ;;  %v1812_v59 = vsel %vm462_vm2, %v8451_v55, 0.0 }
 0x401   : > { %7894 = vpow2.f32 %v1770_v50  ;;  %v1761_v54 = vsub.f32 %v8391_v62, %v1733_v53  ;;  %v1748_v56 = vpop.xlane.xlu1 %1747 }
 0x402   : > { %v1766_v57 = vsub.f32 %v8393_v63, %v1748_v56  ;;  %v8457_v60 = vpop.eup %7884 }
 0x403   : > { %v1786_v58 = vmul.f32 1.442695, %v1761_v54  ;;  %v8459_v1 = vpop.eup %7886  ;;  %v1815_v62 = vsel %vm462_vm2, %v8457_v60, 0.0 }
 0x404   : > { %v1796_v61 = vmul.f32 1.442695, %v1766_v57  ;;  %1813 = vadd.xlane.f32.xlu1 %v1812_v59  ;;  %v1712_v0 = vpop.xlane.xlu0 %1711  ;;  %v1800_v11 = vsel %vm462_vm2, %v8459_v1, 0.0 }
 0x405   : > { %7896 = vpow2.f32 %v1786_v58  ;;  %v1754_v2 = vsub.f32 %v8399_v9, %v1712_v0 }
 0x406   : > { %7898 = vpow2.f32 %v1796_v61  ;;  %v8464_v63 = vpop.eup %7888 }
 0x407   : > { %v1772_v3 = vmul.f32 1.442695, %v1754_v2  ;;  %v1839_v19 = vsel %vm462_vm2, %v8464_v63, 0.0 }
 0x408   : > { %1816 = vadd.xlane.f32.xlu1 %v1815_v62  ;;  %v1736_v10 = vpop.xlane.xlu0 %1735 }
 0x409   : > { %7900 = vpow2.f32 %v1772_v3  ;;  %v1762_v14 = vsub.f32 %v8403_v12, %v1736_v10  ;;  %v1727_v15 = vpop.xlane.xlu1 %1726  ;;  %1801 = vadd.xlane.f32.xlu0 %v1800_v11 }
 0x40a   : > { %v8469_v16 = vpop.eup %7890  ;;  %v1759_v9 = vsub.f32 %v8405_v13, %v1727_v15 }
 0x40b   : > { %v1788_v17 = vmul.f32 1.442695, %v1762_v14  ;;  %v1824_v22 = vsel %vm462_vm2, %v8469_v16, 0.0  ;;  %v8476_v23 = vpop.eup %7892 }
 0x40c   : > { %v1782_v24 = vmul.f32 1.442695, %v1759_v9  ;;  %1840 = vadd.xlane.f32.xlu1 %v1839_v19  ;;  %v1818_v25 = vsel %vm462_vm2, %v8476_v23, 0.0  ;;  %v8510_v43 = vpop.permute.xlu0 %2032 }
 0x40d   : > { %7902 = vpow2.f32 %v1788_v17  ;;  %1825 = vadd.xlane.f32.xlu0 %v1824_v22 }
 0x40e   : > { %v8478_v12 = vpop.eup %7894  ;;  %7904 = vpow2.f32 %v1782_v24 }
 0x40f   : > { %v1803_v13 = vsel %vm462_vm2, %v8478_v12, 0.0 }
 0x410   : > { %1819 = vadd.xlane.f32.xlu1 %v1818_v25  ;;  %v2109_v41 = vpop.permute.xlu0 %2108 }
 0x411   : > { %v1751_v26 = vpop.xlane.xlu1 %1750  ;;  %1804 = vadd.xlane.f32.xlu0 %v1803_v13 }
 0x412   : > { %v8484_v27 = vpop.eup %7896  ;;  %v1767_v28 = vsub.f32 %v8415_v21, %v1751_v26 }
 0x413   : > { %v8487_v29 = vpop.eup %7898  ;;  %v1827_v30 = vsel %vm462_vm2, %v8484_v27, 0.0 }
 0x414   : > { %v1798_v31 = vmul.f32 1.442695, %v1767_v28  ;;  %v1842_v32 = vsel %vm462_vm2, %v8487_v29, 0.0  ;;  %v8512_v44 = vpop.permute.xlu0 %2188 }
 0x415   : > { %v1957_v33 = vpop.permute.xlu1 %1956  ;;  %1843 = vadd.xlane.f32.xlu1 %v1842_v32  ;;  %1828 = vadd.xlane.f32.xlu0 %v1827_v30 }
 0x416   : > { %v8493_v34 = vpop.eup %7900  ;;  %7906 = vpow2.f32 %v1798_v31  ;;  %7423 = vmatpush3.msra.mxu0 %v1957_v33 }
 0x417   : > { %v1806_v35 = vsel %vm462_vm2, %v8493_v34, 0.0  ;;  %7432 = vmatprep.subr.mxu0 %v8077_v4 }
 0x418   : > { %v2265_v45 = vpop.permute.xlu0 %2264 }
 0x419   : > { %1807 = vadd.xlane.f32.xlu0 %v1806_v35 }
 0x41a   : > { %v8498_v21 = vpop.eup %7902 }
 0x41b   : > { %v8500_v36 = vpop.eup %7904  ;;  %v1830_v37 = vsel %vm462_vm2, %v8498_v21, 0.0 }
 0x41c   : > { %v1821_v39 = vsel %vm462_vm2, %v8500_v36, 0.0  ;;  %v8514_v46 = vpop.permute.xlu0 %2340 }
 0x41d   : > { %1822 = vadd.xlane.f32.xlu1 %v1821_v39  ;;  %1831 = vadd.xlane.f32.xlu0 %v1830_v37 }
 0x420   : > { %v8516_v38 = vpop.permute.xlu0 %2416 }
 0x423   : > { %v8506_v40 = vpop.eup %7906 }
 0x424   : > { %v1845_v42 = vsel %vm462_vm2, %v8506_v40, 0.0  ;;  %v8518_v48 = vpop.permute.xlu0 %2513 }
 0x425   : > { %1846 = vadd.xlane.f32.xlu1 %v1845_v42 }
 0x428   : > { %v8520_v49 = vpop.permute.xlu0 %2589 }
 0x459   : > { %v1715_v47 = vpop.xlane.xlu0 %1714 }
 0x45a   : > { %v1755_v50 = vsub.f32 %v8411_v18, %v1715_v47 }
 0x45c   : > { %v1774_v52 = vmul.f32 1.442695, %v1755_v50 }
 0x45d   : > { %v1739_v53 = vpop.xlane.xlu0 %1738 }
 0x45e   : > { %7908 = vpow2.f32 %v1774_v52  ;;  %v1763_v54 = vsub.f32 %v8413_v20, %v1739_v53 }
 0x460   : > { %v1790_v56 = vmul.f32 1.442695, %v1763_v54 }
 0x461   : > { %v8537_v0 = vpop.permute.xlu0 %2665 }
 0x462   : > { %7910 = vpow2.f32 %v1790_v56 }
 0x46b   : > { %v8524_v57 = vpop.eup %7908 }
 0x46c   : > { %v1809_v58 = vsel %vm462_vm2, %v8524_v57, 0.0 }
 0x46d   : > { %1810 = vadd.xlane.f32.xlu0 %v1809_v58 }
 0x46f   : > { %v8528_v59 = vpop.eup %7910 }
 0x470   : > { %v1833_v61 = vsel %vm462_vm2, %v8528_v59, 0.0 }
 0x471   : > { %1834 = vadd.xlane.f32.xlu1 %v1833_v61 }
 0x482   : > { %2741 = vrot.lane.b32.xlu1 %v8228_v7, %s8088_s13 }
 0x483   : > { %2838 = vrot.lane.b32.xlu0 %v8212_v6, %s8089_s14 }
 0x487   : > { %2914 = vrot.lane.b32.xlu0 %v8208_v5, %s8089_s14 }
 0x489   : > { %v1838_v18 = vpop.xlane.xlu1 %1837 }
 0x48b   : > { %2990 = vrot.lane.b32.xlu0 %v8242_v8, %s8089_s14 }
 0x48d   : > { %v1814_v20 = vpop.xlane.xlu1 %1813 }
 0x48e   : > { %7912 = vrcp.f32 %v1814_v20 }
 0x48f   : > { %3066 = vrot.lane.b32.xlu0 %v8228_v7, %s8089_s14  ;;  %7914 = vrcp.f32 %v1838_v18 }
 0x491   : > { %v1817_v2 = vpop.xlane.xlu1 %1816 }
 0x492   : > { %v1802_v3 = vpop.xlane.xlu0 %1801 }
 0x493   : > { %7916 = vrcp.f32 %v1802_v3 }
 0x494   : > { %7918 = vrcp.f32 %v1817_v2 }
 0x495   : > { %v1841_v62 = vpop.xlane.xlu1 %1840 }
 0x496   : > { %v1826_v10 = vpop.xlane.xlu0 %1825 }
 0x497   : > { %7920 = vrcp.f32 %v1826_v10 }
 0x498   : > { %7922 = vrcp.f32 %v1841_v62 }
 0x499   : > { %v1820_v6 = vpop.xlane.xlu1 %1819 }
 0x49a   : > { %v1805_v5 = vpop.xlane.xlu0 %1804 }
 0x49b   : > { %v7913_v11 = vpop.eup %7912  ;;  %7924 = vrcp.f32 %v1805_v5 }
 0x49c   : > { %7926 = vrcp.f32 %v1820_v6  ;;  %v1868_v8 = vmul.f32 %v7913_v11, %v8451_v55  ;;  %v7915_v14 = vpop.eup %7914 }
 0x49d   : > { %v1876_v9 = vmul.f32 %v7915_v14, %v8447_v51 }
 0x49e   : > { %7425 = vmatmul.mubr.msk.f32.vlgmr.msra.gmra.mxu0 %vm462_vm2, %v1868_v8  ;;  %v1829_v7 = vpop.xlane.xlu0 %1828  ;;  %v1844_v32 = vpop.xlane.xlu1 %1843 }
 0x49f   : > { %7433 = vmatpush3.msra.mxu0 %v2109_v41  ;;  %7434 = vmatprep.mubr.msk.f32.mxu0 %vm8078_vm1, %v8077_v4  ;;  %7928 = vrcp.f32 %v1829_v7 }
 0x4a0   : > { %v7917_v15 = vpop.eup %7916  ;;  %7442 = vmatprep.subr.mxu0 %v8077_v4 }
 0x4a1   : > { %v7919_v17 = vpop.eup %7918  ;;  %v1864_v19 = vmul.f32 %v7917_v15, %v8459_v1  ;;  %v453_v15 = vld [vmem:[#allocation3 + $0x98] sm:$0xff] }
 0x4a2   : > { %7435 = vmatmul.mubr.msk.f32.vlgmr.msra.gmra.mxu0 %vm462_vm2, %v1876_v9  ;;  %v1808_v55 = vpop.xlane.xlu0 %1807  ;;  %v1869_v24 = vmul.f32 %v7919_v17, %v8457_v60  ;;  %v452_v9 = vld [vmem:[#allocation3 + $0x68] sm:$0xff]  ;;  %v451_v17 = vld [vmem:[#allocation3 + $0x38] sm:$0xff] }
 0x4a3   : > { %7443 = vmatpush3.msra.mxu0 %v2265_v45  ;;  %7930 = vrcp.f32 %v1808_v55  ;;  %7420 = vmatmul.mubr.msk.f32.vlgmr.msra.gmra.mxu1 %vm462_vm2, %v1864_v19  ;;  %v450_v55 = vld [vmem:[#allocation3 + $0x8] sm:$0xff] }
 0x4a4   : > { %v7921_v22 = vpop.eup %7920  ;;  %7428 = vmatpush3.msra.mxu1 %v8510_v43  ;;  %7444 = vmatprep.mubr.msk.f32.mxu0 %vm8078_vm1, %v8077_v4 }
 0x4a5   : > { %v7923_v25 = vpop.eup %7922  ;;  %7452 = vmatprep.subr.mxu0 %v8077_v4  ;;  %7429 = vmatprep.mubr.msk.f32.mxu1 %vm8078_vm1, %v8077_v4  ;;  %v1872_v51 = vmul.f32 %v7921_v22, %v8469_v16 }
 0x4a6   : > { %7437 = vmatprep.subr.mxu1 %v8077_v4  ;;  %7445 = vmatmul.mubr.msk.f32.vlgmr.msra.gmra.mxu0 %vm462_vm2, %v1869_v24  ;;  %v1832_v1 = vpop.xlane.xlu0 %1831  ;;  %v1877_v60 = vmul.f32 %v7923_v25, %v8464_v63  ;;  %v1823_v33 = vpop.xlane.xlu1 %1822 }
 0x4a7   : > { %7453 = vmatpush3.msra.mxu0 %v8516_v38  ;;  %7430 = vmatmul.mubr.msk.f32.vlgmr.msra.gmra.mxu1 %vm462_vm2, %v1872_v51  ;;  %7932 = vrcp.f32 %v1832_v1 }
 0x4a8   : > { %v7925_v13 = vpop.eup %7924  ;;  %7438 = vmatpush3.msra.mxu1 %v8512_v44  ;;  %7454 = vmatprep.mubr.msk.f32.mxu0 %vm8078_vm1, %v8077_v4  ;;  %7934 = vrcp.f32 %v1844_v32 }
 0x4a9   : > { %v7927_v26 = vpop.eup %7926  ;;  %7462 = vmatprep.subr.mxu0 %v8077_v4  ;;  %7439 = vmatprep.mubr.msk.f32.mxu1 %vm8078_vm1, %v8077_v4  ;;  %v1865_v16 = vmul.f32 %v7925_v13, %v8478_v12  ;;  %7936 = vrcp.f32 %v1823_v33 }
 0x4aa   : > { %7447 = vmatprep.subr.mxu1 %v8077_v4  ;;  %7455 = vmatmul.mubr.msk.f32.vlgmr.msra.gmra.mxu0 %vm462_vm2, %v1877_v60  ;;  %v1870_v63 = vmul.f32 %v7927_v26, %v8476_v23 }
 0x4ab   : > { %7463 = vmatpush3.msra.mxu0 %v8520_v49  ;;  %7440 = vmatmul.mubr.msk.f32.vlgmr.msra.gmra.mxu1 %vm462_vm2, %v1865_v16 }
 0x4ac   : > { %7448 = vmatpush3.msra.mxu1 %v8514_v46  ;;  %7464 = vmatprep.mubr.msk.f32.mxu0 %vm8078_vm1, %v8077_v4  ;;  %v7929_v28 = vpop.eup %7928 }
 0x4ad   : > { %7449 = vmatprep.mubr.msk.f32.mxu1 %vm8078_vm1, %v8077_v4  ;;  %7457 = vmatprep.subr.mxu1 %v8077_v4  ;;  %v1873_v12 = vmul.f32 %v7929_v28, %v8484_v27 }
 0x4ae   : > { %7465 = vmatmul.mubr.msk.f32.vlgmr.msra.gmra.mxu0 %vm462_vm2, %v1870_v63  ;;  %7472 = vmatprep.subr.mxu0 %v8077_v4 }
 0x4af   : > { %7474 = vmatprep.mubr.msk.f32.mxu0 %vm8078_vm1, %v8077_v4  ;;  %7450 = vmatmul.mubr.msk.f32.vlgmr.msra.gmra.mxu1 %vm462_vm2, %v1873_v12 }
 0x4b0   : > { %v7931_v30 = vpop.eup %7930  ;;  %7458 = vmatpush3.msra.mxu1 %v8518_v48  ;;  %7459 = vmatprep.mubr.msk.f32.mxu1 %vm8078_vm1, %v8077_v4 }
 0x4b1   : > { %v1866_v23 = vmul.f32 %v7931_v30, %v8493_v34  ;;  %7467 = vmatprep.subr.mxu1 %v8077_v4  ;;  %v1847_v34 = vpop.xlane.xlu1 %1846 }
 0x4b2   : > { %7938 = vrcp.f32 %v1847_v34 }
 0x4b3   : > { %7460 = vmatmul.mubr.msk.f32.vlgmr.msra.gmra.mxu1 %vm462_vm2, %v1866_v23 }
 0x4b4   : > { %v7933_v27 = vpop.eup %7932  ;;  %7468 = vmatpush3.msra.mxu1 %v8537_v0  ;;  %7469 = vmatprep.mubr.msk.f32.mxu1 %vm8078_vm1, %v8077_v4 }
 0x4b5   : > { %v1874_v31 = vmul.f32 %v7933_v27, %v8498_v21  ;;  %7477 = vmatprep.subr.mxu1 %v8077_v4  ;;  %v7935_v42 = vpop.eup %7934 }
 0x4b6   : > { %v1878_v41 = vmul.f32 %v7935_v42, %v8487_v29  ;;  %v7937_v44 = vpop.eup %7936 }
 0x4b7   : > { %7470 = vmatmul.mubr.msk.f32.vlgmr.msra.gmra.mxu1 %vm462_vm2, %v1874_v31  ;;  %v1871_v46 = vmul.f32 %v7937_v44, %v8500_v36 }
 0x4b8   : > { %7479 = vmatprep.mubr.msk.f32.mxu1 %vm8078_vm1, %v8077_v4 }
 0x4bf   : > { %v7939_v38 = vpop.eup %7938 }
 0x4c0   : > { %v1879_v47 = vmul.f32 %v7939_v38, %v8506_v40 }
 0x4f6   : > { %v1811_v35 = vpop.xlane.xlu0 %1810 }
 0x4f7   : > { %7940 = vrcp.f32 %v1811_v35 }
 0x4fa   : > { %v1835_v37 = vpop.xlane.xlu1 %1834  ;;  %v2839_v39 = vpop.permute.xlu0 %2838 }
 0x4fb   : > { %7942 = vrcp.f32 %v1835_v37  ;;  %7478 = vmatpush3.msra.mxu1 %v2839_v39 }
 0x4fc   : > { %7487 = vmatprep.subr.mxu1 %v8077_v4 }
 0x4fe   : > { %v2742_v21 = vpop.permute.xlu1 %2741  ;;  %v2915_v43 = vpop.permute.xlu0 %2914 }
 0x4ff   : > { %7473 = vmatpush3.msra.mxu0 %v2742_v21 }
 0x500   : > { %7475 = vmatmul.mubr.msk.f32.vlgmr.msra.gmra.mxu0 %vm462_vm2, %v1878_v41  ;;  %7482 = vmatprep.subr.mxu0 %v8077_v4  ;;  %v6926_v41 = vld [vmem:[%s9508_s4 + $0xe8] sm:$0xff] }
 0x501   : > { %7483 = vmatpush3.msra.mxu0 %v2915_v43  ;;  %7484 = vmatprep.mubr.msk.f32.mxu0 %vm8078_vm1, %v8077_v4 }
 0x502   : > { %v2991_v45 = vpop.permute.xlu0 %2990  ;;  %7492 = vmatprep.subr.mxu0 %v8077_v4 }
 0x504   : > { %v7941_v48 = vpop.eup %7940  ;;  %7485 = vmatmul.mubr.msk.f32.vlgmr.msra.gmra.mxu0 %vm462_vm2, %v1871_v46 }
 0x505   : > { %v1867_v29 = vmul.f32 %v7941_v48, %v8524_v57  ;;  %7494 = vmatprep.mubr.msk.f32.mxu0 %vm8078_vm1, %v8077_v4  ;;  %v8032_v48 = vld [vmem:[%s8160_s7 + $0x8] sm:$0xff] }
 0x506   : > { %v3067_v49 = vpop.permute.xlu0 %3066 }
 0x507   : > { %7480 = vmatmul.mubr.msk.f32.vlgmr.msra.gmra.mxu1 %vm462_vm2, %v1867_v29  ;;  %7493 = vmatpush3.msra.mxu0 %v3067_v49 }
 0x508   : > { %v7943_v50 = vpop.eup %7942  ;;  %7488 = vmatpush3.msra.mxu1 %v2991_v45  ;;  %7495 = vmatmul.mubr.msk.f32.vlgmr.msra.gmra.mxu0 %vm462_vm2, %v1879_v47  ;;  %v6925_v45 = vld [vmem:[%s9508_s4 + $0xe0] sm:$0xff]  ;;  %v6928_v47 = vld [vmem:[%s9508_s4 + $0xf8] sm:$0xff] }
 0x509   : > { %7489 = vmatprep.mubr.msk.f32.mxu1 %vm8078_vm1, %v8077_v4  ;;  %v1875_v36 = vmul.f32 %v7943_v50, %v8528_v59  ;;  %7497 = vmatprep.subr.mxu1 %v453_v15 }
 0x50b   : > { %7490 = vmatmul.mubr.msk.f32.vlgmr.msra.gmra.mxu1 %vm462_vm2, %v1875_v36  ;;  %v6927_v36 = vld [vmem:[%s9508_s4 + $0xf0] sm:$0xff] }
 0x50c   : > { %7498 = vmatpush3.msra.mxu1 %v453_v15 }
 0x50d   : > { %7499 = vmatprep.subr.mxu1 %v452_v9 }
 0x50e   : > { %7500 = vmatpush3.msra.mxu1 %v452_v9 }
 0x50f   : > { %7501 = vmatprep.subr.mxu1 %v451_v17 }
 0x510   : > { %7502 = vmatpush3.msra.mxu1 %v451_v17 }
 0x511   : > { %7503 = vmatprep.subr.mxu1 %v450_v55 }
 0x512   : > { %7504 = vmatpush3.msra.mxu1 %v450_v55 }
 0x513   : > { %7559 = vmatprep.subr.mxu1 %v8077_v4 }
 0x55e   : > { %v2028_v52 = vpop.f32.mrf.mxu0 }
 0x55f   : > { %2185 = vst.msk [vmem:[#allocation2 + $0x8] sm:$0xff] %vm462_vm2, %v2028_v52  ;;  %v8033_v52 = vld [vmem:[%s8160_s7] sm:$0xff] }
 0x560   : > { %v7426_v53 = vpop.f32.mrf.mxu0 }
 0x562   : > { %v2180_v54 = vpop.f32.mrf.mxu0 }
 0x563   : > { %2187 = vst.msk [vmem:[#allocation2 + $0x18] sm:$0xff] %vm462_vm2, %v2180_v54  ;;  %v1952_v40 = vpop.f32.mrf.mxu1 }
 0x564   : > { %2184 = vst.msk [vmem:[#allocation2] sm:$0xff] %vm462_vm2, %v1952_v40  ;;  %v7436_v56 = vpop.f32.mrf.mxu0 }
 0x565   : > { %v7421_v57 = vpop.f32.mrf.mxu1 }
 0x566   : > { %v2336_v58 = vpop.f32.mrf.mxu0 }
 0x567   : > { %2498 = vrot.lane.b32.xlu1 %v2336_v58, %s8090_s15  ;;  %v2104_v61 = vpop.f32.mrf.mxu1 }
 0x568   : > { %2186 = vst.msk [vmem:[#allocation2 + $0x10] sm:$0xff] %vm462_vm2, %v2104_v61  ;;  %v7446_v59 = vpop.f32.mrf.mxu0  ;;  %v8034_v61 = vld [vmem:[%s8160_s7 + $0x10] sm:$0xff] }
 0x569   : > { %v7431_v18 = vpop.f32.mrf.mxu1 }
 0x56a   : > { %v2488_v20 = vpop.f32.mrf.mxu0  ;;  %v8035_v18 = vld [vmem:[%s8160_s7 + $0x18] sm:$0xff]  ;;  %s6909_s7 = sshll.u32 %s8129_s19, 3 }
 0x56b   : > { %2502 = vrot.lane.b32.xlu1 %v2488_v20, %s8090_s15  ;;  %v2260_v0 = vpop.f32.mrf.mxu1  ;;  %p254_p1 = scmp.lt.s32.totalorder %s6909_s7, 15 }
 0x56c   : > { %v7456_v2 = vpop.f32.mrf.mxu0  ;;  %2496 = vrot.lane.b32.xlu0 %v2260_v0, %s8090_s15 }
 0x56d   : > { %v7441_v3 = vpop.f32.mrf.mxu1  ;;  %s9514_s7 = smov (!%p254_p1, %s6909_s7), 15 }
 0x56e   : > { %v2661_v62 = vpop.f32.mrf.mxu0  ;;  %s6910_s14 = sshll.u32 %s9514_s7, 3 }
 0x56f   : > { %2823 = vrot.lane.b32.xlu1 %v2661_v62, %s8091_s16  ;;  %v2412_v10 = vpop.f32.mrf.mxu1  ;;  %s257_s7 = scalar_lea.vmem %s9505_s1, %s6910_s14 }
 0x570   : > { %v7466_v6 = vpop.f32.mrf.mxu0  ;;  %2500 = vrot.lane.b32.xlu0 %v2412_v10, %s8090_s15 }
 0x571   : > { %v7451_v5 = vpop.f32.mrf.mxu1 }
 0x573   : > { %v2585_v11 = vpop.f32.mrf.mxu1 }
 0x574   : > { %2821 = vrot.lane.b32.xlu0 %v2585_v11, %s8091_s16 }
 0x575   : > { %v7461_v8 = vpop.f32.mrf.mxu1 }
 0x577   : > { %v2737_v14 = vpop.f32.mrf.mxu1 }
 0x578   : > { %2825 = vrot.lane.b32.xlu0 %v2737_v14, %s8091_s16 }
 0x579   : > { %v7471_v7 = vpop.f32.mrf.mxu1 }
 0x5c0   : > { %v2813_v19 = vpop.f32.mrf.mxu0 }
 0x5c1   : > { %2827 = vrot.lane.b32.xlu1 %v2813_v19, %s8091_s16 }
 0x5c2   : > { %v7476_v22 = vpop.f32.mrf.mxu0 }
 0x5c4   : > { %v2986_v24 = vpop.f32.mrf.mxu0 }
 0x5c5   : > { %3148 = vrot.lane.b32.xlu1 %v2986_v24, %s8092_s17 }
 0x5c6   : > { %v7486_v25 = vpop.f32.mrf.mxu0 }
 0x5c7   : > { %v2910_v51 = vpop.f32.mrf.mxu1 }
 0x5c8   : > { %3146 = vrot.lane.b32.xlu0 %v2910_v51, %s8092_s17  ;;  %v3138_v1 = vpop.f32.mrf.mxu0 }
 0x5c9   : > { %v7481_v13 = vpop.f32.mrf.mxu1  ;;  %3152 = vrot.lane.b32.xlu1 %v3138_v1, %s8092_s17 }
 0x5ca   : > { %v7496_v60 = vpop.f32.mrf.mxu0 }
 0x5cb   : > { %v3062_v26 = vpop.f32.mrf.mxu1  ;;  %v3341_v60 = vld [vmem:[#allocation3 + $0xa0] sm:$0xff] }
 0x5cc   : > { %3150 = vrot.lane.b32.xlu0 %v3062_v26, %s8092_s17  ;;  %v3340_v26 = vld [vmem:[#allocation3 + $0x70] sm:$0xff]  ;;  %7511 = vmatprep.subr.mxu0 %v3341_v60 }
 0x5cd   : > { %v7491_v16 = vpop.f32.mrf.mxu1  ;;  %7512 = vmatpush3.msra.mxu0 %v3341_v60 }
 0x5ce   : > { %v3339_v16 = vld [vmem:[#allocation3 + $0x40] sm:$0xff]  ;;  %7513 = vmatprep.subr.mxu0 %v3340_v26 }
 0x5cf   : > { %7514 = vmatpush3.msra.mxu0 %v3340_v26 }
 0x5d0   : > { %7515 = vmatprep.subr.mxu0 %v3339_v16 }
 0x5d1   : > { %7516 = vmatpush3.msra.mxu0 %v3339_v16 }
 0x5d9   : > { %v2499_v63 = vpop.permute.xlu1 %2498 }
 0x5da   : > { %2510 = vst.msk [vmem:[#allocation2 + $0x8] sm:$0xff] %vm2508_vm3, %v2499_v63  ;;  %v3338_v63 = vld [vmem:[#allocation3 + $0x10] sm:$0xff] }
 0x5db   : > { %7517 = vmatprep.subr.mxu0 %v3338_v63 }
 0x5dc   : > { %7518 = vmatpush3.msra.mxu0 %v3338_v63 }
 0x5dd   : > { %v2503_v28 = vpop.permute.xlu1 %2502 }
 0x5de   : > { %2512 = vst.msk [vmem:[#allocation2 + $0x18] sm:$0xff] %vm2508_vm3, %v2503_v28  ;;  %v2497_v12 = vpop.permute.xlu0 %2496  ;;  %v3442_v28 = vld [vmem:[#allocation3 + $0xa8] sm:$0xff] }
 0x5df   : > { %2509 = vst.msk [vmem:[#allocation2] sm:$0xff] %vm2508_vm3, %v2497_v12  ;;  %7525 = vmatprep.subr.mxu0 %v3442_v28 }
 0x5e1   : > { %v2824_v30 = vpop.permute.xlu1 %2823 }
 0x5e2   : > { %2835 = vst.msk [vmem:[#allocation2 + $0x8] sm:$0xff] %vm2833_vm4, %v2824_v30  ;;  %v2501_v23 = vpop.permute.xlu0 %2500 }
 0x5e3   : > { %2511 = vst.msk [vmem:[#allocation2 + $0x10] sm:$0xff] %vm2508_vm3, %v2501_v23 }
 0x5e6   : > { %v2822_v27 = vpop.permute.xlu0 %2821 }
 0x5e7   : > { %2834 = vst.msk [vmem:[#allocation2] sm:$0xff] %vm2833_vm4, %v2822_v27 }
 0x5ea   : > { %v2826_v31 = vpop.permute.xlu0 %2825 }
 0x5eb   : > { %2836 = vst.msk [vmem:[#allocation2 + $0x10] sm:$0xff] %vm2833_vm4, %v2826_v31 }
 0x633   : > { %v2828_v32 = vpop.permute.xlu1 %2827 }
 0x634   : > { %2837 = vst.msk [vmem:[#allocation2 + $0x18] sm:$0xff] %vm2833_vm4, %v2828_v32 }
 0x637   : > { %v3149_v33 = vpop.permute.xlu1 %3148 }
 0x638   : > { %3160 = vst.msk [vmem:[#allocation2 + $0x8] sm:$0xff] %vm3158_vm5, %v3149_v33 }
 0x63a   : > { %v3147_v34 = vpop.permute.xlu0 %3146 }
 0x63b   : > { %3159 = vst.msk [vmem:[#allocation2] sm:$0xff] %vm3158_vm5, %v3147_v34  ;;  %v3153_v35 = vpop.permute.xlu1 %3152 }
 0x63c   : > { %3162 = vst.msk [vmem:[#allocation2 + $0x18] sm:$0xff] %vm3158_vm5, %v3153_v35 }
 0x63e   : > { %v3151_v37 = vpop.permute.xlu0 %3150 }
 0x63f   : > { %3161 = vst.msk [vmem:[#allocation2 + $0x10] sm:$0xff] %vm3158_vm5, %v3151_v37  ;;  %v3164_v42 = vld [vmem:[#allocation2 + $0x8] sm:$0xff] }
 0x642   : > { %v3163_v39 = vld [vmem:[#allocation2] sm:$0xff] }
 0x643   : > { %7505 = vmatprep.mubr.msk.f32.mxu1 %vm287_vm0, %v3163_v39  ;;  %v3166_v43 = vld [vmem:[#allocation2 + $0x18] sm:$0xff] }
 0x644   : > { %7506 = vmatmul.mubr.msk.f32.vlgmr.msra.gmra.mxu1 %vm287_vm0, %v3164_v42 }
 0x646   : > { %v3165_v21 = vld [vmem:[#allocation2 + $0x10] sm:$0xff] }
 0x647   : > { %7508 = vmatprep.mubr.msk.f32.mxu1 %vm287_vm0, %v3165_v21 }
 0x648   : > { %7509 = vmatmul.mubr.msk.f32.gmra.mxu1 %vm287_vm0, %v3166_v43  ;;  %v6982_v43 = vld [vmem:[%s9508_s4 + $0x68] sm:$0xff] }
 0x649   : > { %7563 = vmatprep.mubr.msk.f32.mxu1 %vm8078_vm1, %v8077_v4 }
 0x704   : > { %v7507_v44 = vpop.f32.mrf.mxu1 }
 0x705   : > { %v3251_v46 = vadd.f32 %v7507_v44, %v6926_v41 }
 0x706   : > { %v3245_v38 = vpop.f32.mrf.mxu1 }
 0x707   : > { %v8661_v29 = vadd.f32 %v8032_v48, %v3251_v46  ;;  %v3246_v49 = vadd.f32 %v6925_v45, %v3245_v38  ;;  %v6981_v45 = vld [vmem:[%s9508_s4 + $0x60] sm:$0xff] }
 0x708   : > { %v7510_v50 = vpop.f32.mrf.mxu1  ;;  %v6985_v38 = vld [vmem:[%s9508_s4 + $0x80] sm:$0xff] }
 0x709   : > { %v8670_v53 = vadd.f32 %v8033_v52, %v3246_v49  ;;  %v3281_v54 = vsel %vm287_vm0, %v8661_v29, 0.0  ;;  %v3261_v56 = vadd.f32 %v7510_v50, %v6928_v47  ;;  %v6986_v47 = vld [vmem:[%s9508_s4 + $0x88] sm:$0xff] }
 0x70a   : > { %3282 = vadd.xlane.f32.xlu1 %v3281_v54  ;;  %v3255_v40 = vpop.f32.mrf.mxu1 }
 0x70b   : > { %v3256_v57 = vadd.f32 %v6927_v36, %v3255_v40  ;;  %v3278_v58 = vsel %vm287_vm0, %v8670_v53, 0.0  ;;  %v8680_v20 = vadd.f32 %v8035_v18, %v3261_v56  ;;  %v6983_v36 = vld [vmem:[%s9508_s4 + $0x70] sm:$0xff]  ;;  %v6984_v18 = vld [vmem:[%s9508_s4 + $0x78] sm:$0xff] }
 0x70c   : > { %3279 = vadd.xlane.f32.xlu0 %v3278_v58  ;;  %v6987_v56 = vld [vmem:[%s9508_s4 + $0x90] sm:$0xff]  ;;  %v3441_v58 = vld [vmem:[#allocation3 + $0x78] sm:$0xff] }
 0x70d   : > { %v8677_v59 = vadd.f32 %v8034_v61, %v3256_v57  ;;  %v3287_v2 = vsel %vm287_vm0, %v8680_v20, 0.0 }
 0x70f   : > { %v3284_v0 = vsel %vm287_vm0, %v8677_v59, 0.0 }
 0x710   : > { %3285 = vadd.xlane.f32.xlu0 %v3284_v0 }
 0x714   : > { %3288 = vadd.xlane.f32.xlu0 %v3287_v2 }
 0x793   : > { %v3283_v3 = vpop.xlane.xlu1 %3282 }
 0x794   : > { %v3291_v62 = vmul.f32 0.03125, %v3283_v3  ;;  %v3440_v3 = vld [vmem:[#allocation3 + $0x48] sm:$0xff] }
 0x795   : > { %v3280_v10 = vpop.xlane.xlu0 %3279 }
 0x796   : > { %v3295_v6 = vsub.f32 %v8661_v29, %v3291_v62  ;;  %v3290_v5 = vmul.f32 0.03125, %v3280_v10  ;;  %v6988_v62 = vld [vmem:[%s9508_s4 + $0x98] sm:$0xff] }
 0x798   : > { %v3294_v11 = vsub.f32 %v8670_v53, %v3290_v5  ;;  %v3299_v8 = vmul.f32 %v3295_v6, %v3295_v6 }
 0x799   : > { %v3286_v14 = vpop.xlane.xlu0 %3285 }
 0x79a   : > { %v3292_v7 = vmul.f32 0.03125, %v3286_v14  ;;  %v3305_v15 = vsel %vm287_vm0, %v3299_v8, 0.0  ;;  %v3298_v9 = vmul.f32 %v3294_v11, %v3294_v11  ;;  %v270_v8 = vld [vmem:[%s257_s7 + $0x8] sm:$0xff]  ;;  %v271_v14 = vld [vmem:[%s257_s7 + $0x10] sm:$0xff] }
 0x79b   : > { %3306 = vadd.xlane.f32.xlu0 %v3305_v15  ;;  %v273_v15 = vld [vmem:[%s257_s7 + $0x20] sm:$0xff] }
 0x79c   : > { %v3296_v17 = vsub.f32 %v8677_v59, %v3292_v7  ;;  %v3302_v19 = vsel %vm287_vm0, %v3298_v9, 0.0  ;;  %v272_v7 = vld [vmem:[%s257_s7 + $0x18] sm:$0xff]  ;;  %v274_v9 = vld [vmem:[%s257_s7 + $0x28] sm:$0xff] }
 0x79d   : > { %3303 = vadd.xlane.f32.xlu1 %v3302_v19  ;;  %v3289_v55 = vpop.xlane.xlu0 %3288  ;;  %v276_v19 = vld [vmem:[%s257_s7 + $0x38] sm:$0xff] }
 0x79e   : > { %v3293_v22 = vmul.f32 0.03125, %v3289_v55  ;;  %v3300_v24 = vmul.f32 %v3296_v17, %v3296_v17 }
 0x7a0   : > { %v8692_v25 = vsub.f32 %v8680_v20, %v3293_v22  ;;  %v3308_v51 = vsel %vm287_vm0, %v3300_v24, 0.0 }
 0x7a1   : > { %3309 = vadd.xlane.f32.xlu1 %v3308_v51 }
 0x7a2   : > { %v3301_v1 = vmul.f32 %v8692_v25, %v8692_v25 }
 0x7a4   : > { %v3311_v13 = vsel %vm287_vm0, %v3301_v1, 0.0 }
 0x7a5   : > { %3312 = vadd.xlane.f32.xlu0 %v3311_v13 }
 0x824   : > { %v3307_v12 = vpop.xlane.xlu0 %3306 }
 0x825   : > { %v3315_v30 = vmul.f32 0.03125, %v3307_v12 }
 0x826   : > { %v3304_v23 = vpop.xlane.xlu1 %3303 }
 0x827   : > { %v3319_v27 = vadd.f32 1e-05, %v3315_v30  ;;  %v3314_v31 = vmul.f32 0.03125, %v3304_v23 }
 0x829   : > { %7944 = vrsqrt.f32 %v3319_v27  ;;  %v3318_v32 = vadd.f32 1e-05, %v3314_v31 }
 0x82a   : > { %v3310_v33 = vpop.xlane.xlu1 %3309 }
 0x82b   : > { %7946 = vrsqrt.f32 %v3318_v32  ;;  %v3316_v34 = vmul.f32 0.03125, %v3310_v33 }
 0x82d   : > { %v3320_v35 = vadd.f32 1e-05, %v3316_v34 }
 0x82e   : > { %v3313_v37 = vpop.xlane.xlu0 %3312 }
 0x82f   : > { %7948 = vrsqrt.f32 %v3320_v35  ;;  %v3317_v39 = vmul.f32 0.03125, %v3313_v37 }
 0x831   : > { %v3321_v42 = vadd.f32 1e-05, %v3317_v39 }
 0x833   : > { %7950 = vrsqrt.f32 %v3321_v42 }
 0x836   : > { %v7945_v21 = vpop.eup %7944 }
 0x837   : > { %v3327_v41 = vmul.f32 %v7945_v21, %v3295_v6  ;;  %v3439_v6 = vld [vmem:[#allocation3 + $0x18] sm:$0xff] }
 0x838   : > { %v7947_v44 = vpop.eup %7946 }
 0x839   : > { %v3326_v46 = vmul.f32 %v7947_v44, %v3294_v11  ;;  %v3331_v48 = vmul.f32 %v6982_v43, %v3327_v41  ;;  %v269_v11 = vld [vmem:[%s257_s7] sm:$0xff] }
 0x83b   : > { %v3330_v49 = vmul.f32 %v6981_v45, %v3326_v46  ;;  %v3335_v40 = vadd.f32 %v6986_v47, %v3331_v48 }
 0x83c   : > { %v7949_v50 = vpop.eup %7948 }
 0x83d   : > { %v3334_v52 = vadd.f32 %v6985_v38, %v3330_v49  ;;  %v3328_v54 = vmul.f32 %v7949_v50, %v3296_v17  ;;  %v275_v17 = vld [vmem:[%s257_s7 + $0x30] sm:$0xff] }
 0x83f   : > { %7519 = vmatprep.mubr.msk.f32.mxu0 %vm287_vm0, %v3334_v52  ;;  %v3332_v57 = vmul.f32 %v6983_v36, %v3328_v54 }
 0x840   : > { %v7951_v61 = vpop.eup %7950  ;;  %7520 = vmatmul.mubr.msk.f32.vlgmr.msra.gmra.mxu0 %vm287_vm0, %v3335_v40 }
 0x841   : > { %v3336_v0 = vadd.f32 %v6987_v56, %v3332_v57  ;;  %7526 = vmatpush3.msra.mxu0 %v3442_v28  ;;  %v3329_v2 = vmul.f32 %v7951_v61, %v8692_v25 }
 0x842   : > { %7527 = vmatprep.subr.mxu0 %v3441_v58 }
 0x843   : > { %7522 = vmatprep.mubr.msk.f32.mxu0 %vm287_vm0, %v3336_v0  ;;  %7528 = vmatpush3.msra.mxu0 %v3441_v58  ;;  %v3333_v10 = vmul.f32 %v6984_v18, %v3329_v2 }
 0x844   : > { %7529 = vmatprep.subr.mxu0 %v3440_v3 }
 0x845   : > { %v3337_v5 = vadd.f32 %v6988_v62, %v3333_v10  ;;  %7530 = vmatpush3.msra.mxu0 %v3440_v3 }
 0x846   : > { %7531 = vmatprep.subr.mxu0 %v3439_v6 }
 0x847   : > { %7523 = vmatmul.mubr.msk.f32.gmra.mxu0 %vm287_vm0, %v3337_v5 }
 0x848   : > { %7532 = vmatpush3.msra.mxu0 %v3439_v6  ;;  %7533 = vmatprep.mubr.msk.f32.mxu0 %vm287_vm0, %v269_v11 }
 0x849   : > { %7545 = vmatprep.subr.mxu0 %v8077_v4 }
 0x84b   : > { %7534 = vmatmul.mubr.msk.f32.vlgmr.msra.gmra.mxu0 %vm287_vm0, %v270_v8 }
 0x84c   : > { %7536 = vmatprep.mubr.msk.f32.mxu0 %vm287_vm0, %v271_v14 }
 0x84f   : > { %7537 = vmatmul.mubr.msk.f32.gmra.mxu0 %vm287_vm0, %v272_v7 }
 0x850   : > { %7539 = vmatprep.mubr.msk.f32.mxu0 %vm287_vm0, %v273_v15 }
 0x853   : > { %7540 = vmatmul.mubr.msk.f32.gmra.mxu0 %vm287_vm0, %v274_v9 }
 0x854   : > { %7542 = vmatprep.mubr.msk.f32.mxu0 %vm287_vm0, %v275_v17 }
 0x857   : > { %7543 = vmatmul.mubr.msk.f32.gmra.mxu0 %vm287_vm0, %v276_v19 }
 0x858   : > { %7549 = vmatprep.mubr.msk.f32.mxu0 %vm8078_vm1, %v8077_v4 }
 0x900   : > { %v7521_v55 = vpop.f32.mrf.mxu0 }
 0x901   : > { %3979 = vrot.lane.b32.xlu0 %v7521_v55, %s8081_s30 }
 0x902   : > { %v3420_v22 = vpop.f32.mrf.mxu0 }
 0x905   : > { %3897 = vrot.lane.b32.xlu0 %v3420_v22, %s8081_s30 }
 0x907   : > { %v8744_v24 = vpop.f32.mrf.mxu0 }
 0x909   : > { %4143 = vrot.lane.b32.xlu0 %v8744_v24, %s8081_s30  ;;  %v3430_v25 = vpop.f32.mrf.mxu0 }
 0x90b   : > { %v8748_v51 = vpop.f32.mrf.mxu0 }
 0x90c   : > { %3901 = vrot.lane.b32.xlu1 %v8748_v51, %s8081_s30  ;;  %7546 = vmatpush3.xpose.msk.msra.mxu0 %vm462_vm2, %v8748_v51 }
 0x90d   : > { %4061 = vrot.lane.b32.xlu0 %v3430_v25, %s8081_s30  ;;  %v8755_v1 = vpop.f32.mrf.mxu0  ;;  %7547 = vmatprep.subr.mxu0 %v8077_v4 }
 0x90f   : > { %v8758_v13 = vpop.f32.mrf.mxu0 }
 0x910   : > { %4229 = vrot.lane.b32.xlu1 %v8748_v51, %s8083_s8  ;;  %7548 = vmatpush3.xpose.msk.msra.mxu0 %vm462_vm2, %v8755_v1 }
 0x911   : > { %3983 = vrot.lane.b32.xlu0 %v8758_v13, %s8081_s30  ;;  %v8766_v60 = vpop.f32.mrf.mxu0  ;;  %7552 = vmatprep.subr.mxu0 %v8077_v4 }
 0x913   : > { %v8769_v26 = vpop.f32.mrf.mxu0  ;;  %7550 = vmatmul.mubr.msk.f32.vlgmr.msra.gmra.mxu0 %vm462_vm2, %v3420_v22 }
 0x914   : > { %3899 = vrot.lane.b32.xlu1 %v8755_v1, %s8081_s30  ;;  %7553 = vmatpush3.xpose.msk.msra.mxu0 %vm462_vm2, %v8758_v13 }
 0x915   : > { %7560 = vmatpush3.xpose.msk.msra.mxu1 %vm462_vm2, %v8769_v26  ;;  %4227 = vrot.lane.b32.xlu0 %v8755_v1, %s8083_s8  ;;  %v8780_v16 = vpop.f32.mrf.mxu0 }
 0x916   : > { %7554 = vmatprep.subr.mxu0 %v8077_v4  ;;  %7561 = vmatprep.subr.mxu1 %v8077_v4 }
 0x917   : > { %7556 = vmatprep.mubr.msk.f32.mxu0 %vm8078_vm1, %v8077_v4  ;;  %v8793_v63 = vpop.f32.mrf.mxu0 }
 0x918   : > { %4311 = vrot.lane.b32.xlu1 %v8758_v13, %s8083_s8  ;;  %7555 = vmatpush3.xpose.msk.msra.mxu0 %vm462_vm2, %v8766_v60 }
 0x919   : > { %7562 = vmatpush3.xpose.msk.msra.mxu1 %vm462_vm2, %v8780_v16  ;;  %4225 = vrot.lane.b32.xlu0 %v3420_v22, %s8083_s8  ;;  %v8805_v28 = vpop.f32.mrf.mxu0 }
 0x91a   : > { %7566 = vmatprep.subr.mxu0 %v8077_v4  ;;  %7573 = vmatprep.subr.mxu1 %v8077_v4 }
 0x91b   : > { %7557 = vmatmul.mubr.msk.f32.vlgmr.msra.gmra.mxu0 %vm462_vm2, %v7521_v55 }
 0x91c   : > { %7564 = vmatmul.mubr.msk.f32.vlgmr.msra.gmra.mxu1 %vm462_vm2, %v3430_v25  ;;  %3981 = vrot.lane.b32.xlu1 %v8766_v60, %s8081_s30 }
 0x91d   : > { %7567 = vmatpush3.xpose.msk.msra.mxu0 %vm462_vm2, %v8793_v63  ;;  %4063 = vrot.lane.b32.xlu0 %v8780_v16, %s8081_s30 }
 0x91e   : > { %7568 = vmatprep.subr.mxu0 %v8077_v4  ;;  %7570 = vmatprep.mubr.msk.f32.mxu0 %vm8078_vm1, %v8077_v4 }
 0x91f   : > { %7577 = vmatprep.mubr.msk.f32.mxu1 %vm8078_vm1, %v8077_v4 }
 0x920   : > { %4309 = vrot.lane.b32.xlu1 %v8766_v60, %s8083_s8 }
 0x921   : > { %7569 = vmatpush3.xpose.msk.msra.mxu0 %vm462_vm2, %v8805_v28  ;;  %4307 = vrot.lane.b32.xlu0 %v7521_v55, %s8083_s8 }
 0x922   : > { %7580 = vmatprep.subr.mxu0 %v8077_v4 }
 0x924   : > { %7571 = vmatmul.mubr.msk.f32.vlgmr.msra.gmra.mxu0 %vm462_vm2, %v8744_v24  ;;  %4065 = vrot.lane.b32.xlu1 %v8769_v26, %s8081_s30 }
 0x925   : > { %4391 = vrot.lane.b32.xlu0 %v8780_v16, %s8083_s8  ;;  %7584 = vmatprep.mubr.msk.f32.mxu0 %vm8078_vm1, %v8077_v4 }
 0x928   : > { %4393 = vrot.lane.b32.xlu1 %v8769_v26, %s8083_s8 }
 0x929   : > { %4389 = vrot.lane.b32.xlu0 %v3430_v25, %s8083_s8 }
 0x92c   : > { %4147 = vrot.lane.b32.xlu1 %v8793_v63, %s8081_s30 }
 0x92d   : > { %4471 = vrot.lane.b32.xlu0 %v8744_v24, %s8083_s8 }
 0x930   : > { %4145 = vrot.lane.b32.xlu1 %v8805_v28, %s8081_s30 }
 0x931   : > { %4555 = vrot.lane.b32.xlu0 %v8755_v1, %s8085_s10 }
 0x934   : > { %4475 = vrot.lane.b32.xlu1 %v8793_v63, %s8083_s8 }
 0x935   : > { %4553 = vrot.lane.b32.xlu0 %v3420_v22, %s8085_s10 }
 0x938   : > { %4557 = vrot.lane.b32.xlu1 %v8748_v51, %s8085_s10 }
 0x939   : > { %4635 = vrot.lane.b32.xlu0 %v7521_v55, %s8085_s10 }
 0x93c   : > { %4639 = vrot.lane.b32.xlu1 %v8758_v13, %s8085_s10 }
 0x93d   : > { %4719 = vrot.lane.b32.xlu0 %v8780_v16, %s8085_s10 }
 0x940   : > { %4473 = vrot.lane.b32.xlu1 %v8805_v28, %s8083_s8  ;;  %s263_s8 = scalar_lea.vmem %s9509_s5, %s6908_s29 }
 0x941   : > { %4717 = vrot.lane.b32.xlu0 %v3430_v25, %s8085_s10 }
 0x944   : > { %4637 = vrot.lane.b32.xlu1 %v8766_v60, %s8085_s10 }
 0x945   : > { %5139 = vrot.lane.b32.xlu0 %v8758_v13, %s8079_s26 }
 0x948   : > { %4721 = vrot.lane.b32.xlu1 %v8769_v26, %s8085_s10 }
 0x949   : > { %5137 = vrot.lane.b32.xlu0 %v8766_v60, %s8079_s26 }
 0x94c   : > { %4803 = vrot.lane.b32.xlu1 %v8793_v63, %s8085_s10 }
 0x94d   : > { %5297 = vrot.lane.b32.xlu0 %v8793_v63, %s8079_s26 }
 0x950   : > { %4801 = vrot.lane.b32.xlu1 %v8805_v28, %s8085_s10 }
 0x951   : > { %5380 = vrot.lane.b32.xlu0 %v8748_v51, %s8080_s27 }
 0x954   : > { %4799 = vrot.lane.b32.xlu1 %v8744_v24, %s8085_s10 }
 0x955   : > { %5378 = vrot.lane.b32.xlu0 %v8755_v1, %s8080_s27 }
 0x958   : > { %5060 = vrot.lane.b32.xlu1 %v8748_v51, %s8079_s26 }
 0x959   : > { %5538 = vrot.lane.b32.xlu0 %v8769_v26, %s8080_s27 }
 0x95c   : > { %5058 = vrot.lane.b32.xlu1 %v8755_v1, %s8079_s26 }
 0x95d   : > { %5536 = vrot.lane.b32.xlu0 %v8780_v16, %s8080_s27 }
 0x960   : > { %5218 = vrot.lane.b32.xlu1 %v8769_v26, %s8079_s26 }
 0x961   : > { %5716 = vrot.lane.b32.xlu0 %v8748_v51, %s8082_s6 }
 0x964   : > { %5216 = vrot.lane.b32.xlu1 %v8780_v16, %s8079_s26 }
 0x965   : > { %5714 = vrot.lane.b32.xlu0 %v8755_v1, %s8082_s6 }
 0x968   : > { %5459 = vrot.lane.b32.xlu1 %v8758_v13, %s8080_s27 }
 0x969   : > { %5874 = vrot.lane.b32.xlu0 %v8769_v26, %s8082_s6 }
 0x96c   : > { %5457 = vrot.lane.b32.xlu1 %v8766_v60, %s8080_s27 }
 0x96d   : > { %5872 = vrot.lane.b32.xlu0 %v8780_v16, %s8082_s6 }
 0x970   : > { %5617 = vrot.lane.b32.xlu1 %v8793_v63, %s8080_s27 }
 0x971   : > { %6052 = vrot.lane.b32.xlu0 %v8748_v51, %s8084_s9 }
 0x973   : > { %v3980_v12 = vpop.permute.xlu0 %3979 }
 0x974   : > { %5795 = vrot.lane.b32.xlu1 %v8758_v13, %s8082_s6 }
 0x977   : > { %v3898_v30 = vpop.permute.xlu0 %3897 }
 0x978   : > { %5793 = vrot.lane.b32.xlu1 %v8766_v60, %s8082_s6 }
 0x97b   : > { %v4144_v23 = vpop.permute.xlu0 %4143 }
 0x97c   : > { %5953 = vrot.lane.b32.xlu1 %v8793_v63, %s8082_s6 }
 0x97e   : > { %v3902_v27 = vpop.permute.xlu1 %3901 }
 0x97f   : > { %v4062_v31 = vpop.permute.xlu0 %4061  ;;  %7574 = vmatpush3.xpose.msk.msra.mxu1 %vm462_vm2, %v3902_v27 }
 0x980   : > { %6131 = vrot.lane.b32.xlu1 %v8758_v13, %s8084_s9  ;;  %7575 = vmatprep.subr.mxu1 %v8077_v4 }
 0x982   : > { %v4230_v32 = vpop.permute.xlu1 %4229 }
 0x983   : > { %v3984_v33 = vpop.permute.xlu0 %3983 }
 0x984   : > { %5295 = vrot.lane.b32.xlu1 %v8805_v28, %s8079_s26  ;;  %7581 = vmatpush3.xpose.msk.msra.mxu0 %vm462_vm2, %v3984_v33 }
 0x985   : > { %7582 = vmatprep.subr.mxu0 %v8077_v4 }
 0x986   : > { %v3900_v34 = vpop.permute.xlu1 %3899 }
 0x987   : > { %7576 = vmatpush3.xpose.msk.msra.mxu1 %vm462_vm2, %v3900_v34  ;;  %v4228_v35 = vpop.permute.xlu0 %4227 }
 0x988   : > { %5615 = vrot.lane.b32.xlu1 %v8805_v28, %s8080_s27  ;;  %7587 = vmatprep.subr.mxu1 %v8077_v4 }
 0x98a   : > { %v4312_v37 = vpop.permute.xlu1 %4311  ;;  %7578 = vmatmul.mubr.msk.f32.vlgmr.msra.gmra.mxu1 %vm462_vm2, %v3898_v30 }
 0x98b   : > { %v4226_v39 = vpop.permute.xlu0 %4225  ;;  %7591 = vmatprep.mubr.msk.f32.mxu1 %vm8078_vm1, %v8077_v4 }
 0x98c   : > { %5951 = vrot.lane.b32.xlu1 %v8805_v28, %s8082_s6 }
 0x98e   : > { %v3982_v42 = vpop.permute.xlu1 %3981 }
 0x98f   : > { %7583 = vmatpush3.xpose.msk.msra.mxu0 %vm462_vm2, %v3982_v42  ;;  %v4064_v21 = vpop.permute.xlu0 %4063 }
 0x990   : > { %7594 = vmatprep.subr.mxu0 %v8077_v4 }
 0x992   : > { %v4310_v43 = vpop.permute.xlu1 %4309  ;;  %7585 = vmatmul.mubr.msk.f32.vlgmr.msra.gmra.mxu0 %vm462_vm2, %v3980_v12 }
 0x993   : > { %v4308_v41 = vpop.permute.xlu0 %4307  ;;  %7598 = vmatprep.mubr.msk.f32.mxu0 %vm8078_vm1, %v8077_v4 }
 0x996   : > { %v4066_v44 = vpop.permute.xlu1 %4065 }
 0x997   : > { %7588 = vmatpush3.xpose.msk.msra.mxu1 %vm462_vm2, %v4066_v44  ;;  %v4392_v45 = vpop.permute.xlu0 %4391 }
 0x998   : > { %7589 = vmatprep.subr.mxu1 %v8077_v4 }
 0x99a   : > { %v4394_v46 = vpop.permute.xlu1 %4393 }
 0x99b   : > { %7590 = vmatpush3.xpose.msk.msra.mxu1 %vm462_vm2, %v4064_v21  ;;  %v4390_v38 = vpop.permute.xlu0 %4389 }
 0x99c   : > { %7601 = vmatprep.subr.mxu1 %v8077_v4 }
 0x99e   : > { %v4148_v48 = vpop.permute.xlu1 %4147  ;;  %7592 = vmatmul.mubr.msk.f32.vlgmr.msra.gmra.mxu1 %vm462_vm2, %v4062_v31 }
 0x99f   : > { %7595 = vmatpush3.xpose.msk.msra.mxu0 %vm462_vm2, %v4148_v48  ;;  %7602 = vmatpush3.xpose.msk.msra.mxu1 %vm462_vm2, %v4230_v32  ;;  %v4472_v49 = vpop.permute.xlu0 %4471 }
 0x9a0   : > { %7596 = vmatprep.subr.mxu0 %v8077_v4  ;;  %7603 = vmatprep.subr.mxu1 %v8077_v4 }
 0x9a1   : > { %7605 = vmatprep.mubr.msk.f32.mxu1 %vm8078_vm1, %v8077_v4 }
 0x9a2   : > { %v4146_v47 = vpop.permute.xlu1 %4145 }
 0x9a3   : > { %7597 = vmatpush3.xpose.msk.msra.mxu0 %vm462_vm2, %v4146_v47  ;;  %7604 = vmatpush3.xpose.msk.msra.mxu1 %vm462_vm2, %v4228_v35  ;;  %v4556_v50 = vpop.permute.xlu0 %4555 }
 0x9a4   : > { %7608 = vmatprep.subr.mxu0 %v8077_v4  ;;  %7615 = vmatprep.subr.mxu1 %v8077_v4 }
 0x9a6   : > { %v4476_v36 = vpop.permute.xlu1 %4475  ;;  %7599 = vmatmul.mubr.msk.f32.vlgmr.msra.gmra.mxu0 %vm462_vm2, %v4144_v23  ;;  %7606 = vmatmul.mubr.msk.f32.vlgmr.msra.gmra.mxu1 %vm462_vm2, %v4226_v39 }
 0x9a7   : > { %7609 = vmatpush3.xpose.msk.msra.mxu0 %vm462_vm2, %v4312_v37  ;;  %7616 = vmatpush3.xpose.msk.msra.mxu1 %vm462_vm2, %v4394_v46  ;;  %v4554_v54 = vpop.permute.xlu0 %4553 }
 0x9a8   : > { %7610 = vmatprep.subr.mxu0 %v8077_v4  ;;  %7617 = vmatprep.subr.mxu1 %v8077_v4 }
 0x9a9   : > { %7612 = vmatprep.mubr.msk.f32.mxu0 %vm8078_vm1, %v8077_v4  ;;  %7619 = vmatprep.mubr.msk.f32.mxu1 %vm8078_vm1, %v8077_v4 }
 0x9aa   : > { %v4558_v52 = vpop.permute.xlu1 %4557 }
 0x9ab   : > { %7611 = vmatpush3.xpose.msk.msra.mxu0 %vm462_vm2, %v4310_v43  ;;  %7618 = vmatpush3.xpose.msk.msra.mxu1 %vm462_vm2, %v4392_v45  ;;  %v4636_v56 = vpop.permute.xlu0 %4635 }
 0x9ac   : > { %7622 = vmatprep.subr.mxu0 %v8077_v4  ;;  %7629 = vmatprep.subr.mxu1 %v8077_v4 }
 0x9ae   : > { %v4640_v40 = vpop.permute.xlu1 %4639  ;;  %7613 = vmatmul.mubr.msk.f32.vlgmr.msra.gmra.mxu0 %vm462_vm2, %v4308_v41  ;;  %7620 = vmatmul.mubr.msk.f32.vlgmr.msra.gmra.mxu1 %vm462_vm2, %v4390_v38 }
 0x9af   : > { %7623 = vmatpush3.xpose.msk.msra.mxu0 %vm462_vm2, %v4476_v36  ;;  %7630 = vmatpush3.xpose.msk.msra.mxu1 %vm462_vm2, %v4558_v52  ;;  %v4720_v61 = vpop.permute.xlu0 %4719 }
 0x9b0   : > { %7624 = vmatprep.subr.mxu0 %v8077_v4  ;;  %7631 = vmatprep.subr.mxu1 %v8077_v4 }
 0x9b1   : > { %7626 = vmatprep.mubr.msk.f32.mxu0 %vm8078_vm1, %v8077_v4  ;;  %7633 = vmatprep.mubr.msk.f32.mxu1 %vm8078_vm1, %v8077_v4 }
 0x9b2   : > { %v4474_v57 = vpop.permute.xlu1 %4473 }
 0x9b3   : > { %7625 = vmatpush3.xpose.msk.msra.mxu0 %vm462_vm2, %v4474_v57  ;;  %7632 = vmatpush3.xpose.msk.msra.mxu1 %vm462_vm2, %v4556_v50  ;;  %v4718_v0 = vpop.permute.xlu0 %4717 }
 0x9b4   : > { %7636 = vmatprep.subr.mxu0 %v8077_v4  ;;  %7643 = vmatprep.subr.mxu1 %v8077_v4 }
 0x9b6   : > { %v4638_v58 = vpop.permute.xlu1 %4637  ;;  %7627 = vmatmul.mubr.msk.f32.vlgmr.msra.gmra.mxu0 %vm462_vm2, %v4472_v49  ;;  %7634 = vmatmul.mubr.msk.f32.vlgmr.msra.gmra.mxu1 %vm462_vm2, %v4554_v54 }
 0x9b7   : > { %7637 = vmatpush3.xpose.msk.msra.mxu0 %vm462_vm2, %v4640_v40  ;;  %7640 = vmatprep.mubr.msk.f32.mxu0 %vm8078_vm1, %v8077_v4  ;;  %v5140_v62 = vpop.permute.xlu0 %5139 }
 0x9b8   : > { %7638 = vmatprep.subr.mxu0 %v8077_v4  ;;  %7647 = vmatprep.mubr.msk.f32.mxu1 %vm8078_vm1, %v8077_v4 }
 0x9ba   : > { %v4722_v18 = vpop.permute.xlu1 %4721 }
 0x9bb   : > { %7639 = vmatpush3.xpose.msk.msra.mxu0 %vm462_vm2, %v4638_v58  ;;  %7644 = vmatpush3.xpose.msk.msra.mxu1 %vm462_vm2, %v4722_v18  ;;  %v5138_v6 = vpop.permute.xlu0 %5137 }
 0x9bc   : > { %7645 = vmatprep.subr.mxu1 %v8077_v4  ;;  %7650 = vmatprep.subr.mxu0 %v8077_v4 }
 0x9be   : > { %v4804_v2 = vpop.permute.xlu1 %4803  ;;  %7641 = vmatmul.mubr.msk.f32.vlgmr.msra.gmra.mxu0 %vm462_vm2, %v4636_v56 }
 0x9bf   : > { %7646 = vmatpush3.xpose.msk.msra.mxu1 %vm462_vm2, %v4720_v61  ;;  %7651 = vmatpush3.xpose.msk.msra.mxu0 %vm462_vm2, %v4804_v2  ;;  %v9013_v13 = vpop.permute.xlu0 %5297 }
 0x9c0   : > { %7652 = vmatprep.subr.mxu0 %v8077_v4  ;;  %7654 = vmatprep.mubr.msk.f32.mxu0 %vm8078_vm1, %v8077_v4 }
 0x9c1   : > { %7657 = vmatprep.subr.mxu1 %v8077_v4 }
 0x9c2   : > { %v4802_v3 = vpop.permute.xlu1 %4801  ;;  %7648 = vmatmul.mubr.msk.f32.vlgmr.msra.gmra.mxu1 %vm462_vm2, %v4718_v0 }
 0x9c3   : > { %7653 = vmatpush3.xpose.msk.msra.mxu0 %vm462_vm2, %v4802_v3  ;;  %7661 = vmatprep.mubr.msk.f32.mxu1 %vm8078_vm1, %v8077_v4  ;;  %v9015_v12 = vpop.permute.xlu0 %5380 }
 0x9c4   : > { %7664 = vmatprep.subr.mxu0 %v8077_v4 }
 0x9c6   : > { %v4800_v10 = vpop.permute.xlu1 %4799 }
 0x9c7   : > { %7655 = vmatmul.mubr.msk.f32.vlgmr.msra.gmra.mxu0 %vm462_vm2, %v4800_v10  ;;  %v9017_v30 = vpop.permute.xlu0 %5378 }
 0x9c8   : > { %7665 = vmatpush3.msra.mxu0 %v5140_v62  ;;  %7668 = vmatprep.mubr.msk.f32.mxu0 %vm8078_vm1, %v8077_v4 }
 0x9c9   : > { %7666 = vmatprep.subr.mxu0 %v8077_v4 }
 0x9ca   : > { %7667 = vmatpush3.msra.mxu0 %v5138_v6  ;;  %v5061_v5 = vpop.permute.xlu1 %5060 }
 0x9cb   : > { %7658 = vmatpush3.msra.mxu1 %v5061_v5  ;;  %7678 = vmatprep.subr.mxu0 %v8077_v4  ;;  %v9019_v23 = vpop.permute.xlu0 %5538 }
 0x9cc   : > { %7659 = vmatprep.subr.mxu1 %v8077_v4 }
 0x9ce   : > { %v5059_v11 = vpop.permute.xlu1 %5058 }
 0x9cf   : > { %7660 = vmatpush3.msra.mxu1 %v5059_v11  ;;  %v9021_v27 = vpop.permute.xlu0 %5536 }
 0x9d0   : > { %7671 = vmatprep.subr.mxu1 %v8077_v4 }
 0x9d2   : > { %v9039_v41 = vpop.permute.xlu1 %5218 }
 0x9d3   : > { %v3656_v8 = vpop.f32.mrf.mxu0  ;;  %v9027_v34 = vpop.permute.xlu0 %5716 }
 0x9d4   : > { %v4882_v14 = vsel %vm4881_vm6, %v3656_v8, -inf }
 0x9d5   : > { %4883 = vmax.xlane.f32.xlu0 %v4882_v14  ;;  %v7551_v7 = vpop.f32.mrf.mxu0 }
 0x9d6   : > { %v9045_v38 = vpop.permute.xlu1 %5216 }
 0x9d7   : > { %v9033_v42 = vpop.permute.xlu0 %5714 }
 0x9da   : > { %v9057_v40 = vpop.permute.xlu1 %5459 }
 0x9db   : > { %v9001_v15 = vpop.f32.mrf.mxu0  ;;  %v9035_v21 = vpop.permute.xlu0 %5874 }
 0x9dc   : > { %v9003_v9 = vpop.f32.mrf.mxu1  ;;  %v4894_v17 = vsel %vm4881_vm6, %v9001_v15, -inf }
 0x9dd   : > { %v4906_v19 = vsel %vm4881_vm6, %v9003_v9, -inf  ;;  %4895 = vmax.xlane.f32.xlu1 %v4894_v17  ;;  %v7558_v55 = vpop.f32.mrf.mxu0 }
 0x9de   : > { %v7565_v22 = vpop.f32.mrf.mxu1  ;;  %4907 = vmax.xlane.f32.xlu0 %v4906_v19  ;;  %v9067_v62 = vpop.permute.xlu1 %5457 }
 0x9df   : > { %v9043_v46 = vpop.permute.xlu0 %5872 }
 0x9e2   : > { %v9073_v11 = vpop.permute.xlu1 %5617 }
 0x9e3   : > { %v9053_v50 = vpop.permute.xlu0 %6052 }
 0x9e4   : > { %v9009_v24 = vpop.f32.mrf.mxu0 }
 0x9e5   : > { %v4918_v25 = vsel %vm4881_vm6, %v9009_v24, -inf }
 0x9e6   : > { %4919 = vmax.xlane.f32.xlu0 %v4918_v25  ;;  %v7572_v51 = vpop.f32.mrf.mxu0  ;;  %v9079_v19 = vpop.permute.xlu1 %5795 }
 0xa4a   : > { %v9023_v31 = vpop.f32.mrf.mxu1 }
 0xa4b   : > { %v4885_v32 = vsel %vm4881_vm6, %v9023_v31, -inf }
 0xa4c   : > { %4886 = vmax.xlane.f32.xlu1 %v4885_v32  ;;  %v7579_v33 = vpop.f32.mrf.mxu1 }
 0xa52   : > { %v9029_v35 = vpop.f32.mrf.mxu0 }
 0xa53   : > { %v4897_v37 = vsel %vm4881_vm6, %v9029_v35, -inf }
 0xa54   : > { %4898 = vmax.xlane.f32.xlu0 %v4897_v37  ;;  %v7586_v39 = vpop.f32.mrf.mxu0  ;;  %v9091_v37 = vpop.permute.xlu1 %5793 }
 0xa5e   : > { %v9037_v43 = vpop.f32.mrf.mxu1  ;;  %v4884_v56 = vpop.xlane.xlu0 %4883 }
 0xa5f   : > { %v4909_v44 = vsel %vm4881_vm6, %v9037_v43, -inf  ;;  %v4930_v61 = vsub.f32 %v3656_v8, %v4884_v56 }
 0xa60   : > { %4910 = vmax.xlane.f32.xlu1 %v4909_v44  ;;  %v7593_v45 = vpop.f32.mrf.mxu1 }
 0xa61   : > { %v4946_v10 = vmul.f32 1.442695, %v4930_v61 }
 0xa63   : > { %7952 = vpow2.f32 %v4946_v10 }
 0xa66   : > { %v9047_v48 = vpop.f32.mrf.mxu0  ;;  %v9049_v49 = vpop.f32.mrf.mxu1 }
 0xa67   : > { %v4921_v47 = vsel %vm4881_vm6, %v9047_v48, -inf  ;;  %v4888_v52 = vsel %vm4881_vm6, %v9049_v49, -inf }
 0xa68   : > { %4922 = vmax.xlane.f32.xlu0 %v4921_v47  ;;  %v7600_v36 = vpop.f32.mrf.mxu0  ;;  %4889 = vmax.xlane.f32.xlu1 %v4888_v52  ;;  %v7607_v54 = vpop.f32.mrf.mxu1 }
 0xa69   : > { %v9099_v52 = vpop.permute.xlu1 %5953 }
 0xa6d   : > { %v9101_v54 = vpop.permute.xlu1 %6131 }
 0xa6e   : > { %v9059_v57 = vpop.f32.mrf.mxu0  ;;  %v9061_v58 = vpop.f32.mrf.mxu1 }
 0xa6f   : > { %v4900_v18 = vsel %vm4881_vm6, %v9059_v57, -inf  ;;  %v4912_v0 = vsel %vm4881_vm6, %v9061_v58, -inf }
 0xa70   : > { %4901 = vmax.xlane.f32.xlu0 %v4900_v18  ;;  %v7614_v2 = vpop.f32.mrf.mxu0  ;;  %4913 = vmax.xlane.f32.xlu1 %v4912_v0  ;;  %v7621_v3 = vpop.f32.mrf.mxu1 }
 0xa71   : > { %v9089_v33 = vpop.eup %7952  ;;  %v9103_v56 = vpop.permute.xlu1 %5295 }
 0xa72   : > { %v4978_v45 = vsel %vm4881_vm6, %v9089_v33, 0.0  ;;  %v4908_v0 = vpop.xlane.xlu0 %4907 }
 0xa73   : > { %v4938_v3 = vsub.f32 %v9003_v9, %v4908_v0 }
 0xa75   : > { %v9107_v61 = vpop.permute.xlu1 %5615 }
 0xa76   : > { %v9069_v6 = vpop.f32.mrf.mxu0  ;;  %v9071_v5 = vpop.f32.mrf.mxu1 }
 0xa77   : > { %v4924_v8 = vsel %vm4881_vm6, %v9069_v6, -inf  ;;  %v4891_v14 = vsel %vm4881_vm6, %v9071_v5, -inf }
 0xa78   : > { %4925 = vmax.xlane.f32.xlu0 %v4924_v8  ;;  %v7628_v7 = vpop.f32.mrf.mxu0  ;;  %4892 = vmax.xlane.f32.xlu1 %v4891_v14  ;;  %v7635_v17 = vpop.f32.mrf.mxu1  ;;  %v4962_v8 = vmul.f32 1.442695, %v4938_v3 }
 0xa79   : > { %v9113_v18 = vpop.permute.xlu1 %5951 }
 0xa7a   : > { %7954 = vpow2.f32 %v4962_v8 }
 0xa7d   : > { %v4896_v2 = vpop.xlane.xlu1 %4895 }
 0xa7e   : > { %v9081_v55 = vpop.f32.mrf.mxu0  ;;  %v4934_v10 = vsub.f32 %v9001_v15, %v4896_v2 }
 0xa7f   : > { %v4903_v22 = vsel %vm4881_vm6, %v9081_v55, -inf }
 0xa80   : > { %4904 = vmax.xlane.f32.xlu0 %v4903_v22  ;;  %v7642_v25 = vpop.f32.mrf.mxu0  ;;  %v4954_v14 = vmul.f32 1.442695, %v4934_v10 }
 0xa82   : > { %v9085_v51 = vpop.f32.mrf.mxu1  ;;  %7956 = vpow2.f32 %v4954_v14 }
 0xa83   : > { %v4915_v32 = vsel %vm4881_vm6, %v9085_v51, -inf }
 0xa84   : > { %4916 = vmax.xlane.f32.xlu1 %v4915_v32  ;;  %v7649_v39 = vpop.f32.mrf.mxu1 }
 0xa87   : > { %v9093_v44 = vpop.f32.mrf.mxu0 }
 0xa88   : > { %4979 = vadd.xlane.f32.xlu1 %v4978_v45  ;;  %v4927_v47 = vsel %vm4881_vm6, %v9093_v44, -inf }
 0xa89   : > { %4928 = vmax.xlane.f32.xlu0 %v4927_v47  ;;  %v7656_v36 = vpop.f32.mrf.mxu0 }
 0xa99   : > { %6129 = vrot.lane.b32.xlu1 %v8766_v60, %s8084_s9  ;;  %v4920_v60 = vpop.xlane.xlu0 %4919 }
 0xa9a   : > { %v4942_v7 = vsub.f32 %v9009_v24, %v4920_v60 }
 0xa9d   : > { %6289 = vrot.lane.b32.xlu1 %v8793_v63, %s8084_s9  ;;  %v4970_v63 = vmul.f32 1.442695, %v4942_v7 }
 0xa9f   : > { %6050 = vrot.lane.b32.xlu0 %v8755_v1, %s8084_s9  ;;  %7958 = vpow2.f32 %v4970_v63  ;;  %v9120_v1 = vpop.eup %7954 }
 0xaa0   : > { %v9122_v17 = vpop.eup %7956 }
 0xaa1   : > { %v4990_v15 = vsel %vm4881_vm6, %v9122_v17, 0.0 }
 0xaa3   : > { %6210 = vrot.lane.b32.xlu0 %v8769_v26, %s8084_s9  ;;  %v5002_v26 = vsel %vm4881_vm6, %v9120_v1, 0.0 }
 0xaac   : > { %v9128_v9 = vpop.eup %7958 }
 0xaad   : > { %v5014_v24 = vsel %vm4881_vm6, %v9128_v9, 0.0 }
 0xac1   : > { %5003 = vadd.xlane.f32.xlu1 %v5002_v26 }
 0xac2   : > { %4991 = vadd.xlane.f32.xlu0 %v4990_v15 }
 0xac6   : > { %5015 = vadd.xlane.f32.xlu0 %v5014_v24 }
 0xad5   : > { %v4887_v22 = vpop.xlane.xlu1 %4886 }
 0xad6   : > { %v4931_v25 = vsub.f32 %v9023_v31, %v4887_v22 }
 0xad8   : > { %v4948_v32 = vmul.f32 1.442695, %v4931_v25 }
 0xada   : > { %7960 = vpow2.f32 %v4948_v32 }
 0xadd   : > { %v4899_v39 = vpop.xlane.xlu0 %4898 }
 0xade   : > { %v4935_v45 = vsub.f32 %v9029_v35, %v4899_v39 }
 0xae0   : > { %v4956_v47 = vmul.f32 1.442695, %v4935_v45 }
 0xae2   : > { %7962 = vpow2.f32 %v4956_v47 }
 0xae7   : > { %v9134_v36 = vpop.eup %7960 }
 0xae8   : > { %v4981_v0 = vsel %vm4881_vm6, %v9134_v36, 0.0 }
 0xae9   : > { %v4911_v2 = vpop.xlane.xlu1 %4910  ;;  %4982 = vadd.xlane.f32.xlu1 %v4981_v0 }
 0xaea   : > { %v4939_v3 = vsub.f32 %v9037_v43, %v4911_v2 }
 0xaec   : > { %v4964_v10 = vmul.f32 1.442695, %v4939_v3 }
 0xaee   : > { %7964 = vpow2.f32 %v4964_v10 }
 0xaef   : > { %v9139_v60 = vpop.eup %7962 }
 0xaf0   : > { %v4993_v31 = vsel %vm4881_vm6, %v9139_v60, 0.0 }
 0xaf1   : > { %4994 = vadd.xlane.f32.xlu0 %v4993_v31  ;;  %v4923_v35 = vpop.xlane.xlu0 %4922  ;;  %v4890_v8 = vpop.xlane.xlu1 %4889 }
 0xaf2   : > { %v4943_v14 = vsub.f32 %v9047_v48, %v4923_v35  ;;  %v4932_v7 = vsub.f32 %v9049_v49, %v4890_v8 }
 0xaf4   : > { %v4972_v63 = vmul.f32 1.442695, %v4943_v14  ;;  %v4950_v26 = vmul.f32 1.442695, %v4932_v7 }
 0xaf6   : > { %7966 = vpow2.f32 %v4972_v63 }
 0xaf7   : > { %7968 = vpow2.f32 %v4950_v26 }
 0xaf9   : > { %v4914_v15 = vpop.xlane.xlu1 %4913  ;;  %v4902_v43 = vpop.xlane.xlu0 %4901 }
 0xafa   : > { %v4940_v24 = vsub.f32 %v9061_v58, %v4914_v15  ;;  %v4936_v22 = vsub.f32 %v9059_v57, %v4902_v43 }
 0xafb   : > { %v9147_v25 = vpop.eup %7964 }
 0xafc   : > { %v4966_v32 = vmul.f32 1.442695, %v4940_v24  ;;  %v4958_v39 = vmul.f32 1.442695, %v4936_v22  ;;  %v5005_v45 = vsel %vm4881_vm6, %v9147_v25, 0.0 }
 0xafd   : > { %5006 = vadd.xlane.f32.xlu1 %v5005_v45 }
 0xafe   : > { %7970 = vpow2.f32 %v4966_v32 }
 0xaff   : > { %7972 = vpow2.f32 %v4958_v39 }
 0xb01   : > { %v4893_v48 = vpop.xlane.xlu1 %4892  ;;  %v4926_v49 = vpop.xlane.xlu0 %4925 }
 0xb02   : > { %v4933_v47 = vsub.f32 %v9071_v5, %v4893_v48  ;;  %v4944_v0 = vsub.f32 %v9069_v6, %v4926_v49 }
 0xb03   : > { %v9153_v2 = vpop.eup %7966 }
 0xb04   : > { %v9155_v58 = vpop.eup %7968  ;;  %v4952_v57 = vmul.f32 1.442695, %v4933_v47  ;;  %v4974_v3 = vmul.f32 1.442695, %v4944_v0  ;;  %v5017_v10 = vsel %vm4881_vm6, %v9153_v2, 0.0 }
 0xb05   : > { %v4984_v31 = vsel %vm4881_vm6, %v9155_v58, 0.0  ;;  %5018 = vadd.xlane.f32.xlu0 %v5017_v10 }
 0xb06   : > { %7974 = vpow2.f32 %v4952_v57  ;;  %4985 = vadd.xlane.f32.xlu1 %v4984_v31 }
 0xb07   : > { %7976 = vpow2.f32 %v4974_v3 }
 0xb09   : > { %v4905_v35 = vpop.xlane.xlu0 %4904 }
 0xb0a   : > { %v4937_v5 = vsub.f32 %v9081_v55, %v4905_v35 }
 0xb0b   : > { %v9162_v6 = vpop.eup %7970 }
 0xb0c   : > { %v9164_v8 = vpop.eup %7972  ;;  %v4960_v14 = vmul.f32 1.442695, %v4937_v5  ;;  %v5008_v7 = vsel %vm4881_vm6, %v9162_v6, 0.0 }
 0xb0d   : > { %v4917_v63 = vpop.xlane.xlu1 %4916  ;;  %5009 = vadd.xlane.f32.xlu1 %v5008_v7  ;;  %v4996_v26 = vsel %vm4881_vm6, %v9164_v8, 0.0 }
 0xb0e   : > { %7978 = vpow2.f32 %v4960_v14  ;;  %v4941_v15 = vsub.f32 %v9085_v51, %v4917_v63  ;;  %4997 = vadd.xlane.f32.xlu0 %v4996_v26 }
 0xb10   : > { %v4968_v43 = vmul.f32 1.442695, %v4941_v15 }
 0xb11   : > { %v4980_v24 = vpop.xlane.xlu1 %4979 }
 0xb12   : > { %7980 = vpow2.f32 %v4968_v43  ;;  %v4929_v55 = vpop.xlane.xlu0 %4928 }
 0xb13   : > { %v9171_v22 = vpop.eup %7974  ;;  %7982 = vrcp.f32 %v4980_v24  ;;  %v4945_v32 = vsub.f32 %v9093_v44, %v4929_v55 }
 0xb14   : > { %v9174_v39 = vpop.eup %7976  ;;  %v4987_v45 = vsel %vm4881_vm6, %v9171_v22, 0.0 }
 0xb15   : > { %v4976_v48 = vmul.f32 1.442695, %v4945_v32  ;;  %4988 = vadd.xlane.f32.xlu1 %v4987_v45  ;;  %v5020_v51 = vsel %vm4881_vm6, %v9174_v39, 0.0 }
 0xb16   : > { %5021 = vadd.xlane.f32.xlu0 %v5020_v51 }
 0xb17   : > { %7984 = vpow2.f32 %v4976_v48 }
 0xb1b   : > { %v9180_v49 = vpop.eup %7978 }
 0xb1c   : > { %v4999_v47 = vsel %vm4881_vm6, %v9180_v49, 0.0 }
 0xb1d   : > { %5000 = vadd.xlane.f32.xlu0 %v4999_v47 }
 0xb1f   : > { %v9184_v0 = vpop.eup %7980 }
 0xb20   : > { %v7983_v44 = vpop.eup %7982  ;;  %v5011_v57 = vsel %vm4881_vm6, %v9184_v0, 0.0 }
 0xb21   : > { %5012 = vadd.xlane.f32.xlu1 %v5011_v57  ;;  %v5042_v3 = vmul.f32 %v7983_v44, %v9089_v33  ;;  %v9206_v33 = vpop.permute.xlu0 %6050 }
 0xb23   : > { %7662 = vmatmul.mubr.msk.f32.vlgmr.msra.gmra.mxu1 %vm4881_vm6, %v5042_v3 }
 0xb24   : > { %v9190_v10 = vpop.eup %7984  ;;  %7672 = vmatpush3.msra.mxu1 %v9039_v41  ;;  %7675 = vmatprep.mubr.msk.f32.mxu1 %vm8078_vm1, %v8077_v4  ;;  %v9204_v41 = vpop.permute.xlu1 %6129 }
 0xb25   : > { %7673 = vmatprep.subr.mxu1 %v8077_v4  ;;  %v5023_v31 = vsel %vm4881_vm6, %v9190_v10, 0.0  ;;  %v9210_v5 = vpop.permute.xlu0 %6210 }
 0xb26   : > { %7674 = vmatpush3.msra.mxu1 %v9045_v38  ;;  %5024 = vadd.xlane.f32.xlu0 %v5023_v31 }
 0xb27   : > { %7685 = vmatprep.subr.mxu1 %v8077_v4 }
 0xb28   : > { %v9208_v35 = vpop.permute.xlu1 %6289 }
 0xb32   : > { %6287 = vrot.lane.b32.xlu1 %v8805_v28, %s8084_s9 }
 0xb3c   : > { %6208 = vrot.lane.b32.xlu0 %v8780_v16, %s8084_s9 }
 0xb4a   : > { %v5004_v14 = vpop.xlane.xlu1 %5003 }
 0xb4b   : > { %7986 = vrcp.f32 %v5004_v14  ;;  %v4992_v38 = vpop.xlane.xlu0 %4991 }
 0xb4c   : > { %7988 = vrcp.f32 %v4992_v38 }
 0xb4f   : > { %v5016_v7 = vpop.xlane.xlu0 %5015 }
 0xb50   : > { %7990 = vrcp.f32 %v5016_v7 }
 0xb58   : > { %v7987_v63 = vpop.eup %7986 }
 0xb59   : > { %v7989_v26 = vpop.eup %7988  ;;  %v5050_v28 = vmul.f32 %v7987_v63, %v9120_v1 }
 0xb5a   : > { %v5046_v16 = vmul.f32 %v7989_v26, %v9122_v17 }
 0xb5b   : > { %7676 = vmatmul.mubr.msk.f32.vlgmr.msra.gmra.mxu1 %vm4881_vm6, %v5050_v28 }
 0xb5c   : > { %7686 = vmatpush3.msra.mxu1 %v9015_v12  ;;  %7669 = vmatmul.mubr.msk.f32.vlgmr.msra.gmra.mxu0 %vm4881_vm6, %v5046_v16 }
 0xb5d   : > { %v7991_v15 = vpop.eup %7990  ;;  %7679 = vmatpush3.msra.mxu0 %v9013_v13  ;;  %7687 = vmatprep.subr.mxu1 %v8077_v4 }
 0xb5e   : > { %7680 = vmatprep.subr.mxu0 %v8077_v4  ;;  %7688 = vmatpush3.msra.mxu1 %v9017_v30  ;;  %v5054_v43 = vmul.f32 %v7991_v15, %v9128_v9 }
 0xb5f   : > { %7681 = vmatpush3.msra.mxu0 %v9103_v56  ;;  %7682 = vmatprep.mubr.msk.f32.mxu0 %vm8078_vm1, %v8077_v4 }
 0xb60   : > { %7692 = vmatprep.subr.mxu0 %v8077_v4  ;;  %7683 = vmatmul.mubr.msk.f32.vlgmr.msra.gmra.mxu0 %vm4881_vm6, %v5054_v43 }
 0xb61   : > { %7693 = vmatpush3.msra.mxu0 %v9057_v40  ;;  %7689 = vmatprep.mubr.msk.f32.mxu1 %vm8078_vm1, %v8077_v4 }
 0xb62   : > { %7694 = vmatprep.subr.mxu0 %v8077_v4  ;;  %7699 = vmatprep.subr.mxu1 %v8077_v4 }
 0xb63   : > { %7695 = vmatpush3.msra.mxu0 %v9067_v62  ;;  %7696 = vmatprep.mubr.msk.f32.mxu0 %vm8078_vm1, %v8077_v4 }
 0xb64   : > { %7706 = vmatprep.subr.mxu0 %v8077_v4 }
 0xb72   : > { %v4983_v13 = vpop.xlane.xlu1 %4982 }
 0xb73   : > { %7992 = vrcp.f32 %v4983_v13  ;;  %v3575_v13 = vld [vmem:[#allocation3 + $0xb0] sm:$0xff] }
 0xb7a   : > { %v4995_v12 = vpop.xlane.xlu0 %4994 }
 0xb7b   : > { %7994 = vrcp.f32 %v4995_v12  ;;  %v3574_v12 = vld [vmem:[#allocation3 + $0x80] sm:$0xff] }
 0xb80   : > { %v7993_v30 = vpop.eup %7992 }
 0xb81   : > { %v5043_v40 = vmul.f32 %v7993_v30, %v9134_v36 }
 0xb83   : > { %7690 = vmatmul.mubr.msk.f32.vlgmr.msra.gmra.mxu1 %vm4881_vm6, %v5043_v40  ;;  %v3573_v40 = vld [vmem:[#allocation3 + $0x50] sm:$0xff] }
 0xb84   : > { %7700 = vmatpush3.msra.mxu1 %v9019_v23  ;;  %7703 = vmatprep.mubr.msk.f32.mxu1 %vm8078_vm1, %v8077_v4 }
 0xb85   : > { %7701 = vmatprep.subr.mxu1 %v8077_v4 }
 0xb86   : > { %7702 = vmatpush3.msra.mxu1 %v9021_v27  ;;  %v5007_v62 = vpop.xlane.xlu1 %5006 }
 0xb87   : > { %7996 = vrcp.f32 %v5007_v62  ;;  %7713 = vmatprep.subr.mxu1 %v8077_v4  ;;  %v3572_v62 = vld [vmem:[#allocation3 + $0x20] sm:$0xff] }
 0xb88   : > { %v7995_v56 = vpop.eup %7994 }
 0xb89   : > { %v5047_v1 = vmul.f32 %v7995_v56, %v9139_v60 }
 0xb8b   : > { %7697 = vmatmul.mubr.msk.f32.vlgmr.msra.gmra.mxu0 %vm4881_vm6, %v5047_v1 }
 0xb8c   : > { %7707 = vmatpush3.msra.mxu0 %v9073_v11  ;;  %7710 = vmatprep.mubr.msk.f32.mxu0 %vm8078_vm1, %v8077_v4 }
 0xb8d   : > { %7708 = vmatprep.subr.mxu0 %v8077_v4 }
 0xb8e   : > { %7709 = vmatpush3.msra.mxu0 %v9107_v61  ;;  %v5019_v23 = vpop.xlane.xlu0 %5018 }
 0xb8f   : > { %v4986_v27 = vpop.xlane.xlu1 %4985  ;;  %7998 = vrcp.f32 %v5019_v23  ;;  %7720 = vmatprep.subr.mxu0 %v8077_v4 }
 0xb90   : > { %8000 = vrcp.f32 %v4986_v27 }
 0xb94   : > { %v7997_v17 = vpop.eup %7996 }
 0xb95   : > { %v5051_v9 = vmul.f32 %v7997_v17, %v9147_v25 }
 0xb96   : > { %v5010_v36 = vpop.xlane.xlu1 %5009 }
 0xb97   : > { %8002 = vrcp.f32 %v5010_v36  ;;  %v4998_v60 = vpop.xlane.xlu0 %4997  ;;  %7704 = vmatmul.mubr.msk.f32.vlgmr.msra.gmra.mxu1 %vm4881_vm6, %v5051_v9 }
 0xb98   : > { %8004 = vrcp.f32 %v4998_v60  ;;  %7714 = vmatpush3.msra.mxu1 %v9027_v34  ;;  %7717 = vmatprep.mubr.msk.f32.mxu1 %vm8078_vm1, %v8077_v4 }
 0xb99   : > { %7715 = vmatprep.subr.mxu1 %v8077_v4 }
 0xb9a   : > { %7716 = vmatpush3.msra.mxu1 %v9033_v42 }
 0xb9b   : > { %7727 = vmatprep.subr.mxu1 %v8077_v4 }
 0xb9c   : > { %v7999_v11 = vpop.eup %7998 }
 0xb9d   : > { %v8001_v61 = vpop.eup %8000  ;;  %v5055_v25 = vmul.f32 %v7999_v11, %v9153_v2 }
 0xb9e   : > { %v4989_v24 = vpop.xlane.xlu1 %4988  ;;  %v5044_v55 = vmul.f32 %v8001_v61, %v9155_v58 }
 0xb9f   : > { %8006 = vrcp.f32 %v4989_v24  ;;  %v5022_v32 = vpop.xlane.xlu0 %5021  ;;  %7711 = vmatmul.mubr.msk.f32.vlgmr.msra.gmra.mxu0 %vm4881_vm6, %v5055_v25 }
 0xba0   : > { %8008 = vrcp.f32 %v5022_v32  ;;  %7718 = vmatmul.mubr.msk.f32.vlgmr.msra.gmra.mxu1 %vm4881_vm6, %v5044_v55  ;;  %7721 = vmatpush3.msra.mxu0 %v9079_v19 }
 0xba1   : > { %7728 = vmatpush3.msra.mxu1 %v9035_v21  ;;  %7722 = vmatprep.subr.mxu0 %v8077_v4 }
 0xba2   : > { %7729 = vmatprep.subr.mxu1 %v8077_v4  ;;  %7723 = vmatpush3.msra.mxu0 %v9091_v37 }
 0xba3   : > { %7730 = vmatpush3.msra.mxu1 %v9043_v46  ;;  %7724 = vmatprep.mubr.msk.f32.mxu0 %vm8078_vm1, %v8077_v4 }
 0xba4   : > { %v8003_v34 = vpop.eup %8002  ;;  %7731 = vmatprep.mubr.msk.f32.mxu1 %vm8078_vm1, %v8077_v4  ;;  %7734 = vmatprep.subr.mxu0 %v8077_v4 }
 0xba5   : > { %v8005_v42 = vpop.eup %8004  ;;  %7741 = vmatprep.subr.mxu1 %v8077_v4  ;;  %v5052_v21 = vmul.f32 %v8003_v34, %v9162_v6 }
 0xba6   : > { %v5001_v19 = vpop.xlane.xlu0 %5000  ;;  %v5048_v2 = vmul.f32 %v8005_v42, %v9164_v8 }
 0xba7   : > { %8010 = vrcp.f32 %v5001_v19  ;;  %7732 = vmatmul.mubr.msk.f32.vlgmr.msra.gmra.mxu1 %vm4881_vm6, %v5052_v21 }
 0xba8   : > { %7725 = vmatmul.mubr.msk.f32.vlgmr.msra.gmra.mxu0 %vm4881_vm6, %v5048_v2  ;;  %7742 = vmatpush3.msra.mxu1 %v9053_v50 }
 0xba9   : > { %7735 = vmatpush3.msra.mxu0 %v9099_v52  ;;  %7743 = vmatprep.subr.mxu1 %v8077_v4 }
 0xbaa   : > { %7736 = vmatprep.subr.mxu0 %v8077_v4  ;;  %7744 = vmatpush3.msra.mxu1 %v9206_v33  ;;  %v5013_v46 = vpop.xlane.xlu1 %5012 }
 0xbab   : > { %7737 = vmatpush3.msra.mxu0 %v9113_v18  ;;  %8012 = vrcp.f32 %v5013_v46  ;;  %7745 = vmatprep.mubr.msk.f32.mxu1 %vm8078_vm1, %v8077_v4 }
 0xbac   : > { %v8007_v37 = vpop.eup %8006  ;;  %7738 = vmatprep.mubr.msk.f32.mxu0 %vm8078_vm1, %v8077_v4  ;;  %7748 = vmatprep.subr.mxu0 %v8077_v4 }
 0xbad   : > { %v8009_v50 = vpop.eup %8008  ;;  %7755 = vmatprep.subr.mxu1 %v8077_v4  ;;  %v5045_v52 = vmul.f32 %v8007_v37, %v9171_v22 }
 0xbae   : > { %v5056_v58 = vmul.f32 %v8009_v50, %v9174_v39  ;;  %v6288_v39 = vpop.permute.xlu1 %6287 }
 0xbaf   : > { %7746 = vmatmul.mubr.msk.f32.vlgmr.msra.gmra.mxu1 %vm4881_vm6, %v5045_v52  ;;  %v5025_v18 = vpop.xlane.xlu0 %5024 }
 0xbb0   : > { %7739 = vmatmul.mubr.msk.f32.vlgmr.msra.gmra.mxu0 %vm4881_vm6, %v5056_v58  ;;  %7756 = vmatpush3.msra.mxu1 %v9210_v5  ;;  %8014 = vrcp.f32 %v5025_v18 }
 0xbb1   : > { %7749 = vmatpush3.msra.mxu0 %v9101_v54  ;;  %7757 = vmatprep.subr.mxu1 %v8077_v4 }
 0xbb2   : > { %7750 = vmatprep.subr.mxu0 %v8077_v4  ;;  %7752 = vmatprep.mubr.msk.f32.mxu0 %vm8078_vm1, %v8077_v4 }
 0xbb3   : > { %7751 = vmatpush3.msra.mxu0 %v9204_v41  ;;  %v6209_v6 = vpop.permute.xlu0 %6208  ;;  %7759 = vmatprep.mubr.msk.f32.mxu1 %vm8078_vm1, %v8077_v4 }
 0xbb4   : > { %v8011_v8 = vpop.eup %8010  ;;  %7758 = vmatpush3.msra.mxu1 %v6209_v6  ;;  %7762 = vmatprep.subr.mxu0 %v8077_v4  ;;  %v7002_v6 = vld [vmem:[%s9508_s4 + $0x108] sm:$0xff] }
 0xbb5   : > { %v5049_v22 = vmul.f32 %v8011_v8, %v9180_v49  ;;  %7769 = vmatprep.subr.mxu1 %v3575_v13 }
 0xbb7   : > { %7753 = vmatmul.mubr.msk.f32.vlgmr.msra.gmra.mxu0 %vm4881_vm6, %v5049_v22  ;;  %v7001_v22 = vld [vmem:[%s9508_s4 + $0x100] sm:$0xff] }
 0xbb8   : > { %v8013_v54 = vpop.eup %8012  ;;  %7763 = vmatpush3.msra.mxu0 %v9208_v35  ;;  %7766 = vmatprep.mubr.msk.f32.mxu0 %vm8078_vm1, %v8077_v4 }
 0xbb9   : > { %7764 = vmatprep.subr.mxu0 %v8077_v4  ;;  %v5053_v45 = vmul.f32 %v8013_v54, %v9184_v0 }
 0xbba   : > { %7765 = vmatpush3.msra.mxu0 %v6288_v39 }
 0xbbb   : > { %7760 = vmatmul.mubr.msk.f32.vlgmr.msra.gmra.mxu1 %vm4881_vm6, %v5053_v45 }
 0xbbc   : > { %7770 = vmatpush3.msra.mxu1 %v3575_v13 }
 0xbbd   : > { %v8015_v48 = vpop.eup %8014  ;;  %7771 = vmatprep.subr.mxu1 %v3574_v12 }
 0xbbe   : > { %v5057_v51 = vmul.f32 %v8015_v48, %v9190_v10  ;;  %7772 = vmatpush3.msra.mxu1 %v3574_v12 }
 0xbbf   : > { %7773 = vmatprep.subr.mxu1 %v3573_v40 }
 0xbc0   : > { %7767 = vmatmul.mubr.msk.f32.vlgmr.msra.gmra.mxu0 %vm4881_vm6, %v5057_v51  ;;  %7774 = vmatpush3.msra.mxu1 %v3573_v40 }
 0xbc1   : > { %7775 = vmatprep.subr.mxu1 %v3572_v62 }
 0xbc2   : > { %7776 = vmatpush3.msra.mxu1 %v3572_v62 }
 0xbe3   : > { %v5133_v49 = vpop.f32.mrf.mxu1 }
 0xbe4   : > { %5374 = vst.msk [vmem:[#allocation2] sm:$0xff] %vm462_vm2, %v5133_v49 }
 0xbe5   : > { %v7663_v47 = vpop.f32.mrf.mxu1 }
 0xc1b   : > { %v5291_v44 = vpop.f32.mrf.mxu1 }
 0xc1c   : > { %5376 = vst.msk [vmem:[#allocation2 + $0x10] sm:$0xff] %vm462_vm2, %v5291_v44  ;;  %v5212_v57 = vpop.f32.mrf.mxu0  ;;  %v7004_v44 = vld [vmem:[%s9508_s4 + $0x118] sm:$0xff] }
 0xc1d   : > { %5375 = vst.msk [vmem:[#allocation2 + $0x8] sm:$0xff] %vm462_vm2, %v5212_v57  ;;  %v7677_v4 = vpop.f32.mrf.mxu1 }
 0xc1e   : > { %v7670_v0 = vpop.f32.mrf.mxu0 }
 0xc20   : > { %v5370_v3 = vpop.f32.mrf.mxu0 }
 0xc21   : > { %5377 = vst.msk [vmem:[#allocation2 + $0x18] sm:$0xff] %vm462_vm2, %v5370_v3 }
 0xc22   : > { %v7684_v31 = vpop.f32.mrf.mxu0 }
 0xc43   : > { %v5453_v41 = vpop.f32.mrf.mxu1 }
 0xc44   : > { %5698 = vrot.lane.b32.xlu0 %v5453_v41, %s8090_s15 }
 0xc45   : > { %v7691_v10 = vpop.f32.mrf.mxu1 }
 0xc4b   : > { %v5532_v33 = vpop.f32.mrf.mxu0 }
 0xc4c   : > { %5700 = vrot.lane.b32.xlu1 %v5532_v33, %s8090_s15 }
 0xc4d   : > { %v7698_v35 = vpop.f32.mrf.mxu0 }
 0xc57   : > { %v5611_v5 = vpop.f32.mrf.mxu1 }
 0xc58   : > { %5702 = vrot.lane.b32.xlu0 %v5611_v5, %s8090_s15 }
 0xc59   : > { %v7705_v14 = vpop.f32.mrf.mxu1 }
 0xc5f   : > { %v5690_v38 = vpop.f32.mrf.mxu0 }
 0xc60   : > { %v5789_v7 = vpop.f32.mrf.mxu1  ;;  %5704 = vrot.lane.b32.xlu1 %v5690_v38, %s8090_s15 }
 0xc61   : > { %6034 = vrot.lane.b32.xlu0 %v5789_v7, %s8091_s16  ;;  %v7712_v63 = vpop.f32.mrf.mxu0 }
 0xc62   : > { %v7719_v26 = vpop.f32.mrf.mxu1 }
 0xc67   : > { %v5947_v28 = vpop.f32.mrf.mxu1 }
 0xc68   : > { %v5868_v16 = vpop.f32.mrf.mxu0  ;;  %6038 = vrot.lane.b32.xlu0 %v5947_v28, %s8091_s16 }
 0xc69   : > { %6036 = vrot.lane.b32.xlu1 %v5868_v16, %s8091_s16  ;;  %v7733_v15 = vpop.f32.mrf.mxu1 }
 0xc6a   : > { %v7726_v43 = vpop.f32.mrf.mxu0 }
 0xc6f   : > { %v6125_v30 = vpop.f32.mrf.mxu1 }
 0xc70   : > { %v6026_v56 = vpop.f32.mrf.mxu0  ;;  %6370 = vrot.lane.b32.xlu0 %v6125_v30, %s8092_s17 }
 0xc71   : > { %6040 = vrot.lane.b32.xlu1 %v6026_v56, %s8091_s16  ;;  %v7747_v1 = vpop.f32.mrf.mxu1 }
 0xc72   : > { %v7740_v23 = vpop.f32.mrf.mxu0  ;;  %v6564_v1 = vld [vmem:[#allocation3 + $0xb8] sm:$0xff] }
 0xc73   : > { %v6563_v23 = vld [vmem:[#allocation3 + $0x88] sm:$0xff]  ;;  %7783 = vmatprep.subr.mxu0 %v6564_v1 }
 0xc74   : > { %7784 = vmatpush3.msra.mxu0 %v6564_v1 }
 0xc75   : > { %7785 = vmatprep.subr.mxu0 %v6563_v23 }
 0xc76   : > { %7786 = vmatpush3.msra.mxu0 %v6563_v23 }
 0xc77   : > { %v6204_v27 = vpop.f32.mrf.mxu0 }
 0xc78   : > { %6372 = vrot.lane.b32.xlu1 %v6204_v27, %s8092_s17  ;;  %v6562_v27 = vld [vmem:[#allocation3 + $0x58] sm:$0xff] }
 0xc79   : > { %v7754_v17 = vpop.f32.mrf.mxu0  ;;  %7787 = vmatprep.subr.mxu0 %v6562_v27 }
 0xc7a   : > { %v6561_v17 = vld [vmem:[#allocation3 + $0x28] sm:$0xff]  ;;  %7788 = vmatpush3.msra.mxu0 %v6562_v27 }
 0xc7b   : > { %v6283_v9 = vpop.f32.mrf.mxu1  ;;  %7789 = vmatprep.subr.mxu0 %v6561_v17 }
 0xc7c   : > { %6374 = vrot.lane.b32.xlu0 %v6283_v9, %s8092_s17  ;;  %7790 = vmatpush3.msra.mxu0 %v6561_v17 }
 0xc7d   : > { %v7761_v36 = vpop.f32.mrf.mxu1 }
 0xc80   : > { %v6362_v60 = vpop.f32.mrf.mxu0 }
 0xc81   : > { %6376 = vrot.lane.b32.xlu1 %v6362_v60, %s8092_s17 }
 0xc82   : > { %v7768_v11 = vpop.f32.mrf.mxu0 }
 0xcb6   : > { %v5699_v61 = vpop.permute.xlu0 %5698 }
 0xcb7   : > { %5710 = vst.msk [vmem:[#allocation2] sm:$0xff] %vm2508_vm3, %v5699_v61 }
 0xcbe   : > { %v5701_v25 = vpop.permute.xlu1 %5700 }
 0xcbf   : > { %5711 = vst.msk [vmem:[#allocation2 + $0x8] sm:$0xff] %vm2508_vm3, %v5701_v25 }
 0xcca   : > { %v5703_v24 = vpop.permute.xlu0 %5702 }
 0xccb   : > { %5712 = vst.msk [vmem:[#allocation2 + $0x10] sm:$0xff] %vm2508_vm3, %v5703_v24 }
 0xcd2   : > { %v5705_v55 = vpop.permute.xlu1 %5704 }
 0xcd3   : > { %5713 = vst.msk [vmem:[#allocation2 + $0x18] sm:$0xff] %vm2508_vm3, %v5705_v55  ;;  %v6035_v32 = vpop.permute.xlu0 %6034 }
 0xcd4   : > { %6046 = vst.msk [vmem:[#allocation2] sm:$0xff] %vm2833_vm4, %v6035_v32 }
 0xcda   : > { %v6039_v34 = vpop.permute.xlu0 %6038 }
 0xcdb   : > { %v6037_v42 = vpop.permute.xlu1 %6036  ;;  %6048 = vst.msk [vmem:[#allocation2 + $0x10] sm:$0xff] %vm2833_vm4, %v6039_v34 }
 0xcdc   : > { %6047 = vst.msk [vmem:[#allocation2 + $0x8] sm:$0xff] %vm2833_vm4, %v6037_v42 }
 0xce2   : > { %v6371_v21 = vpop.permute.xlu0 %6370 }
 0xce3   : > { %v6041_v19 = vpop.permute.xlu1 %6040  ;;  %6382 = vst.msk [vmem:[#allocation2] sm:$0xff] %vm3158_vm5, %v6371_v21 }
 0xce4   : > { %6049 = vst.msk [vmem:[#allocation2 + $0x18] sm:$0xff] %vm2833_vm4, %v6041_v19 }
 0xcea   : > { %v6373_v2 = vpop.permute.xlu1 %6372  ;;  %v6386_v46 = vld [vmem:[#allocation2] sm:$0xff] }
 0xceb   : > { %6383 = vst.msk [vmem:[#allocation2 + $0x8] sm:$0xff] %vm3158_vm5, %v6373_v2  ;;  %7777 = vmatprep.mubr.msk.f32.mxu1 %vm287_vm0, %v6386_v46  ;;  %v7074_v46 = vld [vmem:[%s9508_s4 + $0xa8] sm:$0xff] }
 0xcee   : > { %v6375_v37 = vpop.permute.xlu0 %6374 }
 0xcef   : > { %6384 = vst.msk [vmem:[#allocation2 + $0x10] sm:$0xff] %vm3158_vm5, %v6375_v37 }
 0xcf2   : > { %v6387_v50 = vld [vmem:[#allocation2 + $0x8] sm:$0xff] }
 0xcf3   : > { %v6377_v52 = vpop.permute.xlu1 %6376  ;;  %7778 = vmatmul.mubr.msk.f32.vlgmr.msra.gmra.mxu1 %vm287_vm0, %v6387_v50  ;;  %v7073_v50 = vld [vmem:[%s9508_s4 + $0xa0] sm:$0xff] }
 0xcf4   : > { %6385 = vst.msk [vmem:[#allocation2 + $0x18] sm:$0xff] %vm3158_vm5, %v6377_v52 }
 0xcf6   : > { %v6388_v58 = vld [vmem:[#allocation2 + $0x10] sm:$0xff] }
 0xcf7   : > { %7780 = vmatprep.mubr.msk.f32.mxu1 %vm287_vm0, %v6388_v58  ;;  %v7077_v58 = vld [vmem:[%s9508_s4 + $0xc0] sm:$0xff] }
 0xcfb   : > { %v6389_v18 = vld [vmem:[#allocation2 + $0x18] sm:$0xff] }
 0xcfc   : > { %7781 = vmatmul.mubr.msk.f32.gmra.mxu1 %vm287_vm0, %v6389_v18 }
 0xdb3   : > { %v7779_v8 = vpop.f32.mrf.mxu1 }
 0xdb4   : > { %v6474_v54 = vadd.f32 %v7779_v8, %v7002_v6  ;;  %v7078_v8 = vld [vmem:[%s9508_s4 + $0xc8] sm:$0xff] }
 0xdb5   : > { %v6468_v39 = vpop.f32.mrf.mxu1 }
 0xdb6   : > { %v9355_v45 = vadd.f32 %v6474_v54, %v8661_v29  ;;  %v6469_v48 = vadd.f32 %v7001_v22, %v6468_v39  ;;  %v7003_v29 = vld [vmem:[%s9508_s4 + $0x110] sm:$0xff] }
 0xdb8   : > { %v9358_v51 = vadd.f32 %v6469_v48, %v8670_v53  ;;  %v6504_v49 = vsel %vm287_vm0, %v9355_v45, 0.0  ;;  %v7075_v48 = vld [vmem:[%s9508_s4 + $0xb0] sm:$0xff] }
 0xdb9   : > { %6505 = vadd.xlane.f32.xlu1 %v6504_v49 }
 0xdba   : > { %v6501_v47 = vsel %vm287_vm0, %v9358_v51, 0.0 }
 0xdbb   : > { %6502 = vadd.xlane.f32.xlu0 %v6501_v47  ;;  %v7079_v47 = vld [vmem:[%s9508_s4 + $0xd0] sm:$0xff] }
 0xdbc   : > { %v7782_v57 = vpop.f32.mrf.mxu1 }
 0xdbd   : > { %v6484_v53 = vadd.f32 %v7782_v57, %v7004_v44 }
 0xdbe   : > { %v6478_v4 = vpop.f32.mrf.mxu1 }
 0xdbf   : > { %v6479_v0 = vadd.f32 %v7003_v29, %v6478_v4  ;;  %v9374_v31 = vadd.f32 %v6484_v53, %v8680_v20  ;;  %v7076_v29 = vld [vmem:[%s9508_s4 + $0xb8] sm:$0xff] }
 0xdc1   : > { %v9371_v3 = vadd.f32 %v6479_v0, %v8677_v59  ;;  %v6510_v10 = vsel %vm287_vm0, %v9374_v31, 0.0  ;;  %v7080_v0 = vld [vmem:[%s9508_s4 + $0xd8] sm:$0xff] }
 0xdc3   : > { %v6507_v41 = vsel %vm287_vm0, %v9371_v3, 0.0 }
 0xdc4   : > { %6508 = vadd.xlane.f32.xlu0 %v6507_v41 }
 0xdc8   : > { %6511 = vadd.xlane.f32.xlu0 %v6510_v10 }
 0xe42   : > { %v6506_v33 = vpop.xlane.xlu1 %6505 }
 0xe43   : > { %v6514_v35 = vmul.f32 0.03125, %v6506_v33  ;;  %v6717_v33 = vld [vmem:[%s9507_s3 + $0x78] sm:$0xff] }
 0xe44   : > { %v6503_v5 = vpop.xlane.xlu0 %6502  ;;  %7797 = vmatprep.subr.mxu1 %v6717_v33 }
 0xe45   : > { %v6518_v14 = vsub.f32 %v9355_v45, %v6514_v35  ;;  %v6513_v38 = vmul.f32 0.03125, %v6503_v5  ;;  %7798 = vmatpush3.msra.mxu1 %v6717_v33  ;;  %v6716_v35 = vld [vmem:[%s9507_s3 + $0x70] sm:$0xff]  ;;  %v6715_v5 = vld [vmem:[%s9507_s3 + $0x68] sm:$0xff] }
 0xe46   : > { %7799 = vmatprep.subr.mxu1 %v6716_v35 }
 0xe47   : > { %v6517_v59 = vsub.f32 %v9358_v51, %v6513_v38  ;;  %v6522_v7 = vmul.f32 %v6518_v14, %v6518_v14  ;;  %7800 = vmatpush3.msra.mxu1 %v6716_v35  ;;  %v6713_v38 = vld [vmem:[%s9507_s3 + $0x58] sm:$0xff] }
 0xe48   : > { %7801 = vmatprep.subr.mxu1 %v6715_v5 }
 0xe49   : > { %v6528_v20 = vsel %vm287_vm0, %v6522_v7, 0.0  ;;  %v6521_v63 = vmul.f32 %v6517_v59, %v6517_v59  ;;  %7802 = vmatpush3.msra.mxu1 %v6715_v5  ;;  %v6711_v7 = vld [vmem:[%s9507_s3 + $0x48] sm:$0xff] }
 0xe4a   : > { %6529 = vadd.xlane.f32.xlu0 %v6528_v20  ;;  %v6710_v20 = vld [vmem:[%s9507_s3 + $0x40] sm:$0xff] }
 0xe4b   : > { %v6525_v26 = vsel %vm287_vm0, %v6521_v63, 0.0  ;;  %v6709_v63 = vld [vmem:[%s9507_s3 + $0x38] sm:$0xff] }
 0xe4c   : > { %6526 = vadd.xlane.f32.xlu1 %v6525_v26  ;;  %v6708_v26 = vld [vmem:[%s9507_s3 + $0x30] sm:$0xff] }
 0xe4d   : > { %v6509_v28 = vpop.xlane.xlu0 %6508 }
 0xe4e   : > { %v6515_v16 = vmul.f32 0.03125, %v6509_v28  ;;  %v6707_v28 = vld [vmem:[%s9507_s3 + $0x28] sm:$0xff] }
 0xe50   : > { %v6519_v15 = vsub.f32 %v9371_v3, %v6515_v16  ;;  %v6706_v16 = vld [vmem:[%s9507_s3 + $0x20] sm:$0xff] }
 0xe51   : > { %v6512_v43 = vpop.xlane.xlu0 %6511 }
 0xe52   : > { %v6516_v13 = vmul.f32 0.03125, %v6512_v43  ;;  %v6523_v12 = vmul.f32 %v6519_v15, %v6519_v15  ;;  %v6704_v43 = vld [vmem:[%s9507_s3 + $0x10] sm:$0xff] }
 0xe54   : > { %v6520_v30 = vsub.f32 %v9374_v31, %v6516_v13  ;;  %v6531_v40 = vsel %vm287_vm0, %v6523_v12, 0.0  ;;  %v6703_v13 = vld [vmem:[%s9507_s3 + $0x8] sm:$0xff]  ;;  %v6702_v12 = vld [vmem:[%s9507_s3] sm:$0xff] }
 0xe55   : > { %6532 = vadd.xlane.f32.xlu1 %v6531_v40 }
 0xe56   : > { %v6524_v62 = vmul.f32 %v6520_v30, %v6520_v30 }
 0xe58   : > { %v6534_v56 = vsel %vm287_vm0, %v6524_v62, 0.0  ;;  %v6565_v62 = vld [vmem:[%s9508_s4] sm:$0xff] }
 0xe59   : > { %6535 = vadd.xlane.f32.xlu0 %v6534_v56 }
 0xed3   : > { %v6530_v9 = vpop.xlane.xlu0 %6529 }
 0xed4   : > { %v6538_v36 = vmul.f32 0.03125, %v6530_v9 }
 0xed5   : > { %v6527_v60 = vpop.xlane.xlu1 %6526 }
 0xed6   : > { %v6542_v11 = vadd.f32 1e-05, %v6538_v36  ;;  %v6537_v61 = vmul.f32 0.03125, %v6527_v60 }
 0xed8   : > { %8016 = vrsqrt.f32 %v6542_v11  ;;  %v6541_v25 = vadd.f32 1e-05, %v6537_v61 }
 0xeda   : > { %8018 = vrsqrt.f32 %v6541_v25  ;;  %v6568_v25 = vld [vmem:[%s9508_s4 + $0x18] sm:$0xff] }
 0xede   : > { %v6533_v24 = vpop.xlane.xlu1 %6532 }
 0xedf   : > { %v6539_v55 = vmul.f32 0.03125, %v6533_v24 }
 0xee1   : > { %v6543_v32 = vadd.f32 1e-05, %v6539_v55 }
 0xee2   : > { %v6536_v34 = vpop.xlane.xlu0 %6535 }
 0xee3   : > { %8020 = vrsqrt.f32 %v6543_v32  ;;  %v6540_v42 = vmul.f32 0.03125, %v6536_v34  ;;  %v6567_v34 = vld [vmem:[%s9508_s4 + $0x10] sm:$0xff] }
 0xee5   : > { %v8017_v21 = vpop.eup %8016  ;;  %v6544_v19 = vadd.f32 1e-05, %v6540_v42 }
 0xee6   : > { %v6550_v2 = vmul.f32 %v8017_v21, %v6518_v14  ;;  %v6714_v14 = vld [vmem:[%s9507_s3 + $0x60] sm:$0xff] }
 0xee7   : > { %v8019_v37 = vpop.eup %8018  ;;  %8022 = vrsqrt.f32 %v6544_v19  ;;  %7803 = vmatprep.subr.mxu1 %v6714_v14 }
 0xee8   : > { %v6549_v52 = vmul.f32 %v8019_v37, %v6517_v59  ;;  %v6554_v18 = vmul.f32 %v7074_v46, %v6550_v2  ;;  %7804 = vmatpush3.msra.mxu1 %v6714_v14  ;;  %v6712_v59 = vld [vmem:[%s9507_s3 + $0x50] sm:$0xff] }
 0xee9   : > { %7805 = vmatprep.subr.mxu1 %v6713_v38 }
 0xeea   : > { %v6553_v6 = vmul.f32 %v7073_v50, %v6549_v52  ;;  %v6558_v54 = vadd.f32 %v7078_v8, %v6554_v18  ;;  %7806 = vmatpush3.msra.mxu1 %v6713_v38 }
 0xeeb   : > { %7807 = vmatprep.subr.mxu1 %v6712_v59 }
 0xeec   : > { %v6557_v22 = vadd.f32 %v7077_v58, %v6553_v6  ;;  %7808 = vmatpush3.msra.mxu1 %v6712_v59 }
 0xeed   : > { %7809 = vmatprep.subr.mxu1 %v6711_v7 }
 0xeee   : > { %7791 = vmatprep.mubr.msk.f32.mxu0 %vm287_vm0, %v6557_v22  ;;  %7810 = vmatpush3.msra.mxu1 %v6711_v7 }
 0xeef   : > { %7792 = vmatmul.mubr.msk.f32.vlgmr.msra.gmra.mxu0 %vm287_vm0, %v6558_v54  ;;  %7811 = vmatprep.subr.mxu1 %v6710_v20 }
 0xef0   : > { %v8021_v39 = vpop.eup %8020  ;;  %7812 = vmatpush3.msra.mxu1 %v6710_v20  ;;  %v7085_v20 = vld [vmem:[%s9508_s4 + $0x120] sm:$0xff] }
 0xef1   : > { %v6551_v49 = vmul.f32 %v8021_v39, %v6519_v15  ;;  %7813 = vmatprep.subr.mxu1 %v6709_v63  ;;  %v6705_v15 = vld [vmem:[%s9507_s3 + $0x18] sm:$0xff] }
 0xef2   : > { %7814 = vmatpush3.msra.mxu1 %v6709_v63  ;;  %v7086_v63 = vld [vmem:[%s9508_s4 + $0x128] sm:$0xff] }
 0xef3   : > { %v6555_v44 = vmul.f32 %v7075_v48, %v6551_v49  ;;  %7815 = vmatprep.subr.mxu1 %v6708_v26 }
 0xef4   : > { %v8023_v57 = vpop.eup %8022  ;;  %7816 = vmatpush3.msra.mxu1 %v6708_v26 }
 0xef5   : > { %v6559_v4 = vadd.f32 %v7079_v47, %v6555_v44  ;;  %v6552_v53 = vmul.f32 %v8023_v57, %v6520_v30  ;;  %7817 = vmatprep.subr.mxu1 %v6707_v28  ;;  %v6566_v30 = vld [vmem:[%s9508_s4 + $0x8] sm:$0xff] }
 0xef6   : > { %7818 = vmatpush3.msra.mxu1 %v6707_v28 }
 0xef7   : > { %7794 = vmatprep.mubr.msk.f32.mxu0 %vm287_vm0, %v6559_v4  ;;  %v6556_v41 = vmul.f32 %v7076_v29, %v6552_v53  ;;  %7819 = vmatprep.subr.mxu1 %v6706_v16 }
 0xef8   : > { %7820 = vmatpush3.msra.mxu1 %v6706_v16 }
 0xef9   : > { %v6560_v10 = vadd.f32 %v7080_v0, %v6556_v41  ;;  %7821 = vmatprep.subr.mxu1 %v6705_v15 }
 0xefa   : > { %7822 = vmatpush3.msra.mxu1 %v6705_v15 }
 0xefb   : > { %7795 = vmatmul.mubr.msk.f32.gmra.mxu0 %vm287_vm0, %v6560_v10  ;;  %7823 = vmatprep.subr.mxu1 %v6704_v43 }
 0xefc   : > { %7824 = vmatpush3.msra.mxu1 %v6704_v43 }
 0xefd   : > { %7825 = vmatprep.subr.mxu1 %v6703_v13 }
 0xefe   : > { %7826 = vmatpush3.msra.mxu1 %v6703_v13  ;;  %v7087_v13 = vld [vmem:[%s9508_s4 + $0x130] sm:$0xff] }
 0xeff   : > { %7827 = vmatprep.subr.mxu1 %v6702_v12 }
 0xf00   : > { %7828 = vmatpush3.msra.mxu1 %v6702_v12 }
 0xfaf   : > { %v7793_v40 = vpop.f32.mrf.mxu0 }
 0xfb0   : > { %v6653_v56 = vadd.f32 %v7793_v40, %v6566_v30 }
 0xfb1   : > { %v6647_v1 = vpop.f32.mrf.mxu0 }
 0xfb2   : > { %v6671_v23 = vmul.f32 0.044715, %v6653_v56  ;;  %v6648_v27 = vadd.f32 %v6647_v1, %v6565_v62  ;;  %v6667_v57 = vmul.f32 0.5, %v6653_v56 }
 0xfb4   : > { %v6675_v17 = vmul.f32 %v6671_v23, %v6653_v56  ;;  %v6670_v9 = vmul.f32 0.044715, %v6648_v27  ;;  %v6666_v47 = vmul.f32 0.5, %v6648_v27 }
 0xfb6   : > { %v6679_v36 = vmul.f32 %v6675_v17, %v6653_v56  ;;  %v6674_v60 = vmul.f32 %v6670_v9, %v6648_v27 }
 0xfb8   : > { %v6683_v11 = vadd.f32 %v6679_v36, %v6653_v56  ;;  %v6678_v61 = vmul.f32 %v6674_v60, %v6648_v27 }
 0xfba   : > { %v6687_v24 = vmul.f32 0.7978846, %v6683_v11  ;;  %v6682_v55 = vadd.f32 %v6678_v61, %v6648_v27 }
 0xfbb   : > { %v7796_v32 = vpop.f32.mrf.mxu0 }
 0xfbc   : > { %8024 = vtanh.f32 %v6687_v24  ;;  %v6663_v42 = vadd.f32 %v7796_v32, %v6568_v25  ;;  %v6686_v21 = vmul.f32 0.7978846, %v6682_v55 }
 0xfbd   : > { %v6657_v19 = vpop.f32.mrf.mxu0 }
 0xfbe   : > { %v6673_v2 = vmul.f32 0.044715, %v6663_v42  ;;  %v6658_v46 = vadd.f32 %v6657_v19, %v6567_v34  ;;  %8026 = vtanh.f32 %v6686_v21  ;;  %v6669_v35 = vmul.f32 0.5, %v6663_v42 }
 0xfc0   : > { %v6677_v37 = vmul.f32 %v6673_v2, %v6663_v42  ;;  %v6672_v50 = vmul.f32 0.044715, %v6658_v46  ;;  %v6668_v10 = vmul.f32 0.5, %v6658_v46 }
 0xfc2   : > { %v6676_v52 = vmul.f32 %v6672_v50, %v6658_v46  ;;  %v6681_v58 = vmul.f32 %v6677_v37, %v6663_v42 }
 0xfc4   : > { %v6680_v18 = vmul.f32 %v6676_v52, %v6658_v46  ;;  %v6685_v6 = vadd.f32 %v6681_v58, %v6663_v42 }
 0xfc6   : > { %v6684_v8 = vadd.f32 %v6680_v18, %v6658_v46  ;;  %v6689_v22 = vmul.f32 0.7978846, %v6685_v6 }
 0xfc8   : > { %v6688_v54 = vmul.f32 0.7978846, %v6684_v8  ;;  %8028 = vtanh.f32 %v6689_v22 }
 0xfc9   : > { %v8025_v39 = vpop.eup %8024 }
 0xfca   : > { %8030 = vtanh.f32 %v6688_v54  ;;  %v6695_v49 = vadd.f32 1.0, %v8025_v39 }
 0xfcb   : > { %v8027_v48 = vpop.eup %8026 }
 0xfcc   : > { %v6694_v44 = vadd.f32 1.0, %v8027_v48  ;;  %v6699_v4 = vmul.f32 %v6695_v49, %v6667_v57 }
 0xfce   : > { %v6698_v29 = vmul.f32 %v6694_v44, %v6666_v47 }
 0xfd0   : > { %7829 = vmatprep.mubr.f32.mxu1 %v6698_v29 }
 0xfd1   : > { %7830 = vmatmul.mubr.f32.vlgmr.msra.gmra.mxu1 %v6699_v4 }
 0xfd5   : > { %v8029_v53 = vpop.eup %8028 }
 0xfd6   : > { %v6697_v41 = vadd.f32 1.0, %v8029_v53 }
 0xfd7   : > { %v8031_v0 = vpop.eup %8030 }
 0xfd8   : > { %v6696_v33 = vadd.f32 1.0, %v8031_v0  ;;  %v6701_v14 = vmul.f32 %v6697_v41, %v6669_v35 }
 0xfda   : > { %v6700_v5 = vmul.f32 %v6696_v33, %v6668_v10 }
 0xfdc   : > { %7832 = vmatprep.mubr.f32.mxu1 %v6700_v5 }
 0xfdd   : > { %7833 = vmatmul.mubr.f32.gmra.mxu1 %v6701_v14 }
0x1091   : > { %v7831_v38 = vpop.f32.mrf.mxu1 }
0x1092   : > { %v6804_v59 = vadd.f32 %v7831_v38, %v9355_v45 }
0x1093   : > { %v6784_v7 = vpop.f32.mrf.mxu1 }
0x1094   : > { %v6803_v26 = vadd.f32 %v6784_v7, %v9358_v51  ;;  %v6813_v16 = vadd.f32 %v7086_v63, %v6804_v59  ;;  %v7088_v51 = vld [vmem:[%s9508_s4 + $0x138] sm:$0xff] }
0x1096   : > { %v6812_v28 = vadd.f32 %v7085_v20, %v6803_v26  ;;  %6817 = vst.msk [vmem:[%s263_s8 + $0x8] sm:$0xff] %vm287_vm0, %v6813_v16 }
0x1098   : > { %6816 = vst.msk [vmem:[%s263_s8] sm:$0xff] %vm287_vm0, %v6812_v28 }
0x109d   : > { %v7834_v45 = vpop.f32.mrf.mxu1 }
0x109e   : > { %v6806_v15 = vadd.f32 %v7834_v45, %v9374_v31 }
0x109f   : > { %v6794_v43 = vpop.f32.mrf.mxu1 }
0x10a0   : > { %v6805_v12 = vadd.f32 %v6794_v43, %v9371_v3  ;;  %v6815_v40 = vadd.f32 %v7088_v51, %v6806_v15 }
0x10a2   : > { %v6814_v30 = vadd.f32 %v7087_v13, %v6805_v12  ;;  %6819 = vst.msk [vmem:[%s263_s8 + $0x18] sm:$0xff] %vm287_vm0, %v6815_v40 }
0x10a4   : > { %6818 = vst.msk [vmem:[%s263_s8 + $0x10] sm:$0xff] %vm287_vm0, %v6814_v30 }
0x10a5 PF: > { %s16_s18 = sadd.s32 1, %s8072_s18  }
0x10a6   : > { %p13_p2 = scmp.ge.s32.totalorder %s16_s18, 4  }
0x10a8   :  { %15 = sbr.rel (!%p13_p2) target bundleno = 1 (0x1), region = 87 }
0x10ad   :  { %6842 = vsyncpa [#allocation4], 1 }
0x10ae   :  { %6844 = vsyncpa [#allocation4 + $0x1], 1 }

</bundles_post_ra>
